<compile_context>
chip_gen: v5e
topology: v5e:2x2
jax: 0.10.0
libtpu: 0.0.40
codegen_flags: <defaults>
</compile_context>

<pallas_src>
import functools

import jax
import jax.numpy as jnp
from jax import lax
from jax.experimental import pallas as pl
from jax.experimental.pallas import tpu as pltpu

BN_EPS = 1e-5


# ----------------------------- in-kernel math helpers -----------------------------
def _hard_swish(x):
    return x * jnp.clip(x + 3.0, 0.0, 6.0) * (1.0 / 6.0)


def _hard_sigmoid(x):
    return jnp.clip(x + 3.0, 0.0, 6.0) * (1.0 / 6.0)


def _shift_flat(v, di, dj, W2, col_id):
    """result[i*W2+j] = v[(i+di)*W2 + (j+dj)], zero outside the H2 x W2 grid.

    v: (H2*W2, C) flattened row-major over (i, j); di, dj static Python ints.
    col_id: (H2*W2, 1) int32 holding j = row % W2 (hoisted, reused across taps).
    """
    M2, C = v.shape
    off = di * W2 + dj
    if off > 0:
        v = jnp.concatenate([v[off:, :], jnp.zeros((off, C), v.dtype)], axis=0)
    elif off < 0:
        v = jnp.concatenate([jnp.zeros((-off, C), v.dtype), v[:M2 + off, :]], axis=0)
    if dj == -1:
        v = jnp.where(col_id == 0, 0.0, v)
    elif dj == 1:
        v = jnp.where(col_id == W2 - 1, 0.0, v)
    return v


def _dw3x3_stride1(v, w9, b, W2, col_id):
    """Depthwise 3x3, stride 1, pad 1 on flat (H2*W2, C) + bias.  w9: (9, C)."""
    acc = jnp.zeros_like(v)
    for a in range(3):
        for c in range(3):
            t = a * 3 + c
            acc = acc + _shift_flat(v, a - 1, c - 1, W2, col_id) * w9[t:t + 1, :]
    return acc + b


# tap index -> (source parity, block shift) for the stride-2 / pad-1 case:
#   source row 2i + a - 1:  a=0 -> odd rows, block i-1 ; a=1 -> even, block i ; a=2 -> odd, block i
_S2_TAP = ((1, -1), (0, 0), (1, 0))


def _dw3x3_stride2(planes, w9, b, W2, col_id):
    """Depthwise 3x3, stride 2, pad 1, computed directly at output resolution.

    planes[2*rp + cp]: flat (H2*W2, C) parity plane holding x[2i+rp, 2j+cp, :].
    """
    acc = jnp.zeros_like(planes[0])
    for a in range(3):
        rp, di = _S2_TAP[a]
        for c in range(3):
            cp, dj = _S2_TAP[c]
            t = a * 3 + c
            acc = acc + (_shift_flat(planes[2 * rp + cp], di, dj, W2, col_id)
                         * w9[t:t + 1, :])
    return acc + b


# --------------------------------- fused Pallas kernel -----------------------------
def _esblock2_kernel(xp_ref,
                     dw1_w, dw1_b, pw1_w, pw1_b,
                     pw21_w, pw21_b, dw2_w, dw2_b,
                     se_w1, se_b1, se_w2, se_b2,
                     pw22_w, pw22_b, cdw_w, cdw_b,
                     cpw_w, cpw_b, o_ref, *, H2, W2):
    M2 = H2 * W2
    col_id = lax.broadcasted_iota(jnp.int32, (M2, 1), 0) % W2

    xp = xp_ref[0].astype(jnp.float32)                      # (4*M2, Cin) parity-major
    x_planes = [xp[p * M2:(p + 1) * M2, :] for p in range(4)]

    # ---- branch 1: dw_1 (stride 2, no act) -> pw_1 (hard_swish) ----
    x1 = _dw3x3_stride2(x_planes, dw1_w[...], dw1_b[...], W2, col_id)        # (M2, Cin)
    x1 = _hard_swish(jnp.dot(x1, pw1_w[...], preferred_element_type=jnp.float32)
                     + pw1_b[...])                                           # (M2, oc2)

    # ---- branch 2: pw_2_1 (hs, full res via parity) -> dw_2 (s2) -> SE -> pw_2_2 ----
    x2f = _hard_swish(jnp.dot(xp, pw21_w[...], preferred_element_type=jnp.float32)
                      + pw21_b[...])                                         # (4*M2, oc2)
    x2_planes = [x2f[p * M2:(p + 1) * M2, :] for p in range(4)]
    x2 = _dw3x3_stride2(x2_planes, dw2_w[...], dw2_b[...], W2, col_id)       # (M2, oc2)

    pooled = jnp.sum(x2, axis=0, keepdims=True) * (1.0 / M2)                 # (1, oc2)
    h = jnp.maximum(jnp.dot(pooled, se_w1[...], preferred_element_type=jnp.float32)
                    + se_b1[...], 0.0)                                       # ReLU
    gate = _hard_sigmoid(jnp.dot(h, se_w2[...], preferred_element_type=jnp.float32)
                         + se_b2[...])                                       # (1, oc2)
    x2 = x2 * gate
    x2 = _hard_swish(jnp.dot(x2, pw22_w[...], preferred_element_type=jnp.float32)
                     + pw22_b[...])                                          # (M2, oc2)

    # ---- fuse: channel concat (in VMEM) -> concat_dw (s1, hs) -> concat_pw (hs) ----
    xc = jnp.concatenate([x1, x2], axis=-1)                                  # (M2, Cout)
    xc = _hard_swish(_dw3x3_stride1(xc, cdw_w[...], cdw_b[...], W2, col_id))
    xc = _hard_swish(jnp.dot(xc, cpw_w[...], preferred_element_type=jnp.float32)
                     + cpw_b[...])
    o_ref[0] = xc.astype(o_ref.dtype)


# ----------------------------- parameter init / folding ----------------------------
def _fold_bn(gamma, beta, mean, var):
    std = jnp.sqrt(var + BN_EPS)
    scale = gamma / std
    bias = beta - mean * scale
    return scale, bias


def _fold_rep_dw(p, has_identity):
    """Fold rep depthwise branches (3x3+BN, 1x1+BN, id-BN) into (3,3,C) weight + (C,) bias."""
    s3, b3 = _fold_bn(*p["bn3"])
    w = p["w3"][:, 0].transpose(1, 2, 0) * s3        # (3,3,C)
    b = b3
    s1, b1 = _fold_bn(*p["bn1"])
    w = w.at[1, 1, :].add(p["w1"][:, 0, 0, 0] * s1)  # 1x1 branch -> 3x3 center
    b = b + b1
    if has_identity:
        si, bi = _fold_bn(*p["bn_id"])
        w = w.at[1, 1, :].add(si)                    # identity-BN branch -> center
        b = b + bi
    return w.astype(jnp.float32), b.astype(jnp.float32)


def init_params(key, in_channels, out_channels):
    oc2 = out_channels // 2
    cr = oc2 // 4
    keys = iter(jax.random.split(key, 128))

    def nrm(shape, scale=0.1):
        return scale * jax.random.normal(next(keys), shape, jnp.float32)

    def bn(c):
        gamma = 1.0 + 0.1 * jax.random.normal(next(keys), (c,), jnp.float32)
        beta = 0.1 * jax.random.normal(next(keys), (c,), jnp.float32)
        mean = 0.1 * jax.random.normal(next(keys), (c,), jnp.float32)
        var = jax.random.uniform(next(keys), (c,), jnp.float32, 0.5, 1.5)
        return gamma, beta, mean, var

    def rep_dw(c, has_identity):
        p = {"w3": nrm((c, 1, 3, 3)), "bn3": bn(c),
             "w1": nrm((c, 1, 1, 1)), "bn1": bn(c)}
        if has_identity:
            p["bn_id"] = bn(c)
        return _fold_rep_dw(p, has_identity)

    def conv_bn_1x1(cin, cout):
        w = nrm((cout, cin, 1, 1))                  # PyTorch (Cout, Cin, 1, 1), bias=False
        s, bi = _fold_bn(*bn(cout))
        w_eff = w[:, :, 0, 0].T * s[None, :]        # (Cin, Cout) with BN folded
        return w_eff.astype(jnp.float32), bi.astype(jnp.float32)

    return {
        "dw_1": rep_dw(in_channels, has_identity=False),        # stride 2 -> no id branch
        "pw_1": conv_bn_1x1(in_channels, oc2),
        "pw_2_1": conv_bn_1x1(in_channels, oc2),
        "dw_2": rep_dw(oc2, has_identity=False),                 # stride 2 -> no id branch
        "se": (nrm((oc2, cr)), nrm((cr,)), nrm((cr, oc2)), nrm((oc2,))),
        "pw_2_2": conv_bn_1x1(oc2, oc2),
        "concat_dw": rep_dw(out_channels, has_identity=True),    # stride 1, in==out
        "concat_pw": conv_bn_1x1(out_channels, out_channels),
    }


# ---------------------------------- block forward ----------------------------------
def rep_es_block2(x_nchw, params):
    N, Cin, H, W = x_nchw.shape
    H2, W2 = H // 2, W // 2
    M2 = H2 * W2

    dw1_w, dw1_b = params["dw_1"]
    pw1_w, pw1_b = params["pw_1"]
    pw21_w, pw21_b = params["pw_2_1"]
    dw2_w, dw2_b = params["dw_2"]
    se_w1, se_b1, se_w2, se_b2 = params["se"]
    pw22_w, pw22_b = params["pw_2_2"]
    cdw_w, cdw_b = params["concat_dw"]
    cpw_w, cpw_b = params["concat_pw"]

    oc2 = pw1_w.shape[1]
    cout = cpw_w.shape[1]
    cr = se_w1.shape[1]

    # space-to-depth parity decomposition (one small XLA transpose of the raw input):
    #   row p*H2*W2 + i*W2 + j holds x[:, 2i+rp, 2j+cp] with p = 2*rp + cp.
    xp = x_nchw.reshape(N, Cin, H2, 2, W2, 2)
    xp = xp.transpose(0, 3, 5, 2, 4, 1).reshape(N, 4 * M2, Cin)

    args = (
        xp,
        dw1_w.reshape(9, Cin), dw1_b.reshape(1, Cin),
        pw1_w, pw1_b.reshape(1, oc2),
        pw21_w, pw21_b.reshape(1, oc2),
        dw2_w.reshape(9, oc2), dw2_b.reshape(1, oc2),
        se_w1, se_b1.reshape(1, cr),
        se_w2, se_b2.reshape(1, oc2),
        pw22_w, pw22_b.reshape(1, oc2),
        cdw_w.reshape(9, cout), cdw_b.reshape(1, cout),
        cpw_w, cpw_b.reshape(1, cout),
    )

    def full2d(a):
        return pl.BlockSpec(a.shape, lambda n: (0,) * a.ndim)

    in_specs = [pl.BlockSpec((1, 4 * M2, Cin), lambda n: (n, 0, 0))]
    in_specs += [full2d(a) for a in args[1:]]

    kernel = functools.partial(_esblock2_kernel, H2=H2, W2=W2)
    y = pl.pallas_call(
        kernel,
        out_shape=jax.ShapeDtypeStruct((N, M2, cout), x_nchw.dtype),
        grid=(N,),
        in_specs=in_specs,
        out_specs=pl.BlockSpec((1, M2, cout), lambda n: (n, 0, 0)),
        compiler_params=pltpu.CompilerParams(
            dimension_semantics=("parallel",)),
    )(*args)

    # flat (i*W2 + j, Cout) rows -> NCHW
    return y.reshape(N, H2, W2, cout).transpose(0, 3, 1, 2)


if __name__ == "__main__":
    N, Cin, Cout, H, W = 2, 8, 16, 16, 16
    key = jax.random.PRNGKey(0)
    k_x, k_p = jax.random.split(key)
    x = jax.random.normal(k_x, (N, Cin, H, W), jnp.float32)
    params = init_params(k_p, Cin, Cout)

    y = jax.jit(rep_es_block2)(x, params)
    y = jax.block_until_ready(y)

    assert y.shape == (N, Cout, H // 2, W // 2), y.shape
    assert bool(jnp.all(jnp.isfinite(y)))
    print("KERNEL_OK")
</pallas_src>

<mosaic_0001>
module attributes {stable_mosaic.version = 11 : i64} {
  func.func @_esblock2_kernel(%arg0: i32, %arg1: memref<1x256x8xf32, #tpu.memory_space<vmem>>, %arg2: memref<9x8xf32, #tpu.memory_space<vmem>>, %arg3: memref<1x8xf32, #tpu.memory_space<vmem>>, %arg4: memref<8x8xf32, #tpu.memory_space<vmem>>, %arg5: memref<1x8xf32, #tpu.memory_space<vmem>>, %arg6: memref<8x8xf32, #tpu.memory_space<vmem>>, %arg7: memref<1x8xf32, #tpu.memory_space<vmem>>, %arg8: memref<9x8xf32, #tpu.memory_space<vmem>>, %arg9: memref<1x8xf32, #tpu.memory_space<vmem>>, %arg10: memref<8x2xf32, #tpu.memory_space<vmem>>, %arg11: memref<1x2xf32, #tpu.memory_space<vmem>>, %arg12: memref<2x8xf32, #tpu.memory_space<vmem>>, %arg13: memref<1x8xf32, #tpu.memory_space<vmem>>, %arg14: memref<8x8xf32, #tpu.memory_space<vmem>>, %arg15: memref<1x8xf32, #tpu.memory_space<vmem>>, %arg16: memref<9x16xf32, #tpu.memory_space<vmem>>, %arg17: memref<1x16xf32, #tpu.memory_space<vmem>>, %arg18: memref<16x16xf32, #tpu.memory_space<vmem>>, %arg19: memref<1x16xf32, #tpu.memory_space<vmem>>, %arg20: memref<1x64x16xf32, #tpu.memory_space<vmem>>) attributes {dimension_semantics = [#tpu.dimension_semantics<parallel>], iteration_bounds = array<i64: 2>, scalar_prefetch = 0 : i64, scratch_operands = 0 : i64, tpu.core_type = #tpu.core_type<tc>, window_params = [{transform_indices = @transform_0, window_bounds = array<i64: 1, 256, 8>}, {pipeline_mode = #tpu.pipeline_mode<synchronous>, transform_indices = @transform_1, window_bounds = array<i64: 9, 8>}, {pipeline_mode = #tpu.pipeline_mode<synchronous>, transform_indices = @transform_2, window_bounds = array<i64: 1, 8>}, {pipeline_mode = #tpu.pipeline_mode<synchronous>, transform_indices = @transform_3, window_bounds = array<i64: 8, 8>}, {pipeline_mode = #tpu.pipeline_mode<synchronous>, transform_indices = @transform_4, window_bounds = array<i64: 1, 8>}, {pipeline_mode = #tpu.pipeline_mode<synchronous>, transform_indices = @transform_5, window_bounds = array<i64: 8, 8>}, {pipeline_mode = #tpu.pipeline_mode<synchronous>, transform_indices = @transform_6, window_bounds = array<i64: 1, 8>}, {pipeline_mode = #tpu.pipeline_mode<synchronous>, transform_indices = @transform_7, window_bounds = array<i64: 9, 8>}, {pipeline_mode = #tpu.pipeline_mode<synchronous>, transform_indices = @transform_8, window_bounds = array<i64: 1, 8>}, {pipeline_mode = #tpu.pipeline_mode<synchronous>, transform_indices = @transform_9, window_bounds = array<i64: 8, 2>}, {pipeline_mode = #tpu.pipeline_mode<synchronous>, transform_indices = @transform_10, window_bounds = array<i64: 1, 2>}, {pipeline_mode = #tpu.pipeline_mode<synchronous>, transform_indices = @transform_11, window_bounds = array<i64: 2, 8>}, {pipeline_mode = #tpu.pipeline_mode<synchronous>, transform_indices = @transform_12, window_bounds = array<i64: 1, 8>}, {pipeline_mode = #tpu.pipeline_mode<synchronous>, transform_indices = @transform_13, window_bounds = array<i64: 8, 8>}, {pipeline_mode = #tpu.pipeline_mode<synchronous>, transform_indices = @transform_14, window_bounds = array<i64: 1, 8>}, {pipeline_mode = #tpu.pipeline_mode<synchronous>, transform_indices = @transform_15, window_bounds = array<i64: 9, 16>}, {pipeline_mode = #tpu.pipeline_mode<synchronous>, transform_indices = @transform_16, window_bounds = array<i64: 1, 16>}, {pipeline_mode = #tpu.pipeline_mode<synchronous>, transform_indices = @transform_17, window_bounds = array<i64: 16, 16>}, {pipeline_mode = #tpu.pipeline_mode<synchronous>, transform_indices = @transform_18, window_bounds = array<i64: 1, 16>}, {transform_indices = @transform_19, window_bounds = array<i64: 1, 64, 16>}]} {
    %0 = tpu.iota {dimensions = array<i32: 0>} : vector<64x1xi32>
    %c8_i32 = arith.constant 8 : i32
    %c0_i32 = arith.constant 0 : i32
    %1 = arith.cmpi eq, %c8_i32, %c0_i32 : i32
    %c1_i32 = arith.constant 1 : i32
    %2 = arith.select %1, %c1_i32, %c8_i32 : i32
    %3 = vector.broadcast %2 : i32 to vector<64x1xi32>
    %4 = arith.remsi %0, %3 : vector<64x1xi32>
    %c0_i32_0 = arith.constant 0 : i32
    %5 = vector.broadcast %c0_i32_0 : i32 to vector<64x1xi32>
    %6 = arith.cmpi ne, %4, %5 : vector<64x1xi32>
    %c0_i32_1 = arith.constant 0 : i32
    %7 = vector.broadcast %c0_i32_1 : i32 to vector<64x1xi32>
    %8 = arith.cmpi slt, %4, %7 : vector<64x1xi32>
    %c0_i32_2 = arith.constant 0 : i32
    %9 = arith.cmpi slt, %2, %c0_i32_2 : i32
    %10 = vector.broadcast %9 : i1 to vector<64x1xi1>
    %11 = vector.broadcast %10 : vector<64x1xi1> to vector<64x1xi1>
    %12 = arith.xori %8, %11 : vector<64x1xi1>
    %13 = arith.andi %12, %6 : vector<64x1xi1>
    %14 = vector.broadcast %2 : i32 to vector<64x1xi32>
    %15 = arith.addi %4, %14 : vector<64x1xi32>
    %16 = arith.select %13, %15, %4 : vector<64x1xi1>, vector<64x1xi32>
    %c0 = arith.constant 0 : index
    %c0_3 = arith.constant 0 : index
    %c0_4 = arith.constant 0 : index
    %17 = vector.load %arg1[%c0, %c0_3, %c0_4] : memref<1x256x8xf32, #tpu.memory_space<vmem>>, vector<1x256x8xf32>
    %18 = vector.shape_cast %17 : vector<1x256x8xf32> to vector<256x8xf32>
    %19 = vector.extract_strided_slice %18 {offsets = [0, 0], sizes = [64, 8], strides = [1, 1]} : vector<256x8xf32> to vector<64x8xf32>
    %20 = vector.extract_strided_slice %18 {offsets = [64, 0], sizes = [64, 8], strides = [1, 1]} : vector<256x8xf32> to vector<64x8xf32>
    %21 = vector.extract_strided_slice %18 {offsets = [128, 0], sizes = [64, 8], strides = [1, 1]} : vector<256x8xf32> to vector<64x8xf32>
    %22 = vector.extract_strided_slice %18 {offsets = [192, 0], sizes = [64, 8], strides = [1, 1]} : vector<256x8xf32> to vector<64x8xf32>
    %c0_5 = arith.constant 0 : index
    %c0_6 = arith.constant 0 : index
    %23 = vector.load %arg2[%c0_5, %c0_6] : memref<9x8xf32, #tpu.memory_space<vmem>>, vector<9x8xf32>
    %c0_7 = arith.constant 0 : index
    %c0_8 = arith.constant 0 : index
    %24 = vector.load %arg3[%c0_7, %c0_8] : memref<1x8xf32, #tpu.memory_space<vmem>>, vector<1x8xf32>
    %cst = arith.constant 0.000000e+00 : f32
    %25 = vector.broadcast %cst : f32 to vector<64x8xf32>
    %cst_9 = arith.constant 0.000000e+00 : f32
    %26 = vector.broadcast %cst_9 : f32 to vector<9x8xf32>
    %27 = vector.extract_strided_slice %22 {offsets = [0, 0], sizes = [55, 8], strides = [1, 1]} : vector<64x8xf32> to vector<55x8xf32>
    %28 = tpu.concatenate %26, %27 in 0 : vector<9x8xf32>, vector<55x8xf32> -> vector<64x8xf32>
    %c0_i32_10 = arith.constant 0 : i32
    %29 = vector.broadcast %c0_i32_10 : i32 to vector<64x1xi32>
    %30 = arith.cmpi eq, %16, %29 : vector<64x1xi32>
    %cst_11 = arith.constant 0.000000e+00 : f32
    %31 = vector.shape_cast %30 : vector<64x1xi1> to vector<64x1xi1>
    %32 = vector.broadcast %31 : vector<64x1xi1> to vector<64x8xi1>
    %33 = vector.broadcast %cst_11 : f32 to vector<64x8xf32>
    %34 = arith.select %32, %33, %28 : vector<64x8xi1>, vector<64x8xf32>
    %35 = vector.extract_strided_slice %23 {offsets = [0, 0], sizes = [1, 8], strides = [1, 1]} : vector<9x8xf32> to vector<1x8xf32>
    %36 = vector.broadcast %35 : vector<1x8xf32> to vector<64x8xf32>
    %37 = arith.mulf %34, %36 : vector<64x8xf32>
    %38 = arith.addf %25, %37 : vector<64x8xf32>
    %cst_12 = arith.constant 0.000000e+00 : f32
    %39 = vector.broadcast %cst_12 : f32 to vector<8x8xf32>
    %40 = vector.extract_strided_slice %21 {offsets = [0, 0], sizes = [56, 8], strides = [1, 1]} : vector<64x8xf32> to vector<56x8xf32>
    %41 = tpu.concatenate %39, %40 in 0 : vector<8x8xf32>, vector<56x8xf32> -> vector<64x8xf32>
    %42 = vector.extract_strided_slice %23 {offsets = [1, 0], sizes = [1, 8], strides = [1, 1]} : vector<9x8xf32> to vector<1x8xf32>
    %43 = vector.broadcast %42 : vector<1x8xf32> to vector<64x8xf32>
    %44 = arith.mulf %41, %43 : vector<64x8xf32>
    %45 = arith.addf %38, %44 : vector<64x8xf32>
    %cst_13 = arith.constant 0.000000e+00 : f32
    %46 = vector.broadcast %cst_13 : f32 to vector<8x8xf32>
    %47 = vector.extract_strided_slice %22 {offsets = [0, 0], sizes = [56, 8], strides = [1, 1]} : vector<64x8xf32> to vector<56x8xf32>
    %48 = tpu.concatenate %46, %47 in 0 : vector<8x8xf32>, vector<56x8xf32> -> vector<64x8xf32>
    %49 = vector.extract_strided_slice %23 {offsets = [2, 0], sizes = [1, 8], strides = [1, 1]} : vector<9x8xf32> to vector<1x8xf32>
    %50 = vector.broadcast %49 : vector<1x8xf32> to vector<64x8xf32>
    %51 = arith.mulf %48, %50 : vector<64x8xf32>
    %52 = arith.addf %45, %51 : vector<64x8xf32>
    %cst_14 = arith.constant 0.000000e+00 : f32
    %53 = vector.broadcast %cst_14 : f32 to vector<1x8xf32>
    %54 = vector.extract_strided_slice %20 {offsets = [0, 0], sizes = [63, 8], strides = [1, 1]} : vector<64x8xf32> to vector<63x8xf32>
    %55 = tpu.concatenate %53, %54 in 0 : vector<1x8xf32>, vector<63x8xf32> -> vector<64x8xf32>
    %c0_i32_15 = arith.constant 0 : i32
    %56 = vector.broadcast %c0_i32_15 : i32 to vector<64x1xi32>
    %57 = arith.cmpi eq, %16, %56 : vector<64x1xi32>
    %cst_16 = arith.constant 0.000000e+00 : f32
    %58 = vector.shape_cast %57 : vector<64x1xi1> to vector<64x1xi1>
    %59 = vector.broadcast %58 : vector<64x1xi1> to vector<64x8xi1>
    %60 = vector.broadcast %cst_16 : f32 to vector<64x8xf32>
    %61 = arith.select %59, %60, %55 : vector<64x8xi1>, vector<64x8xf32>
    %62 = vector.extract_strided_slice %23 {offsets = [3, 0], sizes = [1, 8], strides = [1, 1]} : vector<9x8xf32> to vector<1x8xf32>
    %63 = vector.broadcast %62 : vector<1x8xf32> to vector<64x8xf32>
    %64 = arith.mulf %61, %63 : vector<64x8xf32>
    %65 = arith.addf %52, %64 : vector<64x8xf32>
    %66 = vector.extract_strided_slice %23 {offsets = [4, 0], sizes = [1, 8], strides = [1, 1]} : vector<9x8xf32> to vector<1x8xf32>
    %67 = vector.broadcast %66 : vector<1x8xf32> to vector<64x8xf32>
    %68 = arith.mulf %19, %67 : vector<64x8xf32>
    %69 = arith.addf %65, %68 : vector<64x8xf32>
    %70 = vector.extract_strided_slice %23 {offsets = [5, 0], sizes = [1, 8], strides = [1, 1]} : vector<9x8xf32> to vector<1x8xf32>
    %71 = vector.broadcast %70 : vector<1x8xf32> to vector<64x8xf32>
    %72 = arith.mulf %20, %71 : vector<64x8xf32>
    %73 = arith.addf %69, %72 : vector<64x8xf32>
    %cst_17 = arith.constant 0.000000e+00 : f32
    %74 = vector.broadcast %cst_17 : f32 to vector<1x8xf32>
    %75 = vector.extract_strided_slice %22 {offsets = [0, 0], sizes = [63, 8], strides = [1, 1]} : vector<64x8xf32> to vector<63x8xf32>
    %76 = tpu.concatenate %74, %75 in 0 : vector<1x8xf32>, vector<63x8xf32> -> vector<64x8xf32>
    %c0_i32_18 = arith.constant 0 : i32
    %77 = vector.broadcast %c0_i32_18 : i32 to vector<64x1xi32>
    %78 = arith.cmpi eq, %16, %77 : vector<64x1xi32>
    %cst_19 = arith.constant 0.000000e+00 : f32
    %79 = vector.shape_cast %78 : vector<64x1xi1> to vector<64x1xi1>
    %80 = vector.broadcast %79 : vector<64x1xi1> to vector<64x8xi1>
    %81 = vector.broadcast %cst_19 : f32 to vector<64x8xf32>
    %82 = arith.select %80, %81, %76 : vector<64x8xi1>, vector<64x8xf32>
    %83 = vector.extract_strided_slice %23 {offsets = [6, 0], sizes = [1, 8], strides = [1, 1]} : vector<9x8xf32> to vector<1x8xf32>
    %84 = vector.broadcast %83 : vector<1x8xf32> to vector<64x8xf32>
    %85 = arith.mulf %82, %84 : vector<64x8xf32>
    %86 = arith.addf %73, %85 : vector<64x8xf32>
    %87 = vector.extract_strided_slice %23 {offsets = [7, 0], sizes = [1, 8], strides = [1, 1]} : vector<9x8xf32> to vector<1x8xf32>
    %88 = vector.broadcast %87 : vector<1x8xf32> to vector<64x8xf32>
    %89 = arith.mulf %21, %88 : vector<64x8xf32>
    %90 = arith.addf %86, %89 : vector<64x8xf32>
    %91 = vector.extract_strided_slice %23 {offsets = [8, 0], sizes = [1, 8], strides = [1, 1]} : vector<9x8xf32> to vector<1x8xf32>
    %92 = vector.broadcast %91 : vector<1x8xf32> to vector<64x8xf32>
    %93 = arith.mulf %22, %92 : vector<64x8xf32>
    %94 = arith.addf %90, %93 : vector<64x8xf32>
    %95 = vector.broadcast %24 : vector<1x8xf32> to vector<64x8xf32>
    %96 = arith.addf %94, %95 : vector<64x8xf32>
    %c0_20 = arith.constant 0 : index
    %c0_21 = arith.constant 0 : index
    %97 = vector.load %arg4[%c0_20, %c0_21] : memref<8x8xf32, #tpu.memory_space<vmem>>, vector<8x8xf32>
    %cst_22 = arith.constant dense<0.000000e+00> : vector<64x8xf32>
    %98 = tpu.matmul %96, %97, %cst_22 {dimension_numbers = #tpu.dot_dimension_numbers<[1], [0], [0], [1], [0, 0, 1, 1], [], []>} : vector<64x8xf32>, vector<8x8xf32>, vector<64x8xf32> -> vector<64x8xf32>
    %c0_23 = arith.constant 0 : index
    %c0_24 = arith.constant 0 : index
    %99 = vector.load %arg5[%c0_23, %c0_24] : memref<1x8xf32, #tpu.memory_space<vmem>>, vector<1x8xf32>
    %100 = vector.broadcast %99 : vector<1x8xf32> to vector<64x8xf32>
    %101 = arith.addf %98, %100 : vector<64x8xf32>
    %cst_25 = arith.constant 3.000000e+00 : f32
    %102 = vector.broadcast %cst_25 : f32 to vector<64x8xf32>
    %103 = arith.addf %101, %102 : vector<64x8xf32>
    %cst_26 = arith.constant 0.000000e+00 : f32
    %cst_27 = arith.constant 6.000000e+00 : f32
    %104 = vector.broadcast %cst_26 : f32 to vector<64x8xf32>
    %105 = arith.maximumf %104, %103 : vector<64x8xf32>
    %106 = vector.broadcast %cst_27 : f32 to vector<64x8xf32>
    %107 = arith.minimumf %106, %105 : vector<64x8xf32>
    %108 = arith.mulf %101, %107 : vector<64x8xf32>
    %cst_28 = arith.constant 0.166666672 : f32
    %109 = vector.broadcast %cst_28 : f32 to vector<64x8xf32>
    %110 = arith.mulf %108, %109 : vector<64x8xf32>
    %c0_29 = arith.constant 0 : index
    %c0_30 = arith.constant 0 : index
    %111 = vector.load %arg6[%c0_29, %c0_30] : memref<8x8xf32, #tpu.memory_space<vmem>>, vector<8x8xf32>
    %cst_31 = arith.constant dense<0.000000e+00> : vector<256x8xf32>
    %112 = tpu.matmul %18, %111, %cst_31 {dimension_numbers = #tpu.dot_dimension_numbers<[1], [0], [0], [1], [0, 0, 1, 1], [], []>} : vector<256x8xf32>, vector<8x8xf32>, vector<256x8xf32> -> vector<256x8xf32>
    %c0_32 = arith.constant 0 : index
    %c0_33 = arith.constant 0 : index
    %113 = vector.load %arg7[%c0_32, %c0_33] : memref<1x8xf32, #tpu.memory_space<vmem>>, vector<1x8xf32>
    %114 = vector.broadcast %113 : vector<1x8xf32> to vector<256x8xf32>
    %115 = arith.addf %112, %114 : vector<256x8xf32>
    %cst_34 = arith.constant 3.000000e+00 : f32
    %116 = vector.broadcast %cst_34 : f32 to vector<256x8xf32>
    %117 = arith.addf %115, %116 : vector<256x8xf32>
    %cst_35 = arith.constant 0.000000e+00 : f32
    %cst_36 = arith.constant 6.000000e+00 : f32
    %118 = vector.broadcast %cst_35 : f32 to vector<256x8xf32>
    %119 = arith.maximumf %118, %117 : vector<256x8xf32>
    %120 = vector.broadcast %cst_36 : f32 to vector<256x8xf32>
    %121 = arith.minimumf %120, %119 : vector<256x8xf32>
    %122 = arith.mulf %115, %121 : vector<256x8xf32>
    %cst_37 = arith.constant 0.166666672 : f32
    %123 = vector.broadcast %cst_37 : f32 to vector<256x8xf32>
    %124 = arith.mulf %122, %123 : vector<256x8xf32>
    %125 = vector.extract_strided_slice %124 {offsets = [0, 0], sizes = [64, 8], strides = [1, 1]} : vector<256x8xf32> to vector<64x8xf32>
    %126 = vector.extract_strided_slice %124 {offsets = [64, 0], sizes = [64, 8], strides = [1, 1]} : vector<256x8xf32> to vector<64x8xf32>
    %127 = vector.extract_strided_slice %124 {offsets = [128, 0], sizes = [64, 8], strides = [1, 1]} : vector<256x8xf32> to vector<64x8xf32>
    %128 = vector.extract_strided_slice %124 {offsets = [192, 0], sizes = [64, 8], strides = [1, 1]} : vector<256x8xf32> to vector<64x8xf32>
    %c0_38 = arith.constant 0 : index
    %c0_39 = arith.constant 0 : index
    %129 = vector.load %arg8[%c0_38, %c0_39] : memref<9x8xf32, #tpu.memory_space<vmem>>, vector<9x8xf32>
    %c0_40 = arith.constant 0 : index
    %c0_41 = arith.constant 0 : index
    %130 = vector.load %arg9[%c0_40, %c0_41] : memref<1x8xf32, #tpu.memory_space<vmem>>, vector<1x8xf32>
    %cst_42 = arith.constant 0.000000e+00 : f32
    %131 = vector.broadcast %cst_42 : f32 to vector<64x8xf32>
    %cst_43 = arith.constant 0.000000e+00 : f32
    %132 = vector.broadcast %cst_43 : f32 to vector<9x8xf32>
    %133 = vector.extract_strided_slice %128 {offsets = [0, 0], sizes = [55, 8], strides = [1, 1]} : vector<64x8xf32> to vector<55x8xf32>
    %134 = tpu.concatenate %132, %133 in 0 : vector<9x8xf32>, vector<55x8xf32> -> vector<64x8xf32>
    %c0_i32_44 = arith.constant 0 : i32
    %135 = vector.broadcast %c0_i32_44 : i32 to vector<64x1xi32>
    %136 = arith.cmpi eq, %16, %135 : vector<64x1xi32>
    %cst_45 = arith.constant 0.000000e+00 : f32
    %137 = vector.shape_cast %136 : vector<64x1xi1> to vector<64x1xi1>
    %138 = vector.broadcast %137 : vector<64x1xi1> to vector<64x8xi1>
    %139 = vector.broadcast %cst_45 : f32 to vector<64x8xf32>
    %140 = arith.select %138, %139, %134 : vector<64x8xi1>, vector<64x8xf32>
    %141 = vector.extract_strided_slice %129 {offsets = [0, 0], sizes = [1, 8], strides = [1, 1]} : vector<9x8xf32> to vector<1x8xf32>
    %142 = vector.broadcast %141 : vector<1x8xf32> to vector<64x8xf32>
    %143 = arith.mulf %140, %142 : vector<64x8xf32>
    %144 = arith.addf %131, %143 : vector<64x8xf32>
    %cst_46 = arith.constant 0.000000e+00 : f32
    %145 = vector.broadcast %cst_46 : f32 to vector<8x8xf32>
    %146 = vector.extract_strided_slice %127 {offsets = [0, 0], sizes = [56, 8], strides = [1, 1]} : vector<64x8xf32> to vector<56x8xf32>
    %147 = tpu.concatenate %145, %146 in 0 : vector<8x8xf32>, vector<56x8xf32> -> vector<64x8xf32>
    %148 = vector.extract_strided_slice %129 {offsets = [1, 0], sizes = [1, 8], strides = [1, 1]} : vector<9x8xf32> to vector<1x8xf32>
    %149 = vector.broadcast %148 : vector<1x8xf32> to vector<64x8xf32>
    %150 = arith.mulf %147, %149 : vector<64x8xf32>
    %151 = arith.addf %144, %150 : vector<64x8xf32>
    %cst_47 = arith.constant 0.000000e+00 : f32
    %152 = vector.broadcast %cst_47 : f32 to vector<8x8xf32>
    %153 = vector.extract_strided_slice %128 {offsets = [0, 0], sizes = [56, 8], strides = [1, 1]} : vector<64x8xf32> to vector<56x8xf32>
    %154 = tpu.concatenate %152, %153 in 0 : vector<8x8xf32>, vector<56x8xf32> -> vector<64x8xf32>
    %155 = vector.extract_strided_slice %129 {offsets = [2, 0], sizes = [1, 8], strides = [1, 1]} : vector<9x8xf32> to vector<1x8xf32>
    %156 = vector.broadcast %155 : vector<1x8xf32> to vector<64x8xf32>
    %157 = arith.mulf %154, %156 : vector<64x8xf32>
    %158 = arith.addf %151, %157 : vector<64x8xf32>
    %cst_48 = arith.constant 0.000000e+00 : f32
    %159 = vector.broadcast %cst_48 : f32 to vector<1x8xf32>
    %160 = vector.extract_strided_slice %126 {offsets = [0, 0], sizes = [63, 8], strides = [1, 1]} : vector<64x8xf32> to vector<63x8xf32>
    %161 = tpu.concatenate %159, %160 in 0 : vector<1x8xf32>, vector<63x8xf32> -> vector<64x8xf32>
    %c0_i32_49 = arith.constant 0 : i32
    %162 = vector.broadcast %c0_i32_49 : i32 to vector<64x1xi32>
    %163 = arith.cmpi eq, %16, %162 : vector<64x1xi32>
    %cst_50 = arith.constant 0.000000e+00 : f32
    %164 = vector.shape_cast %163 : vector<64x1xi1> to vector<64x1xi1>
    %165 = vector.broadcast %164 : vector<64x1xi1> to vector<64x8xi1>
    %166 = vector.broadcast %cst_50 : f32 to vector<64x8xf32>
    %167 = arith.select %165, %166, %161 : vector<64x8xi1>, vector<64x8xf32>
    %168 = vector.extract_strided_slice %129 {offsets = [3, 0], sizes = [1, 8], strides = [1, 1]} : vector<9x8xf32> to vector<1x8xf32>
    %169 = vector.broadcast %168 : vector<1x8xf32> to vector<64x8xf32>
    %170 = arith.mulf %167, %169 : vector<64x8xf32>
    %171 = arith.addf %158, %170 : vector<64x8xf32>
    %172 = vector.extract_strided_slice %129 {offsets = [4, 0], sizes = [1, 8], strides = [1, 1]} : vector<9x8xf32> to vector<1x8xf32>
    %173 = vector.broadcast %172 : vector<1x8xf32> to vector<64x8xf32>
    %174 = arith.mulf %125, %173 : vector<64x8xf32>
    %175 = arith.addf %171, %174 : vector<64x8xf32>
    %176 = vector.extract_strided_slice %129 {offsets = [5, 0], sizes = [1, 8], strides = [1, 1]} : vector<9x8xf32> to vector<1x8xf32>
    %177 = vector.broadcast %176 : vector<1x8xf32> to vector<64x8xf32>
    %178 = arith.mulf %126, %177 : vector<64x8xf32>
    %179 = arith.addf %175, %178 : vector<64x8xf32>
    %cst_51 = arith.constant 0.000000e+00 : f32
    %180 = vector.broadcast %cst_51 : f32 to vector<1x8xf32>
    %181 = vector.extract_strided_slice %128 {offsets = [0, 0], sizes = [63, 8], strides = [1, 1]} : vector<64x8xf32> to vector<63x8xf32>
    %182 = tpu.concatenate %180, %181 in 0 : vector<1x8xf32>, vector<63x8xf32> -> vector<64x8xf32>
    %c0_i32_52 = arith.constant 0 : i32
    %183 = vector.broadcast %c0_i32_52 : i32 to vector<64x1xi32>
    %184 = arith.cmpi eq, %16, %183 : vector<64x1xi32>
    %cst_53 = arith.constant 0.000000e+00 : f32
    %185 = vector.shape_cast %184 : vector<64x1xi1> to vector<64x1xi1>
    %186 = vector.broadcast %185 : vector<64x1xi1> to vector<64x8xi1>
    %187 = vector.broadcast %cst_53 : f32 to vector<64x8xf32>
    %188 = arith.select %186, %187, %182 : vector<64x8xi1>, vector<64x8xf32>
    %189 = vector.extract_strided_slice %129 {offsets = [6, 0], sizes = [1, 8], strides = [1, 1]} : vector<9x8xf32> to vector<1x8xf32>
    %190 = vector.broadcast %189 : vector<1x8xf32> to vector<64x8xf32>
    %191 = arith.mulf %188, %190 : vector<64x8xf32>
    %192 = arith.addf %179, %191 : vector<64x8xf32>
    %193 = vector.extract_strided_slice %129 {offsets = [7, 0], sizes = [1, 8], strides = [1, 1]} : vector<9x8xf32> to vector<1x8xf32>
    %194 = vector.broadcast %193 : vector<1x8xf32> to vector<64x8xf32>
    %195 = arith.mulf %127, %194 : vector<64x8xf32>
    %196 = arith.addf %192, %195 : vector<64x8xf32>
    %197 = vector.extract_strided_slice %129 {offsets = [8, 0], sizes = [1, 8], strides = [1, 1]} : vector<9x8xf32> to vector<1x8xf32>
    %198 = vector.broadcast %197 : vector<1x8xf32> to vector<64x8xf32>
    %199 = arith.mulf %128, %198 : vector<64x8xf32>
    %200 = arith.addf %196, %199 : vector<64x8xf32>
    %201 = vector.broadcast %130 : vector<1x8xf32> to vector<64x8xf32>
    %202 = arith.addf %200, %201 : vector<64x8xf32>
    %cst_54 = arith.constant dense<0.000000e+00> : vector<8xf32>
    %203 = vector.multi_reduction <add>, %202, %cst_54 [0] : vector<64x8xf32> to vector<8xf32>
    %204 = vector.shape_cast %203 : vector<8xf32> to vector<1x8xf32>
    %cst_55 = arith.constant 1.562500e-02 : f32
    %205 = vector.broadcast %cst_55 : f32 to vector<1x8xf32>
    %206 = arith.mulf %204, %205 : vector<1x8xf32>
    %c0_56 = arith.constant 0 : index
    %c0_57 = arith.constant 0 : index
    %207 = vector.load %arg10[%c0_56, %c0_57] : memref<8x2xf32, #tpu.memory_space<vmem>>, vector<8x2xf32>
    %cst_58 = arith.constant dense<0.000000e+00> : vector<1x2xf32>
    %208 = tpu.matmul %206, %207, %cst_58 {dimension_numbers = #tpu.dot_dimension_numbers<[1], [0], [0], [1], [0, 0, 1, 1], [], []>} : vector<1x8xf32>, vector<8x2xf32>, vector<1x2xf32> -> vector<1x2xf32>
    %c0_59 = arith.constant 0 : index
    %c0_60 = arith.constant 0 : index
    %209 = vector.load %arg11[%c0_59, %c0_60] : memref<1x2xf32, #tpu.memory_space<vmem>>, vector<1x2xf32>
    %210 = arith.addf %208, %209 : vector<1x2xf32>
    %cst_61 = arith.constant 0.000000e+00 : f32
    %211 = vector.broadcast %cst_61 : f32 to vector<1x2xf32>
    %212 = arith.maximumf %210, %211 : vector<1x2xf32>
    %c0_62 = arith.constant 0 : index
    %c0_63 = arith.constant 0 : index
    %213 = vector.load %arg12[%c0_62, %c0_63] : memref<2x8xf32, #tpu.memory_space<vmem>>, vector<2x8xf32>
    %cst_64 = arith.constant dense<0.000000e+00> : vector<1x8xf32>
    %214 = tpu.matmul %212, %213, %cst_64 {dimension_numbers = #tpu.dot_dimension_numbers<[1], [0], [0], [1], [0, 0, 1, 1], [], []>} : vector<1x2xf32>, vector<2x8xf32>, vector<1x8xf32> -> vector<1x8xf32>
    %c0_65 = arith.constant 0 : index
    %c0_66 = arith.constant 0 : index
    %215 = vector.load %arg13[%c0_65, %c0_66] : memref<1x8xf32, #tpu.memory_space<vmem>>, vector<1x8xf32>
    %216 = arith.addf %214, %215 : vector<1x8xf32>
    %cst_67 = arith.constant 3.000000e+00 : f32
    %217 = vector.broadcast %cst_67 : f32 to vector<1x8xf32>
    %218 = arith.addf %216, %217 : vector<1x8xf32>
    %cst_68 = arith.constant 0.000000e+00 : f32
    %cst_69 = arith.constant 6.000000e+00 : f32
    %219 = vector.broadcast %cst_68 : f32 to vector<1x8xf32>
    %220 = arith.maximumf %219, %218 : vector<1x8xf32>
    %221 = vector.broadcast %cst_69 : f32 to vector<1x8xf32>
    %222 = arith.minimumf %221, %220 : vector<1x8xf32>
    %cst_70 = arith.constant 0.166666672 : f32
    %223 = vector.broadcast %cst_70 : f32 to vector<1x8xf32>
    %224 = arith.mulf %222, %223 : vector<1x8xf32>
    %225 = vector.broadcast %224 : vector<1x8xf32> to vector<64x8xf32>
    %226 = arith.mulf %202, %225 : vector<64x8xf32>
    %c0_71 = arith.constant 0 : index
    %c0_72 = arith.constant 0 : index
    %227 = vector.load %arg14[%c0_71, %c0_72] : memref<8x8xf32, #tpu.memory_space<vmem>>, vector<8x8xf32>
    %cst_73 = arith.constant dense<0.000000e+00> : vector<64x8xf32>
    %228 = tpu.matmul %226, %227, %cst_73 {dimension_numbers = #tpu.dot_dimension_numbers<[1], [0], [0], [1], [0, 0, 1, 1], [], []>} : vector<64x8xf32>, vector<8x8xf32>, vector<64x8xf32> -> vector<64x8xf32>
    %c0_74 = arith.constant 0 : index
    %c0_75 = arith.constant 0 : index
    %229 = vector.load %arg15[%c0_74, %c0_75] : memref<1x8xf32, #tpu.memory_space<vmem>>, vector<1x8xf32>
    %230 = vector.broadcast %229 : vector<1x8xf32> to vector<64x8xf32>
    %231 = arith.addf %228, %230 : vector<64x8xf32>
    %cst_76 = arith.constant 3.000000e+00 : f32
    %232 = vector.broadcast %cst_76 : f32 to vector<64x8xf32>
    %233 = arith.addf %231, %232 : vector<64x8xf32>
    %cst_77 = arith.constant 0.000000e+00 : f32
    %cst_78 = arith.constant 6.000000e+00 : f32
    %234 = vector.broadcast %cst_77 : f32 to vector<64x8xf32>
    %235 = arith.maximumf %234, %233 : vector<64x8xf32>
    %236 = vector.broadcast %cst_78 : f32 to vector<64x8xf32>
    %237 = arith.minimumf %236, %235 : vector<64x8xf32>
    %238 = arith.mulf %231, %237 : vector<64x8xf32>
    %cst_79 = arith.constant 0.166666672 : f32
    %239 = vector.broadcast %cst_79 : f32 to vector<64x8xf32>
    %240 = arith.mulf %238, %239 : vector<64x8xf32>
    %241 = tpu.concatenate %110, %240 in 1 : vector<64x8xf32>, vector<64x8xf32> -> vector<64x16xf32>
    %c0_80 = arith.constant 0 : index
    %c0_81 = arith.constant 0 : index
    %242 = vector.load %arg16[%c0_80, %c0_81] : memref<9x16xf32, #tpu.memory_space<vmem>>, vector<9x16xf32>
    %c0_82 = arith.constant 0 : index
    %c0_83 = arith.constant 0 : index
    %243 = vector.load %arg17[%c0_82, %c0_83] : memref<1x16xf32, #tpu.memory_space<vmem>>, vector<1x16xf32>
    %cst_84 = arith.constant 0.000000e+00 : f32
    %244 = vector.broadcast %cst_84 : f32 to vector<64x16xf32>
    %cst_85 = arith.constant 0.000000e+00 : f32
    %245 = vector.broadcast %cst_85 : f32 to vector<9x16xf32>
    %246 = vector.extract_strided_slice %241 {offsets = [0, 0], sizes = [55, 16], strides = [1, 1]} : vector<64x16xf32> to vector<55x16xf32>
    %247 = tpu.concatenate %245, %246 in 0 : vector<9x16xf32>, vector<55x16xf32> -> vector<64x16xf32>
    %c0_i32_86 = arith.constant 0 : i32
    %248 = vector.broadcast %c0_i32_86 : i32 to vector<64x1xi32>
    %249 = arith.cmpi eq, %16, %248 : vector<64x1xi32>
    %cst_87 = arith.constant 0.000000e+00 : f32
    %250 = vector.shape_cast %249 : vector<64x1xi1> to vector<64x1xi1>
    %251 = vector.broadcast %250 : vector<64x1xi1> to vector<64x16xi1>
    %252 = vector.broadcast %cst_87 : f32 to vector<64x16xf32>
    %253 = arith.select %251, %252, %247 : vector<64x16xi1>, vector<64x16xf32>
    %254 = vector.extract_strided_slice %242 {offsets = [0, 0], sizes = [1, 16], strides = [1, 1]} : vector<9x16xf32> to vector<1x16xf32>
    %255 = vector.broadcast %254 : vector<1x16xf32> to vector<64x16xf32>
    %256 = arith.mulf %253, %255 : vector<64x16xf32>
    %257 = arith.addf %244, %256 : vector<64x16xf32>
    %cst_88 = arith.constant 0.000000e+00 : f32
    %258 = vector.broadcast %cst_88 : f32 to vector<8x16xf32>
    %259 = vector.extract_strided_slice %241 {offsets = [0, 0], sizes = [56, 16], strides = [1, 1]} : vector<64x16xf32> to vector<56x16xf32>
    %260 = tpu.concatenate %258, %259 in 0 : vector<8x16xf32>, vector<56x16xf32> -> vector<64x16xf32>
    %261 = vector.extract_strided_slice %242 {offsets = [1, 0], sizes = [1, 16], strides = [1, 1]} : vector<9x16xf32> to vector<1x16xf32>
    %262 = vector.broadcast %261 : vector<1x16xf32> to vector<64x16xf32>
    %263 = arith.mulf %260, %262 : vector<64x16xf32>
    %264 = arith.addf %257, %263 : vector<64x16xf32>
    %cst_89 = arith.constant 0.000000e+00 : f32
    %265 = vector.broadcast %cst_89 : f32 to vector<7x16xf32>
    %266 = vector.extract_strided_slice %241 {offsets = [0, 0], sizes = [57, 16], strides = [1, 1]} : vector<64x16xf32> to vector<57x16xf32>
    %267 = tpu.concatenate %265, %266 in 0 : vector<7x16xf32>, vector<57x16xf32> -> vector<64x16xf32>
    %c7_i32 = arith.constant 7 : i32
    %268 = vector.broadcast %c7_i32 : i32 to vector<64x1xi32>
    %269 = arith.cmpi eq, %16, %268 : vector<64x1xi32>
    %cst_90 = arith.constant 0.000000e+00 : f32
    %270 = vector.shape_cast %269 : vector<64x1xi1> to vector<64x1xi1>
    %271 = vector.broadcast %270 : vector<64x1xi1> to vector<64x16xi1>
    %272 = vector.broadcast %cst_90 : f32 to vector<64x16xf32>
    %273 = arith.select %271, %272, %267 : vector<64x16xi1>, vector<64x16xf32>
    %274 = vector.extract_strided_slice %242 {offsets = [2, 0], sizes = [1, 16], strides = [1, 1]} : vector<9x16xf32> to vector<1x16xf32>
    %275 = vector.broadcast %274 : vector<1x16xf32> to vector<64x16xf32>
    %276 = arith.mulf %273, %275 : vector<64x16xf32>
    %277 = arith.addf %264, %276 : vector<64x16xf32>
    %cst_91 = arith.constant 0.000000e+00 : f32
    %278 = vector.broadcast %cst_91 : f32 to vector<1x16xf32>
    %279 = vector.extract_strided_slice %241 {offsets = [0, 0], sizes = [63, 16], strides = [1, 1]} : vector<64x16xf32> to vector<63x16xf32>
    %280 = tpu.concatenate %278, %279 in 0 : vector<1x16xf32>, vector<63x16xf32> -> vector<64x16xf32>
    %c0_i32_92 = arith.constant 0 : i32
    %281 = vector.broadcast %c0_i32_92 : i32 to vector<64x1xi32>
    %282 = arith.cmpi eq, %16, %281 : vector<64x1xi32>
    %cst_93 = arith.constant 0.000000e+00 : f32
    %283 = vector.shape_cast %282 : vector<64x1xi1> to vector<64x1xi1>
    %284 = vector.broadcast %283 : vector<64x1xi1> to vector<64x16xi1>
    %285 = vector.broadcast %cst_93 : f32 to vector<64x16xf32>
    %286 = arith.select %284, %285, %280 : vector<64x16xi1>, vector<64x16xf32>
    %287 = vector.extract_strided_slice %242 {offsets = [3, 0], sizes = [1, 16], strides = [1, 1]} : vector<9x16xf32> to vector<1x16xf32>
    %288 = vector.broadcast %287 : vector<1x16xf32> to vector<64x16xf32>
    %289 = arith.mulf %286, %288 : vector<64x16xf32>
    %290 = arith.addf %277, %289 : vector<64x16xf32>
    %291 = vector.extract_strided_slice %242 {offsets = [4, 0], sizes = [1, 16], strides = [1, 1]} : vector<9x16xf32> to vector<1x16xf32>
    %292 = vector.broadcast %291 : vector<1x16xf32> to vector<64x16xf32>
    %293 = arith.mulf %241, %292 : vector<64x16xf32>
    %294 = arith.addf %290, %293 : vector<64x16xf32>
    %295 = vector.extract_strided_slice %241 {offsets = [1, 0], sizes = [63, 16], strides = [1, 1]} : vector<64x16xf32> to vector<63x16xf32>
    %cst_94 = arith.constant 0.000000e+00 : f32
    %296 = vector.broadcast %cst_94 : f32 to vector<1x16xf32>
    %297 = tpu.concatenate %295, %296 in 0 : vector<63x16xf32>, vector<1x16xf32> -> vector<64x16xf32>
    %c7_i32_95 = arith.constant 7 : i32
    %298 = vector.broadcast %c7_i32_95 : i32 to vector<64x1xi32>
    %299 = arith.cmpi eq, %16, %298 : vector<64x1xi32>
    %cst_96 = arith.constant 0.000000e+00 : f32
    %300 = vector.shape_cast %299 : vector<64x1xi1> to vector<64x1xi1>
    %301 = vector.broadcast %300 : vector<64x1xi1> to vector<64x16xi1>
    %302 = vector.broadcast %cst_96 : f32 to vector<64x16xf32>
    %303 = arith.select %301, %302, %297 : vector<64x16xi1>, vector<64x16xf32>
    %304 = vector.extract_strided_slice %242 {offsets = [5, 0], sizes = [1, 16], strides = [1, 1]} : vector<9x16xf32> to vector<1x16xf32>
    %305 = vector.broadcast %304 : vector<1x16xf32> to vector<64x16xf32>
    %306 = arith.mulf %303, %305 : vector<64x16xf32>
    %307 = arith.addf %294, %306 : vector<64x16xf32>
    %308 = vector.extract_strided_slice %241 {offsets = [7, 0], sizes = [57, 16], strides = [1, 1]} : vector<64x16xf32> to vector<57x16xf32>
    %cst_97 = arith.constant 0.000000e+00 : f32
    %309 = vector.broadcast %cst_97 : f32 to vector<7x16xf32>
    %310 = tpu.concatenate %308, %309 in 0 : vector<57x16xf32>, vector<7x16xf32> -> vector<64x16xf32>
    %c0_i32_98 = arith.constant 0 : i32
    %311 = vector.broadcast %c0_i32_98 : i32 to vector<64x1xi32>
    %312 = arith.cmpi eq, %16, %311 : vector<64x1xi32>
    %cst_99 = arith.constant 0.000000e+00 : f32
    %313 = vector.shape_cast %312 : vector<64x1xi1> to vector<64x1xi1>
    %314 = vector.broadcast %313 : vector<64x1xi1> to vector<64x16xi1>
    %315 = vector.broadcast %cst_99 : f32 to vector<64x16xf32>
    %316 = arith.select %314, %315, %310 : vector<64x16xi1>, vector<64x16xf32>
    %317 = vector.extract_strided_slice %242 {offsets = [6, 0], sizes = [1, 16], strides = [1, 1]} : vector<9x16xf32> to vector<1x16xf32>
    %318 = vector.broadcast %317 : vector<1x16xf32> to vector<64x16xf32>
    %319 = arith.mulf %316, %318 : vector<64x16xf32>
    %320 = arith.addf %307, %319 : vector<64x16xf32>
    %321 = vector.extract_strided_slice %241 {offsets = [8, 0], sizes = [56, 16], strides = [1, 1]} : vector<64x16xf32> to vector<56x16xf32>
    %cst_100 = arith.constant 0.000000e+00 : f32
    %322 = vector.broadcast %cst_100 : f32 to vector<8x16xf32>
    %323 = tpu.concatenate %321, %322 in 0 : vector<56x16xf32>, vector<8x16xf32> -> vector<64x16xf32>
    %324 = vector.extract_strided_slice %242 {offsets = [7, 0], sizes = [1, 16], strides = [1, 1]} : vector<9x16xf32> to vector<1x16xf32>
    %325 = vector.broadcast %324 : vector<1x16xf32> to vector<64x16xf32>
    %326 = arith.mulf %323, %325 : vector<64x16xf32>
    %327 = arith.addf %320, %326 : vector<64x16xf32>
    %328 = vector.extract_strided_slice %241 {offsets = [9, 0], sizes = [55, 16], strides = [1, 1]} : vector<64x16xf32> to vector<55x16xf32>
    %cst_101 = arith.constant 0.000000e+00 : f32
    %329 = vector.broadcast %cst_101 : f32 to vector<9x16xf32>
    %330 = tpu.concatenate %328, %329 in 0 : vector<55x16xf32>, vector<9x16xf32> -> vector<64x16xf32>
    %c7_i32_102 = arith.constant 7 : i32
    %331 = vector.broadcast %c7_i32_102 : i32 to vector<64x1xi32>
    %332 = arith.cmpi eq, %16, %331 : vector<64x1xi32>
    %cst_103 = arith.constant 0.000000e+00 : f32
    %333 = vector.shape_cast %332 : vector<64x1xi1> to vector<64x1xi1>
    %334 = vector.broadcast %333 : vector<64x1xi1> to vector<64x16xi1>
    %335 = vector.broadcast %cst_103 : f32 to vector<64x16xf32>
    %336 = arith.select %334, %335, %330 : vector<64x16xi1>, vector<64x16xf32>
    %337 = vector.extract_strided_slice %242 {offsets = [8, 0], sizes = [1, 16], strides = [1, 1]} : vector<9x16xf32> to vector<1x16xf32>
    %338 = vector.broadcast %337 : vector<1x16xf32> to vector<64x16xf32>
    %339 = arith.mulf %336, %338 : vector<64x16xf32>
    %340 = arith.addf %327, %339 : vector<64x16xf32>
    %341 = vector.broadcast %243 : vector<1x16xf32> to vector<64x16xf32>
    %342 = arith.addf %340, %341 : vector<64x16xf32>
    %cst_104 = arith.constant 3.000000e+00 : f32
    %343 = vector.broadcast %cst_104 : f32 to vector<64x16xf32>
    %344 = arith.addf %342, %343 : vector<64x16xf32>
    %cst_105 = arith.constant 0.000000e+00 : f32
    %cst_106 = arith.constant 6.000000e+00 : f32
    %345 = vector.broadcast %cst_105 : f32 to vector<64x16xf32>
    %346 = arith.maximumf %345, %344 : vector<64x16xf32>
    %347 = vector.broadcast %cst_106 : f32 to vector<64x16xf32>
    %348 = arith.minimumf %347, %346 : vector<64x16xf32>
    %349 = arith.mulf %342, %348 : vector<64x16xf32>
    %cst_107 = arith.constant 0.166666672 : f32
    %350 = vector.broadcast %cst_107 : f32 to vector<64x16xf32>
    %351 = arith.mulf %349, %350 : vector<64x16xf32>
    %c0_108 = arith.constant 0 : index
    %c0_109 = arith.constant 0 : index
    %352 = vector.load %arg18[%c0_108, %c0_109] : memref<16x16xf32, #tpu.memory_space<vmem>>, vector<16x16xf32>
    %cst_110 = arith.constant dense<0.000000e+00> : vector<64x16xf32>
    %353 = tpu.matmul %351, %352, %cst_110 {dimension_numbers = #tpu.dot_dimension_numbers<[1], [0], [0], [1], [0, 0, 1, 1], [], []>} : vector<64x16xf32>, vector<16x16xf32>, vector<64x16xf32> -> vector<64x16xf32>
    %c0_111 = arith.constant 0 : index
    %c0_112 = arith.constant 0 : index
    %354 = vector.load %arg19[%c0_111, %c0_112] : memref<1x16xf32, #tpu.memory_space<vmem>>, vector<1x16xf32>
    %355 = vector.broadcast %354 : vector<1x16xf32> to vector<64x16xf32>
    %356 = arith.addf %353, %355 : vector<64x16xf32>
    %cst_113 = arith.constant 3.000000e+00 : f32
    %357 = vector.broadcast %cst_113 : f32 to vector<64x16xf32>
    %358 = arith.addf %356, %357 : vector<64x16xf32>
    %cst_114 = arith.constant 0.000000e+00 : f32
    %cst_115 = arith.constant 6.000000e+00 : f32
    %359 = vector.broadcast %cst_114 : f32 to vector<64x16xf32>
    %360 = arith.maximumf %359, %358 : vector<64x16xf32>
    %361 = vector.broadcast %cst_115 : f32 to vector<64x16xf32>
    %362 = arith.minimumf %361, %360 : vector<64x16xf32>
    %363 = arith.mulf %356, %362 : vector<64x16xf32>
    %cst_116 = arith.constant 0.166666672 : f32
    %364 = vector.broadcast %cst_116 : f32 to vector<64x16xf32>
    %365 = arith.mulf %363, %364 : vector<64x16xf32>
    %c0_117 = arith.constant 0 : index
    %c0_118 = arith.constant 0 : index
    %c0_119 = arith.constant 0 : index
    %366 = vector.load %arg20[%c0_117, %c0_118, %c0_119] : memref<1x64x16xf32, #tpu.memory_space<vmem>>, vector<1x64x16xf32>
    %367 = vector.shape_cast %366 : vector<1x64x16xf32> to vector<64x16xf32>
    %368 = vector.shape_cast %365 : vector<64x16xf32> to vector<1x64x16xf32>
    tpu.vector_store %arg20[%c0_117, %c0_118, %c0_119], %368 {strides = array<i32>} : memref<1x64x16xf32, #tpu.memory_space<vmem>>, vector<1x64x16xf32>,
    return
  }
  func.func @transform_0(%arg0: i32) -> (i32, i32, i32) {
    %c0_i32 = arith.constant 0 : i32
    %c0_i32_0 = arith.constant 0 : i32
    %c0_i32_1 = arith.constant 0 : i32
    return %arg0, %c0_i32, %c0_i32_0 : i32, i32, i32
  }
  func.func @transform_1(%arg0: i32) -> (i32, i32) {
    %c0_i32 = arith.constant 0 : i32
    %c0_i32_0 = arith.constant 0 : i32
    %c0_i32_1 = arith.constant 0 : i32
    return %c0_i32, %c0_i32_0 : i32, i32
  }
  func.func @transform_2(%arg0: i32) -> (i32, i32) {
    %c0_i32 = arith.constant 0 : i32
    %c0_i32_0 = arith.constant 0 : i32
    %c0_i32_1 = arith.constant 0 : i32
    return %c0_i32, %c0_i32_0 : i32, i32
  }
  func.func @transform_3(%arg0: i32) -> (i32, i32) {
    %c0_i32 = arith.constant 0 : i32
    %c0_i32_0 = arith.constant 0 : i32
    %c0_i32_1 = arith.constant 0 : i32
    return %c0_i32, %c0_i32_0 : i32, i32
  }
  func.func @transform_4(%arg0: i32) -> (i32, i32) {
    %c0_i32 = arith.constant 0 : i32
    %c0_i32_0 = arith.constant 0 : i32
    %c0_i32_1 = arith.constant 0 : i32
    return %c0_i32, %c0_i32_0 : i32, i32
  }
  func.func @transform_5(%arg0: i32) -> (i32, i32) {
    %c0_i32 = arith.constant 0 : i32
    %c0_i32_0 = arith.constant 0 : i32
    %c0_i32_1 = arith.constant 0 : i32
    return %c0_i32, %c0_i32_0 : i32, i32
  }
  func.func @transform_6(%arg0: i32) -> (i32, i32) {
    %c0_i32 = arith.constant 0 : i32
    %c0_i32_0 = arith.constant 0 : i32
    %c0_i32_1 = arith.constant 0 : i32
    return %c0_i32, %c0_i32_0 : i32, i32
  }
  func.func @transform_7(%arg0: i32) -> (i32, i32) {
    %c0_i32 = arith.constant 0 : i32
    %c0_i32_0 = arith.constant 0 : i32
    %c0_i32_1 = arith.constant 0 : i32
    return %c0_i32, %c0_i32_0 : i32, i32
  }
  func.func @transform_8(%arg0: i32) -> (i32, i32) {
    %c0_i32 = arith.constant 0 : i32
    %c0_i32_0 = arith.constant 0 : i32
    %c0_i32_1 = arith.constant 0 : i32
    return %c0_i32, %c0_i32_0 : i32, i32
  }
  func.func @transform_9(%arg0: i32) -> (i32, i32) {
    %c0_i32 = arith.constant 0 : i32
    %c0_i32_0 = arith.constant 0 : i32
    %c0_i32_1 = arith.constant 0 : i32
    return %c0_i32, %c0_i32_0 : i32, i32
  }
  func.func @transform_10(%arg0: i32) -> (i32, i32) {
    %c0_i32 = arith.constant 0 : i32
    %c0_i32_0 = arith.constant 0 : i32
    %c0_i32_1 = arith.constant 0 : i32
    return %c0_i32, %c0_i32_0 : i32, i32
  }
  func.func @transform_11(%arg0: i32) -> (i32, i32) {
    %c0_i32 = arith.constant 0 : i32
    %c0_i32_0 = arith.constant 0 : i32
    %c0_i32_1 = arith.constant 0 : i32
    return %c0_i32, %c0_i32_0 : i32, i32
  }
  func.func @transform_12(%arg0: i32) -> (i32, i32) {
    %c0_i32 = arith.constant 0 : i32
    %c0_i32_0 = arith.constant 0 : i32
    %c0_i32_1 = arith.constant 0 : i32
    return %c0_i32, %c0_i32_0 : i32, i32
  }
  func.func @transform_13(%arg0: i32) -> (i32, i32) {
    %c0_i32 = arith.constant 0 : i32
    %c0_i32_0 = arith.constant 0 : i32
    %c0_i32_1 = arith.constant 0 : i32
    return %c0_i32, %c0_i32_0 : i32, i32
  }
  func.func @transform_14(%arg0: i32) -> (i32, i32) {
    %c0_i32 = arith.constant 0 : i32
    %c0_i32_0 = arith.constant 0 : i32
    %c0_i32_1 = arith.constant 0 : i32
    return %c0_i32, %c0_i32_0 : i32, i32
  }
  func.func @transform_15(%arg0: i32) -> (i32, i32) {
    %c0_i32 = arith.constant 0 : i32
    %c0_i32_0 = arith.constant 0 : i32
    %c0_i32_1 = arith.constant 0 : i32
    return %c0_i32, %c0_i32_0 : i32, i32
  }
  func.func @transform_16(%arg0: i32) -> (i32, i32) {
    %c0_i32 = arith.constant 0 : i32
    %c0_i32_0 = arith.constant 0 : i32
    %c0_i32_1 = arith.constant 0 : i32
    return %c0_i32, %c0_i32_0 : i32, i32
  }
  func.func @transform_17(%arg0: i32) -> (i32, i32) {
    %c0_i32 = arith.constant 0 : i32
    %c0_i32_0 = arith.constant 0 : i32
    %c0_i32_1 = arith.constant 0 : i32
    return %c0_i32, %c0_i32_0 : i32, i32
  }
  func.func @transform_18(%arg0: i32) -> (i32, i32) {
    %c0_i32 = arith.constant 0 : i32
    %c0_i32_0 = arith.constant 0 : i32
    %c0_i32_1 = arith.constant 0 : i32
    return %c0_i32, %c0_i32_0 : i32, i32
  }
  func.func @transform_19(%arg0: i32) -> (i32, i32, i32) {
    %c0_i32 = arith.constant 0 : i32
    %c0_i32_0 = arith.constant 0 : i32
    %c0_i32_1 = arith.constant 0 : i32
    return %arg0, %c0_i32, %c0_i32_0 : i32, i32, i32
  }
}

</mosaic_0001>

<bundles_post_ra>
// kernel: rep_es_block2.1
= control target key start
LH: loop header
LB: loop body
LE: loop exit
PB: predicated region body
PF: predicated region fallthrough
CT: control target
= control target key end

     0   :  { %s4437_s0 = inlined_call_operand.vmem [shape: f32[2,256,8], index: 0, kind: input, shape index: {}]   ;;  %s4438_s1 = inlined_call_operand.vmem [shape: f32[9,8], index: 1, kind: input, shape index: {}]   ;;  %s4439_s2 = inlined_call_operand.vmem [shape: f32[1,8], index: 2, kind: input, shape index: {}]   ;;  %s4440_s3 = inlined_call_operand.vmem [shape: f32[8,8], index: 3, kind: input, shape index: {}]   ;;  %s4441_s4 = inlined_call_operand.vmem [shape: f32[1,8], index: 4, kind: input, shape index: {}]   ;;  %s4442_s5 = inlined_call_operand.vmem [shape: f32[8,8], index: 5, kind: input, shape index: {}]   ;;  %s4443_s6 = inlined_call_operand.vmem [shape: f32[1,8], index: 6, kind: input, shape index: {}]   ;;  %s4444_s7 = inlined_call_operand.vmem [shape: f32[9,8], index: 7, kind: input, shape index: {}]   ;;  %s4445_s8 = inlined_call_operand.vmem [shape: f32[1,8], index: 8, kind: input, shape index: {}]   ;;  %s4446_s9 = inlined_call_operand.vmem [shape: f32[8,2], index: 9, kind: input, shape index: {}]   ;;  %s4447_s10 = inlined_call_operand.vmem [shape: f32[1,2], index: 10, kind: input, shape index: {}]   ;;  %s4448_s11 = inlined_call_operand.vmem [shape: f32[2,8], index: 11, kind: input, shape index: {}]   ;;  %s4449_s12 = inlined_call_operand.vmem [shape: f32[1,8], index: 12, kind: input, shape index: {}]   ;;  %s4450_s13 = inlined_call_operand.vmem [shape: f32[8,8], index: 13, kind: input, shape index: {}]   ;;  %s4451_s14 = inlined_call_operand.vmem [shape: f32[1,8], index: 14, kind: input, shape index: {}]   ;;  %s4452_s15 = inlined_call_operand.vmem [shape: f32[9,16], index: 15, kind: input, shape index: {}]   ;;  %s4453_s16 = inlined_call_operand.vmem [shape: f32[1,16], index: 16, kind: input, shape index: {}]   ;;  %s4454_s17 = inlined_call_operand.vmem [shape: f32[16,16], index: 17, kind: input, shape index: {}]   ;;  %s4455_s18 = inlined_call_operand.vmem [shape: f32[1,16], index: 18, kind: input, shape index: {}]   ;;  %s4456_s19 = inlined_call_operand.hbm [shape: f32[2,64,16], index: 19, kind: output, shape index: {}]  }
   0x1   :  { %4498 = sst [smem:[#allocation55_spill]] %s4437_s0 }
   0x2   :  { %4499 = sst [smem:[#allocation56_spill]] %s4438_s1 }
   0x3   :  { %4500 = sst [smem:[#allocation57_spill]] %s4439_s2 }
   0x4   :  { %4501 = sst [smem:[#allocation58_spill]] %s4440_s3 }
   0x5   :  { %4502 = sst [smem:[#allocation59_spill]] %s4441_s4 }
   0x6   :  { %4503 = sst [smem:[#allocation60_spill]] %s4442_s5 }
   0x7   :  { %4504 = sst [smem:[#allocation61_spill]] %s4443_s6 }
   0x8   :  { %4505 = sst [smem:[#allocation62_spill]] %s4444_s7 }
   0x9   :  { %24 = vsyncpa [#allocation3], 0 }
   0xa   :  { %26 = vsyncpa [#allocation3 + $0x1], 0  ;;  %s2815_s0 = smov 0   ;;  %s2817_s30 = smov 0  }
   0xb   :  { %s2819_s20 = smov 0   ;;  %s2821_s21 = smov 0  }
   0xc LB: > { %4506 = sst [smem:[#allocation5_spill]] %s2707_s20  ;;  %s2836_s1 = sadd.s32 4294967295, %s2711_s21   ;;  %s2711_s21 = sphi %s2821_s21, %s4666_s21   ;;  %s2707_s20 = sphi %s2819_s20, %s4663_s20   ;;  %s2703_s30 = sphi %s2817_s30, %s4665_s30   ;;  %s2699_s0 = sphi %s2815_s0, %s4664_s0  }
   0xd   : > { %s2517_s22 = sadd.s32 4294967294, %s2711_s21   ;;  %s2840_s2 = sadd.s32 1, %s2711_s21  }
   0xe   : > { %s443_s23 = sadd.s32 1, %s2707_s20  ;;  %s440_s24 = ssub.s32 %s2711_s21, %s2840_s2 }
   0xf   : > { %p453_p0 = scmp.ne.s32.totalorder %s2707_s20, %s2703_s30  ;;  %p441_p1 = scmp.eq.s32.totalorder %s440_s24, 0 }
  0x10   : > { %p454_p2 = scmp.eq.s32.totalorder %s2836_s1, 1  ;;  %p459_p3 = scmp.ne.s32.totalorder %s2703_s30, %s2699_s0 }
  0x11   : > { %p460_p4 = scmp.eq.s32.totalorder %s2517_s22, 1  ;;  %p2520_p7 = scmp.ge.s32.totalorder %s2711_s21, 1 }
  0x12   : > { %s2851_s25 = scalar_select %p441_p1, %s2707_s20, %s443_s23  }
  0x13   : > { %p2853_p5 = por %p454_p2, %p453_p0  ;;  %p2857_p6 = por %p460_p4, %p459_p3 }
  0x14   : > { %4507 = sst [smem:[#allocation6_spill]] %s2851_s25  ;;  %p540_p8 = scmp.lt.s32.totalorder %s2711_s21, 3 }
  0x16   : > { %p541_p9 = pnand %p2520_p7, %p540_p8 }
  0x18   : > { %544 = sbr.rel (%p541_p9) target bundleno = 1146 (0x47a), region = 96 }
  0x1d   : > { %s4510_s5 = sld [smem:[#allocation60_spill]]  ;;  %p596_p10 = scmp.lt.s32.totalorder %s2836_s1, 1  ;;  %vm1022_vm0 = vcmask 64512   ;;  %v601_v31 = vlaneseq  ;;  %vm748_vm1 = vcmask 1040384   ;;  %v4525_v55 = vmov 0 }
  0x1e   : > { %s4511_s24 = sld [smem:[#allocation56_spill]]  ;;  %v4528_v62 = vmov 0  ;;  %vm1794_vm10 = vcmask 1041408   ;;  %vm1790_vm11 = vcmask 15360   ;;  %s4495_s27 = smov 8   ;;  %vm2054_vm12 = vcmask 1046528  }
  0x1f   : > { %s597_s29 = scalar_select %p596_p10, %s2836_s1, 1  ;;  %v2972_v34 = vshrl.u32 %v601_v31, 7 }
  0x20   : > { %s4540_s23 = sld [smem:[#allocation58_spill]] }
  0x21   : > { %s2588_s25 = sshll.u32 %s597_s29, 8  ;;  %4519 = vst [vmem:[#allocation13_spill] sm:$0xff] %v2972_v34  ;;  %v2978_v36 = vadd.s32 56, %v2972_v34  ;;  %v2984_v38 = vadd.s32 48, %v2972_v34  ;;  %s4566_s6 = sld [smem:[#allocation61_spill]] }
  0x22   : > { %s4572_s7 = sld [smem:[#allocation62_spill]]  ;;  %s4496_s29 = sand.u32 1, %s2703_s30  }
  0x23   : > { %v2866_v0 = vld [vmem:[%s4510_s5] sm:$0xff]  ;;  %s4512_s5 = sld [smem:[#allocation55_spill]]  ;;  %4520 = vst [vmem:[#allocation14_spill] sm:$0xff] %v2978_v36  ;;  %v4461_v47 = vand.u32 7, %v2984_v38  ;;  %v4460_v51 = vand.u32 7, %v2978_v36  ;;  %v4534_v36 = vmov 0 }
  0x24   : > { %1228 = vmatpush.msra.mxu0 %v2866_v0  ;;  %2591 = vmatpush.msra.mxu1 %v2866_v0  ;;  %v2875_v1 = vld [vmem:[%s4511_s24] sm:$0xff]  ;;  %4521 = vst [vmem:[#allocation15_spill] sm:$0xff] %v2984_v38  ;;  %s4623_s4 = sld [smem:[#allocation59_spill]] }
  0x25   : > { %v2878_v2 = vperm.slane %v2875_v1, 4  ;;  %v2890_v5 = vperm.slane %v2875_v1, 1  ;;  %v2893_v6 = vperm.slane %v2875_v1, 7  ;;  %v3004_v48 = vperm.slane %v2875_v1, 0 }
  0x26   : > { %v3007_v49 = vperm.slane %v2875_v1, 2  ;;  %v3023_v54 = vperm.slane %v2875_v1, 3  ;;  %vm3027_vm2 = vcmp.eq.s32.totalorder %v4461_v47, 0  ;;  %vm3044_vm3 = vcmp.eq.s32.totalorder %v4460_v51, 0 }
  0x27   : > { %v4526_v55 = vsel %vm3027_vm2, 4294967295, %v4525_v55  ;;  %v4529_v62 = vsel %vm3044_vm3, 4294967295, %v4528_v62  ;;  %v3049_v63 = vperm.slane %v2875_v1, 5 }
  0x28   : > { %4522 = vst [vmem:[#allocation16_spill] sm:$0xff] %v3007_v49 }
  0x29   : > { %s2883_s20 = scalar_lea.vmem %s4512_s5, %s2588_s25  ;;  %4527 = vst [vmem:[#allocation19_spill] sm:$0xff] %v4526_v55  ;;  %s4541_s5 = sld [smem:[#allocation57_spill]] }
  0x2a   : > { %v706_v3 = vld [vmem:[%s2883_s20] sm:$0xff]  ;;  %v2887_v4 = vld [vmem:[%s2883_s20 + $0x78] sm:$0xff]  ;;  %v707_v8 = vld [vmem:[%s2883_s20 + $0x8] sm:$0xff]  ;;  %4530 = vst [vmem:[#allocation20_spill] sm:$0xff] %v4529_v62  ;;  %s2669_s25 = scalar_lea.hbm %s4456_s19, 128 }
  0x2b   : > { %v2896_v7 = vmul.f32 %v2878_v2, %v706_v3  ;;  %2532 = vmatmul.msk.f32.vlgmr.msra.gmra.mxu0 %vm1022_vm0, %v706_v3  ;;  %2547 = vmatmul.msk.f32.vlgmr.msra.gmra.mxu1 %vm1022_vm0, %v2887_v4  ;;  %v722_v9 = vld [vmem:[%s2883_s20 + $0x80] sm:$0xff]  ;;  %v2904_v10 = vmul.f32 %v2878_v2, %v707_v8  ;;  %v708_v13 = vld [vmem:[%s2883_s20 + $0x10] sm:$0xff]  ;;  %v723_v14 = vld [vmem:[%s2883_s20 + $0x88] sm:$0xff]  ;;  %v873_v42 = vrot.slane %v2887_v4, 7  ;;  %4531 = vst [vmem:[#allocation21_spill] sm:$0xff] %v3049_v63 }
  0x2c   : > { %v2907_v11 = vmul.f32 %v2890_v5, %v722_v9  ;;  %v2910_v12 = vmul.f32 %v2893_v6, %v722_v9  ;;  %v2915_v15 = vmul.f32 %v2878_v2, %v708_v13  ;;  %v2918_v16 = vmul.f32 %v2890_v5, %v723_v14  ;;  %v709_v18 = vld [vmem:[%s2883_s20 + $0x18] sm:$0xff]  ;;  %v724_v19 = vld [vmem:[%s2883_s20 + $0x90] sm:$0xff]  ;;  %v2935_v23 = vld [vmem:[%s2883_s20 + $0x20] sm:$0xff] }
  0x2d   : > { %v2921_v17 = vmul.f32 %v2893_v6, %v723_v14  ;;  %v2926_v20 = vmul.f32 %v2878_v2, %v709_v18  ;;  %v2929_v21 = vmul.f32 %v2890_v5, %v724_v19  ;;  %v2932_v22 = vmul.f32 %v2893_v6, %v724_v19  ;;  %v2938_v24 = vld [vmem:[%s2883_s20 + $0x98] sm:$0xff]  ;;  %v2953_v28 = vld [vmem:[%s2883_s20 + $0x28] sm:$0xff]  ;;  %v2960_v30 = vld [vmem:[%s2883_s20 + $0xa0] sm:$0xff] }
  0x2e   : > { %4513 = vst [vmem:[#allocation7_spill] sm:$0xff] %v2910_v12  ;;  %v2942_v25 = vmul.f32 %v2878_v2, %v2935_v23  ;;  %v2946_v26 = vmul.f32 %v2890_v5, %v2938_v24  ;;  %v2950_v27 = vmul.f32 %v2893_v6, %v2938_v24  ;;  %v2957_v29 = vmul.f32 %v2878_v2, %v2953_v28  ;;  %v2975_v35 = vld [vmem:[%s2883_s20 + $0x70] sm:$0xff]  ;;  %v2987_v39 = vld [vmem:[%s2883_s20 + $0x68] sm:$0xff]  ;;  %v2990_v40 = vld [vmem:[%s2883_s20 + $0xe0] sm:$0xff] }
  0x2f   : > { %4514 = vst [vmem:[#allocation8_spill] sm:$0xff] %v2921_v17  ;;  %v2966_v32 = vmul.f32 %v2890_v5, %v2960_v30  ;;  %v2970_v33 = vmul.f32 %v2893_v6, %v2960_v30  ;;  %v871_v37 = vrot.slane %v2975_v35, 7  ;;  %v2993_v41 = vld [vmem:[%s2883_s20 + $0xe8] sm:$0xff]  ;;  %v4462_v44 = vrot.slane %v2990_v40, 7 }
  0x30   : > { %4515 = vst [vmem:[#allocation9_spill] sm:$0xff] %v2932_v22  ;;  %v2997_v43 = vld [vmem:[%s2883_s20 + $0xa8] sm:$0xff]  ;;  %v758_v45 = vrot.slane %v2993_v41, 7  ;;  %v4463_v46 = vrot.slane %v2987_v39, 7  ;;  %v842_v61 = vmul.f32 %v3007_v49, %v2993_v41 }
  0x31   : > { %4516 = vst [vmem:[#allocation10_spill] sm:$0xff] %v2950_v27  ;;  %v3011_v50 = vmul.f32 %v2893_v6, %v2997_v43  ;;  %v825_v56 = vmul.f32 %v2890_v5, %v2997_v43  ;;  %v874_v57 = vsel %vm748_vm1, %v871_v37, %v873_v42  ;;  %v3066_v42 = vperm.slane %v2875_v1, 6 }
  0x32   : > { %4517 = vst [vmem:[#allocation11_spill] sm:$0xff] %v2957_v29  ;;  %v3017_v52 = vsel %vm748_vm1, %v4462_v44, %v758_v45  ;;  %v872_v53 = vsel %vm748_vm1, %v4463_v46, %v871_v37  ;;  %v891_v3 = vsel %vm3044_vm3, 0.0, %v874_v57  ;;  %v3070_v57 = vld [vmem:[%s2883_s20 + $0xb0] sm:$0xff]  ;;  %v933_v1 = vmul.f32 %v3049_v63, %v2975_v35 }
  0x33   : > { %2533 = vmatmul.msk.f32.gmra.mxu0 %vm1022_vm0, %v707_v8  ;;  %2548 = vmatmul.msk.f32.gmra.mxu1 %vm1022_vm0, %v722_v9  ;;  %4518 = vst [vmem:[#allocation12_spill] sm:$0xff] %v2970_v33  ;;  %v799_v58 = vsel %vm3027_vm2, 0.0, %v3017_v52  ;;  %v890_v59 = vsel %vm3027_vm2, 0.0, %v872_v53  ;;  %v3056_v8 = vld [vmem:[%s2883_s20 + $0x30] sm:$0xff]  ;;  %v826_v51 = vmul.f32 %v2890_v5, %v3070_v57 }
  0x34   : > { %4523 = vst [vmem:[#allocation17_spill] sm:$0xff] %v3011_v50  ;;  %v808_v60 = vmul.f32 %v3004_v48, %v799_v58  ;;  %v916_v31 = vmul.f32 %v2878_v2, %v3056_v8  ;;  %v819_v58 = vmul.f32 0.0, %v2890_v5  ;;  %v4533_v5 = vand.u32 7, %v2972_v34 }
  0x35   : > { %4524 = vst [vmem:[#allocation18_spill] sm:$0xff] %v3017_v52 }
  0x36   : > { %v833_v9 = vadd.f32 %v825_v56, %v808_v60  ;;  %4532 = vst [vmem:[#allocation22_spill] sm:$0xff] %v3066_v42  ;;  %v802_v56 = vmul.f32 0.0, %v3004_v48  ;;  %vm3093_vm4 = vcmp.eq.s32.totalorder %v4533_v5, 0 }
  0x37   : > { %v4535_v36 = vsel %vm3093_vm4, 4294967295, %v4534_v36 }
  0x38   : > { %v827_v46 = vadd.f32 %v819_v58, %v802_v56  ;;  %4536 = vst [vmem:[#allocation23_spill] sm:$0xff] %v4535_v36  ;;  %v900_v56 = vmul.f32 %v3023_v54, %v891_v3  ;;  %v3103_v58 = vld [vmem:[%s2883_s20 + $0x38] sm:$0xff]  ;;  %v3118_v3 = vadd.s32 8, %v2972_v34 }
  0x3a   : > { %4537 = vst [vmem:[#allocation24_spill] sm:$0xff] %v3118_v3 }
  0x3b   : > { %2534 = vmatmul.msk.f32.gmra.mxu0 %vm1022_vm0, %v708_v13  ;;  %2549 = vmatmul.msk.f32.gmra.mxu1 %vm1022_vm0, %v723_v14  ;;  %v899_v13 = vmul.f32 %v3023_v54, %v890_v59  ;;  %v3060_v14 = vld [vmem:[%s2883_s20 + $0xf0] sm:$0xff]  ;;  %v836_v59 = vmul.f32 0.0, %v3007_v49 }
  0x3c   : > { %v760_v37 = vrot.slane %v3060_v14, 7 }
  0x3e   : > { %v761_v60 = vsel %vm748_vm1, %v758_v45, %v760_v37  ;;  %v843_v45 = vmul.f32 %v3007_v49, %v3060_v14 }
  0x3f   : > { %v800_v47 = vsel %vm3044_vm3, 0.0, %v761_v60  ;;  %v953_v44 = vsel %vm3027_vm2, 0.0, %v761_v60  ;;  %v844_v60 = vadd.f32 %v836_v59, %v827_v46  ;;  %v3115_v59 = vld [vmem:[%s2883_s20 + $0xf8] sm:$0xff] }
  0x40   : > { %v809_v53 = vmul.f32 %v3004_v48, %v800_v47  ;;  %v962_v38 = vmul.f32 %v3066_v42, %v953_v44  ;;  %v917_v44 = vmul.f32 %v2878_v2, %v3103_v58  ;;  %v934_v2 = vmul.f32 %v3049_v63, %v2887_v4 }
  0x42   : > { %v834_v50 = vadd.f32 %v826_v51, %v809_v53  ;;  %v3121_v51 = vld [vmem:[%s2883_s20 + $0x48] sm:$0xff] }
  0x43   : > { %2535 = vmatmul.msk.f32.gmra.mxu0 %vm1022_vm0, %v709_v18  ;;  %2550 = vmatmul.msk.f32.gmra.mxu1 %vm1022_vm0, %v724_v19  ;;  %v850_v18 = vadd.f32 %v842_v61, %v833_v9  ;;  %v3073_v19 = vld [vmem:[%s2883_s20 + $0x40] sm:$0xff] }
  0x44   : > { %v860_v61 = vrot.slane %v3073_v19, 7  ;;  %v851_v53 = vadd.f32 %v843_v45, %v834_v50 }
  0x45   : > { %v907_v9 = vadd.f32 %v899_v13, %v850_v18 }
  0x46   : > { %v883_v13 = vsel %vm748_vm1, 0.0, %v860_v61 }
  0x47   : > { %v924_v18 = vadd.f32 %v916_v31, %v907_v9  ;;  %v884_v47 = vsel %vm3093_vm4, 0.0, %v883_v13  ;;  %v927_v31 = vmul.f32 %v3049_v63, %v3073_v19  ;;  %v979_v13 = vmul.f32 %v2893_v6, %v3070_v57 }
  0x48   : > { %v893_v5 = vmul.f32 %v3023_v54, %v884_v47  ;;  %v908_v47 = vadd.f32 %v900_v56, %v851_v53 }
  0x49   : > { %v941_v46 = vadd.f32 %v933_v1, %v924_v18  ;;  %v4466_v18 = vand.u32 7, %v3118_v3 }
  0x4a   : > { %v901_v9 = vadd.f32 %v893_v5, %v844_v60  ;;  %v925_v5 = vadd.f32 %v917_v44, %v908_v47  ;;  %v1017_v44 = vld [vmem:[%s4540_s23] sm:$0xff]  ;;  %s2589_s23 = sshll.u32 %s2836_s1, 6  ;;  %s4660_s1 = sand.u32 1, %s2703_s30  }
  0x4b   : > { %2536 = vmatmul.msk.f32.gmra.mxu0 %vm1022_vm0, %v2935_v23  ;;  %2551 = vmatmul.msk.f32.gmra.mxu1 %vm1022_vm0, %v2938_v24  ;;  %v944_v23 = vrot.slane %v3115_v59, 7  ;;  %v861_v24 = vrot.slane %v3121_v51, 7  ;;  %v970_v1 = vadd.f32 %v962_v38, %v941_v46  ;;  %vm3137_vm5 = vcmp.eq.s32.totalorder %v4466_v18, 0  ;;  %v3207_v18 = vld [vmem:[%s2883_s20 + $0xc8] sm:$0xff] }
  0x4c   : > { %v918_v29 = vadd.f32 %v2896_v7, %v901_v9  ;;  %v942_v46 = vadd.f32 %v934_v2, %v925_v5  ;;  %v3153_v9 = vld [vmem:[%s2883_s20 + $0xc0] sm:$0xff]  ;;  %v3171_v2 = vld [vmem:[%s2883_s20 + $0x50] sm:$0xff]  ;;  %2590 = vmatpush.msra.mxu3 %v1017_v44  ;;  %1062 = vmatpush.msra.mxu2 %v1017_v44 }
  0x4d   : > { %v945_v50 = vsel %vm748_vm1, %v760_v37, %v944_v23  ;;  %v862_v45 = vsel %vm748_vm1, %v860_v61, %v861_v24  ;;  %v987_v56 = vadd.f32 %v979_v13, %v970_v1  ;;  %v3149_v61 = vld [vmem:[%s4511_s24 + $0x8] ss:$0 sm:$0xff]  ;;  %v3168_v23 = vld [vmem:[%s4541_s5] ss:$0 sm:$0xff]  ;;  %v3178_v1 = vld [vmem:[%s2883_s20 + $0xb8] sm:$0xff]  ;;  %v837_v44 = vmul.f32 %v3007_v49, %v3153_v9 }
  0x4e   : > { %v954_v60 = vsel %vm3044_vm3, 0.0, %v945_v50  ;;  %v3141_v38 = vadd.f32 %v927_v31, %v918_v29  ;;  %v885_v7 = vsel %vm3137_vm5, 0.0, %v862_v45  ;;  %v749_v29 = vrot.slane %v3153_v9, 7  ;;  %4542 = vst [vmem:[#allocation25_spill] sm:$0xff] %v3168_v23  ;;  %2592 = vmatpush.msrb.mxu3 %v2866_v0 }
  0x4f   : > { %v894_v37 = vmul.f32 %v3023_v54, %v885_v7  ;;  %v963_v53 = vmul.f32 %v3066_v42, %v954_v60  ;;  %v996_v31 = vmul.f32 %v3149_v61, %v3060_v14  ;;  %v980_v45 = vmul.f32 %v2893_v6, %v3178_v1 }
  0x50   : > { %v3181_v13 = vsel %vm748_vm1, 0.0, %v749_v29 }
  0x51   : > { %v1004_v47 = vadd.f32 %v996_v31, %v987_v56  ;;  %v971_v50 = vadd.f32 %v963_v53, %v942_v46  ;;  %v794_v60 = vsel %vm3137_vm5, 0.0, %v3181_v13 }
  0x52   : > { %v803_v7 = vmul.f32 %v3004_v48, %v794_v60 }
  0x53   : > { %2537 = vmatmul.msk.f32.gmra.mxu0 %vm1022_vm0, %v2953_v28  ;;  %2552 = vmatmul.msk.f32.gmra.mxu1 %vm1022_vm0, %v2960_v30  ;;  %v3174_v28 = vadd.s32 16, %v2972_v34  ;;  %v863_v30 = vrot.slane %v3171_v2, 7  ;;  %v1015_v56 = vadd.f32 %v3168_v23, %v1004_v47  ;;  %v988_v31 = vadd.f32 %v980_v45, %v971_v50 }
  0x54   : > { %v828_v46 = vadd.f32 %v2907_v11, %v803_v7  ;;  %v750_v47 = vrot.slane %v3207_v18, 7  ;;  %v3215_v11 = vld [vmem:[%s2883_s20 + $0x58] sm:$0xff]  ;;  %v997_v7 = vmul.f32 %v3149_v61, %v3115_v59  ;;  %v3220_v50 = vadd.s32 24, %v2972_v34 }
  0x55   : > { %4543 = vst [vmem:[#allocation26_spill] sm:$0xff] %v3174_v28  ;;  %v4467_v5 = vand.u32 7, %v3174_v28  ;;  %v864_v0 = vsel %vm748_vm1, %v861_v24, %v863_v30  ;;  %2530 = vmatmul.msk.f32.vlgmr.msra.gmra.mxu3 %vm1022_vm0, %v1015_v56  ;;  %v865_v45 = vrot.slane %v3215_v11, 7  ;;  %v3224_v56 = vadd.s32 40, %v2972_v34 }
  0x56   : > { %v845_v24 = vadd.f32 %v837_v44, %v828_v46  ;;  %4546 = vst [vmem:[#allocation27_spill] sm:$0xff] %v3220_v50  ;;  %v4469_v46 = vand.u32 7, %v3220_v50 }
  0x57   : > { %vm3197_vm6 = vcmp.eq.s32.totalorder %v4467_v5, 0  ;;  %4547 = vst [vmem:[#allocation28_spill] sm:$0xff] %v3224_v56 }
  0x58   : > { %v886_v53 = vsel %vm3197_vm6, 0.0, %v864_v0  ;;  %v1005_v0 = vadd.f32 %v997_v7, %v988_v31  ;;  %vm3243_vm7 = vcmp.eq.s32.totalorder %v4469_v46, 0  ;;  %v4470_v31 = vand.u32 7, %v3224_v56  ;;  %v3262_v46 = vld [vmem:[%s2883_s20 + $0x60] sm:$0xff] }
  0x59   : > { %v895_v60 = vmul.f32 %v3023_v54, %v886_v53  ;;  %v866_v53 = vsel %vm748_vm1, %v863_v30, %v865_v45 }
  0x5a   : > { %vm3270_vm8 = vcmp.eq.s32.totalorder %v4470_v31, 0 }
  0x5b   : > { %2538 = vmatmul.msk.f32.gmra.mxu0 %vm1022_vm0, %v3056_v8  ;;  %2553 = vmatmul.msk.f32.gmra.mxu1 %vm1022_vm0, %v2997_v43  ;;  %v902_v8 = vadd.f32 %v894_v37, %v845_v24  ;;  %v3227_v43 = vsel %vm748_vm1, %v749_v29, %v750_v47  ;;  %v838_v37 = vmul.f32 %v3007_v49, %v3207_v18 }
  0x5c   : > { %4548 = vst [vmem:[#allocation29_spill] sm:$0xff] %v3227_v43  ;;  %v795_v44 = vsel %vm3197_vm6, 0.0, %v3227_v43  ;;  %v1016_v29 = vadd.f32 %v3168_v23, %v1005_v0 }
  0x5d   : > { %v3235_v5 = vadd.f32 %v2904_v10, %v902_v8  ;;  %v804_v28 = vmul.f32 %v3004_v48, %v795_v44  ;;  %v887_v10 = vsel %vm3243_vm7, 0.0, %v866_v53  ;;  %v3254_v8 = vld [vmem:[%s2883_s20 + $0xd0] sm:$0xff] }
  0x5e   : > { %2531 = vmatmul.msk.f32.gmra.mxu3 %vm1022_vm0, %v1016_v29  ;;  %v896_v7 = vmul.f32 %v3023_v54, %v887_v10  ;;  %v752_v0 = vrot.slane %v3254_v8, 7  ;;  %v4555_v10 = vrot.slane %v2987_v39, 7 }
  0x5f   : > { %v829_v30 = vadd.f32 %v2918_v16, %v804_v28  ;;  %v3265_v16 = vadd.s32 32, %v2972_v34  ;;  %v867_v28 = vrot.slane %v3262_v46, 7 }
  0x61   : > { %v846_v44 = vadd.f32 %v838_v37, %v829_v30  ;;  %4551 = vst [vmem:[#allocation30_spill] sm:$0xff] %v3265_v16  ;;  %v4473_v29 = vand.u32 7, %v3265_v16  ;;  %v868_v30 = vsel %vm748_vm1, %v865_v45, %v867_v28  ;;  %v870_v31 = vsel %vm748_vm1, %v867_v28, %v4555_v10 }
  0x63   : > { %2539 = vmatmul.msk.f32.gmra.mxu0 %vm1022_vm0, %v3103_v58  ;;  %2554 = vmatmul.msk.f32.gmra.mxu1 %vm1022_vm0, %v3070_v57  ;;  %v903_v58 = vadd.f32 %v895_v60, %v846_v44  ;;  %v3275_v57 = vsel %vm748_vm1, %v750_v47, %v752_v0  ;;  %v839_v47 = vmul.f32 %v3007_v49, %v3254_v8  ;;  %v889_v44 = vsel %vm3270_vm8, 0.0, %v870_v31  ;;  %v3309_v31 = vld [vmem:[%s2883_s20 + $0xd8] sm:$0xff] }
  0x64   : > { %4554 = vst [vmem:[#allocation31_spill] sm:$0xff] %v3275_v57  ;;  %v796_v37 = vsel %vm3243_vm7, 0.0, %v3275_v57  ;;  %vm3295_vm9 = vcmp.eq.s32.totalorder %v4473_v29, 0  ;;  %v3300_v45 = vmul.f32 %v3023_v54, %v889_v44  ;;  %v754_v10 = vrot.slane %v3309_v31, 7 }
  0x65   : > { %v3286_v56 = vadd.f32 %v2915_v15, %v903_v58  ;;  %v805_v60 = vmul.f32 %v3004_v48, %v796_v37  ;;  %v888_v28 = vsel %vm3295_vm9, 0.0, %v868_v30  ;;  %v4561_v30 = vrot.slane %v2990_v40, 7 }
  0x66   : > { %4559 = vst [vmem:[#allocation33_spill] sm:$0xff] %v3300_v45  ;;  %2562 = vmatmul.msk.f32.vlgmr.msrb.gmra.mxu3 %vm1022_vm0, %v3060_v14  ;;  %v897_v58 = vmul.f32 %v3023_v54, %v888_v28 }
  0x67   : > { %4556 = vst [vmem:[#allocation32_spill] sm:$0xff] %v3286_v56  ;;  %v830_v15 = vadd.f32 %v2929_v21, %v805_v60  ;;  %v3317_v60 = vsel %vm748_vm1, %v752_v0, %v754_v10  ;;  %v3322_v14 = vsel %vm748_vm1, %v754_v10, %v4561_v30 }
  0x68   : > { %4560 = vst [vmem:[#allocation34_spill] sm:$0xff] %v3317_v60  ;;  %v797_v54 = vsel %vm3295_vm9, 0.0, %v3317_v60 }
  0x69   : > { %v847_v37 = vadd.f32 %v839_v47, %v830_v15  ;;  %4562 = vst [vmem:[#allocation35_spill] sm:$0xff] %v3322_v14  ;;  %v840_v47 = vmul.f32 %v3007_v49, %v3309_v31 }
  0x6b   : > { %2540 = vmatmul.msk.f32.gmra.mxu0 %vm1022_vm0, %v3073_v19  ;;  %2555 = vmatmul.msk.f32.gmra.mxu1 %vm1022_vm0, %v3178_v1  ;;  %v904_v21 = vadd.f32 %v896_v7, %v847_v37  ;;  %v798_v19 = vsel %vm3270_vm8, 0.0, %v3322_v14  ;;  %v806_v7 = vmul.f32 %v3004_v48, %v797_v54 }
  0x6c   : > { %v807_v0 = vmul.f32 %v3004_v48, %v798_v19 }
  0x6d   : > { %v3331_v1 = vadd.f32 %v2926_v20, %v904_v21  ;;  %v831_v44 = vadd.f32 %v2946_v26, %v806_v7 }
  0x6e   : > { %v3339_v15 = vadd.f32 %v2966_v32, %v807_v0  ;;  %2563 = vmatmul.msk.f32.gmra.mxu3 %vm1022_vm0, %v3115_v59 }
  0x6f   : > { %4563 = vst [vmem:[#allocation36_spill] sm:$0xff] %v3331_v1  ;;  %v848_v20 = vadd.f32 %v840_v47, %v831_v44 }
  0x70   : > { %4564 = vst [vmem:[#allocation37_spill] sm:$0xff] %v3339_v15 }
  0x71   : > { %v905_v28 = vadd.f32 %v897_v58, %v848_v20 }
  0x73   : > { %2541 = vmatmul.msk.f32.gmra.mxu0 %vm1022_vm0, %v3121_v51  ;;  %2556 = vmatmul.msk.f32.gmra.mxu1 %vm1022_vm0, %v3153_v9  ;;  %v3348_v48 = vadd.f32 %v2942_v25, %v905_v28 }
  0x75   : > { %4565 = vst [vmem:[#allocation38_spill] sm:$0xff] %v3348_v48 }
  0x7b   : > { %2542 = vmatmul.msk.f32.gmra.mxu0 %vm1022_vm0, %v3171_v2  ;;  %2557 = vmatmul.msk.f32.gmra.mxu1 %vm1022_vm0, %v3207_v18 }
  0x83   : > { %2543 = vmatmul.msk.f32.gmra.mxu0 %vm1022_vm0, %v3215_v11  ;;  %2558 = vmatmul.msk.f32.gmra.mxu1 %vm1022_vm0, %v3254_v8 }
  0x8b   : > { %2544 = vmatmul.msk.f32.gmra.mxu0 %vm1022_vm0, %v3262_v46  ;;  %2559 = vmatmul.msk.f32.gmra.mxu1 %vm1022_vm0, %v3309_v31 }
  0x93   : > { %2545 = vmatmul.msk.f32.gmra.mxu0 %vm1022_vm0, %v2987_v39  ;;  %2560 = vmatmul.msk.f32.gmra.mxu1 %vm1022_vm0, %v2990_v40  ;;  %v3373_v39 = vld [vmem:[%s4566_s6] ss:$0 sm:$0xff] }
  0x9b   : > { %2546 = vmatmul.msk.f32.gmra.mxu0 %vm1022_vm0, %v2975_v35  ;;  %2561 = vmatmul.msk.f32.gmra.mxu1 %vm1022_vm0, %v2993_v41 }
  0xa8   : > { %v1230_v25 = vpop.f32.mrf.mxu0  ;;  %v1275_v26 = vpop.f32.mrf.mxu1 }
  0xa9   : > { %v1231_v35 = vadd.f32 %v3373_v39, %v1230_v25  ;;  %v1276_v40 = vadd.f32 %v3373_v39, %v1275_v26 }
  0xab   : > { %v1326_v47 = vadd.f32 3.0, %v1231_v35  ;;  %v1341_v44 = vadd.f32 3.0, %v1276_v40 }
  0xad   : > { %v1358_v3 = vmax.f32 %v1326_v47, 0.0  ;;  %v1373_v34 = vmax.f32 %v1341_v44, 0.0 }
  0xaf   : > { %v1405_v27 = vmin.f32 %v1373_v34, 6.0 }
  0xb0   : > { %v1233_v32 = vpop.f32.mrf.mxu0  ;;  %v1278_v59 = vpop.f32.mrf.mxu1 }
  0xb1   : > { %v1234_v41 = vadd.f32 %v3373_v39, %v1233_v32  ;;  %v1279_v19 = vadd.f32 %v3373_v39, %v1278_v59 }
  0xb3   : > { %v1327_v29 = vadd.f32 3.0, %v1234_v41  ;;  %v1342_v16 = vadd.f32 3.0, %v1279_v19 }
  0xb5   : > { %v1359_v15 = vmax.f32 %v1327_v29, 0.0  ;;  %v1374_v59 = vmax.f32 %v1342_v16, 0.0  ;;  %v3393_v29 = vmul.f32 %v3049_v63, %v3121_v51  ;;  %v3397_v16 = vmul.f32 %v3149_v61, %v3153_v9 }
  0xb6   : > { %v3415_v9 = vmul.f32 %v3149_v61, %v3207_v18  ;;  %v3432_v18 = vmul.f32 %v3049_v63, %v3262_v46 }
  0xb7   : > { %4567 = vst [vmem:[#allocation39_spill] sm:$0xff] %v3397_v16  ;;  %v1391_v34 = vmin.f32 %v1359_v15, 6.0  ;;  %v3419_v15 = vmul.f32 %v3049_v63, %v3215_v11 }
  0xb8   : > { %v1236_v58 = vpop.f32.mrf.mxu0  ;;  %v1281_v37 = vpop.f32.mrf.mxu1  ;;  %4569 = vst [vmem:[#allocation41_spill] sm:$0xff] %v3415_v9 }
  0xb9   : > { %v1237_v20 = vadd.f32 %v3373_v39, %v1236_v58  ;;  %v1282_v28 = vadd.f32 %v3373_v39, %v1281_v37  ;;  %v947_v58 = vsel %vm3093_vm4, 0.0, %v3181_v13  ;;  %v1390_v37 = vmin.f32 %v1358_v3, 6.0  ;;  %4570 = vst [vmem:[#allocation42_spill] sm:$0xff] %v3419_v15 }
  0xba   : > { %v3401_v13 = vmul.f32 %v3049_v63, %v3171_v2  ;;  %v3405_v44 = vmul.f32 %v3066_v42, %v947_v58  ;;  %v1437_v2 = vmul.f32 %v1405_v27, %v1276_v40  ;;  %4573 = vst [vmem:[#allocation44_spill] sm:$0xff] %v3432_v18  ;;  %v1423_v27 = vmul.f32 %v1391_v34, %v1234_v41 }
  0xbb   : > { %v1328_v45 = vadd.f32 3.0, %v1237_v20  ;;  %v1343_v26 = vadd.f32 3.0, %v1282_v28 }
  0xbc   : > { %4568 = vst [vmem:[#allocation40_spill] sm:$0xff] %v3401_v13  ;;  %v3446_v41 = vmul.f32 0.16666667, %v1437_v2 }
  0xbd   : > { %v1375_v47 = vmax.f32 %v1343_v26, 0.0  ;;  %v1422_v26 = vmul.f32 %v1390_v37, %v1231_v35 }
  0xbe   : > { %4575 = vst [vmem:[#allocation46_spill] sm:$0xff] %v3446_v41 }
  0xbf   : > { %v1407_v58 = vmin.f32 %v1375_v47, 6.0 }
  0xc0   : > { %v1239_v10 = vpop.f32.mrf.mxu0  ;;  %v1284_v21 = vpop.f32.mrf.mxu1 }
  0xc1   : > { %v1240_v25 = vadd.f32 %v3373_v39, %v1239_v10  ;;  %v3383_v32 = vadd.f32 %v3373_v39, %v1284_v21  ;;  %v1360_v21 = vmax.f32 %v1328_v45, 0.0  ;;  %v1406_v10 = vmin.f32 %v1374_v59, 6.0 }
  0xc2   : > { %v3423_v59 = vmul.f32 %v3149_v61, %v3254_v8  ;;  %v3439_v8 = vmul.f32 %v3149_v61, %v3309_v31  ;;  %v1439_v61 = vmul.f32 %v1407_v58, %v1282_v28 }
  0xc3   : > { %v1329_v14 = vadd.f32 3.0, %v1240_v25  ;;  %v1344_v3 = vadd.f32 3.0, %v3383_v32  ;;  %v1438_v35 = vmul.f32 %v1406_v10, %v1279_v19  ;;  %v1455_v19 = vmul.f32 0.16666667, %v1423_v27 }
  0xc4   : > { %4571 = vst [vmem:[#allocation43_spill] sm:$0xff] %v3423_v59  ;;  %v1454_v59 = vmul.f32 0.16666667, %v1422_v26  ;;  %v1471_v58 = vmul.f32 0.16666667, %v1439_v61 }
  0xc5   : > { %v1361_v52 = vmax.f32 %v1329_v14, 0.0  ;;  %v1376_v14 = vmax.f32 %v1344_v3, 0.0  ;;  %4574 = vst [vmem:[#allocation45_spill] sm:$0xff] %v3439_v8  ;;  %v1470_v8 = vmul.f32 0.16666667, %v1438_v35 }
  0xc7   : > { %v1393_v34 = vmin.f32 %v1361_v52, 6.0  ;;  %v1408_v63 = vmin.f32 %v1376_v14, 6.0 }
  0xc8   : > { %v1242_v30 = vpop.f32.mrf.mxu0  ;;  %v1287_v54 = vpop.f32.mrf.mxu1 }
  0xc9   : > { %v3408_v51 = vadd.f32 %v3373_v39, %v1242_v30  ;;  %v3411_v45 = vadd.f32 %v3373_v39, %v1287_v54  ;;  %v3428_v30 = vld [vmem:[%s4572_s7] sm:$0xff]  ;;  %v1392_v54 = vmin.f32 %v1360_v21, 6.0  ;;  %v1425_v28 = vmul.f32 %v1393_v34, %v1240_v25 }
  0xca   : > { %v3444_v46 = vperm.slane %v3428_v30, 4  ;;  %v3455_v10 = vperm.slane %v3428_v30, 1  ;;  %v1440_v35 = vmul.f32 %v1408_v63, %v3383_v32  ;;  %v3491_v22 = vperm.slane %v3428_v30, 0 }
  0xcb   : > { %v1330_v40 = vadd.f32 3.0, %v3408_v51  ;;  %v1345_v37 = vadd.f32 3.0, %v3411_v45  ;;  %v1424_v3 = vmul.f32 %v1392_v54, %v1237_v20 }
  0xcc   : > { %v3462_v48 = vmul.f32 %v3444_v46, %v1454_v59  ;;  %v3477_v59 = vmul.f32 %v3444_v46, %v1455_v19 }
  0xcd   : > { %v1362_v18 = vmax.f32 %v1330_v40, 0.0  ;;  %v1377_v2 = vmax.f32 %v1345_v37, 0.0  ;;  %v1456_v54 = vmul.f32 0.16666667, %v1424_v3  ;;  %v3481_v37 = vmul.f32 %v3455_v10, %v1470_v8 }
  0xcf   : > { %v1394_v25 = vmin.f32 %v1362_v18, 6.0  ;;  %v1409_v34 = vmin.f32 %v1377_v2, 6.0  ;;  %v3496_v32 = vmul.f32 %v3444_v46, %v1456_v54  ;;  %v3499_v18 = vmul.f32 %v3455_v10, %v1471_v58 }
  0xd0   : > { %v1245_v7 = vpop.f32.mrf.mxu0  ;;  %v1290_v0 = vpop.f32.mrf.mxu1  ;;  %v3508_v54 = vperm.slane %v3428_v30, 2 }
  0xd1   : > { %v3435_v11 = vadd.f32 %v3373_v39, %v1245_v7  ;;  %v3449_v7 = vperm.slane %v3428_v30, 5  ;;  %v3452_v31 = vadd.f32 %v3373_v39, %v1290_v0  ;;  %v3466_v0 = vperm.slane %v3428_v30, 7 }
  0xd2   : > { %v1426_v60 = vmul.f32 %v1394_v25, %v3408_v51  ;;  %v1441_v62 = vmul.f32 %v1409_v34, %v3411_v45 }
  0xd3   : > { %v1331_v26 = vadd.f32 3.0, %v3435_v11  ;;  %v1346_v27 = vadd.f32 3.0, %v3452_v31  ;;  %v3487_v20 = vmul.f32 %v3466_v0, %v1470_v8  ;;  %v3503_v8 = vmul.f32 %v3466_v0, %v1471_v58 }
  0xd4   : > { %v1542_v58 = vmul.f32 0.0, %v3455_v10 }
  0xd5   : > { %v1363_v40 = vmax.f32 %v1331_v26, 0.0  ;;  %v1378_v26 = vmax.f32 %v1346_v27, 0.0 }
  0xd7   : > { %v1395_v9 = vmin.f32 %v1363_v40, 6.0  ;;  %v1410_v17 = vmin.f32 %v1378_v26, 6.0  ;;  %v1559_v26 = vmul.f32 0.0, %v3508_v54 }
  0xd8   : > { %v1248_v33 = vpop.f32.mrf.mxu0  ;;  %v1293_v49 = vpop.f32.mrf.mxu1 }
  0xd9   : > { %v3459_v52 = vadd.f32 %v3373_v39, %v1248_v33  ;;  %v3470_v14 = vadd.f32 %v3373_v39, %v1293_v49  ;;  %v3474_v33 = vmul.f32 %v3449_v7, %v3446_v41  ;;  %v3493_v63 = vpop.f32.mrf.mxu3  ;;  %v1525_v41 = vmul.f32 0.0, %v3491_v22 }
  0xda   : > { %4577 = vst [vmem:[#allocation48_spill] sm:$0xff] %v3493_v63  ;;  %v1442_v16 = vmul.f32 %v1410_v17, %v3452_v31 }
  0xdb   : > { %4576 = vst [vmem:[#allocation47_spill] sm:$0xff] %v3474_v33  ;;  %v1332_v3 = vadd.f32 3.0, %v3459_v52  ;;  %v1457_v33 = vmul.f32 0.16666667, %v1425_v28  ;;  %v1347_v2 = vadd.f32 3.0, %v3470_v14  ;;  %v1550_v1 = vadd.f32 %v1542_v58, %v1525_v41 }
  0xdc   : > { %v1472_v28 = vmul.f32 0.16666667, %v1440_v35  ;;  %v1474_v13 = vmul.f32 0.16666667, %v1442_v16 }
  0xdd   : > { %v1364_v63 = vmax.f32 %v1332_v3, 0.0  ;;  %v3511_v55 = vmul.f32 %v3444_v46, %v1457_v33  ;;  %v1379_v35 = vmax.f32 %v1347_v2, 0.0  ;;  %v1427_v33 = vmul.f32 %v1395_v9, %v3435_v11 }
  0xde   : > { %v3522_v45 = vmul.f32 %v3455_v10, %v1472_v28  ;;  %v3525_v25 = vmul.f32 %v3466_v0, %v1472_v28  ;;  %v1458_v3 = vmul.f32 0.16666667, %v1426_v60  ;;  %v1567_v31 = vadd.f32 %v1559_v26, %v1550_v1 }
  0xdf   : > { %v1396_v23 = vmin.f32 %v1364_v63, 6.0  ;;  %v1411_v28 = vmin.f32 %v1379_v35, 6.0  ;;  %v1459_v60 = vmul.f32 0.16666667, %v1427_v33  ;;  %v3547_v33 = vperm.slane %v3428_v30, 3 }
  0xe0   : > { %v1251_v21 = vpop.f32.mrf.mxu0  ;;  %v1296_v47 = vpop.f32.mrf.mxu1 }
  0xe1   : > { %v3516_v40 = vadd.f32 %v3373_v39, %v1251_v21  ;;  %v3519_v51 = vadd.f32 %v3373_v39, %v1296_v47  ;;  %v1428_v17 = vmul.f32 %v1396_v23, %v3459_v52 }
  0xe3   : > { %v1333_v42 = vadd.f32 3.0, %v3516_v40  ;;  %v1348_v9 = vadd.f32 3.0, %v3519_v51  ;;  %v1460_v43 = vmul.f32 0.16666667, %v1428_v17 }
  0xe8   : > { %v1254_v61 = vpop.f32.mrf.mxu0  ;;  %v3484_v49 = vpop.f32.mrf.mxu1 }
  0xe9   : > { %v1255_v19 = vadd.f32 %v3373_v39, %v1254_v61  ;;  %v3558_v1 = vadd.f32 %v3373_v39, %v3484_v49  ;;  %v3564_v49 = vmul.f32 %v3455_v10, %v1474_v13 }
  0xeb   : > { %v1334_v61 = vadd.f32 3.0, %v1255_v19 }
  0xed   : > { %v1366_v27 = vmax.f32 %v1334_v61, 0.0  ;;  %v1473_v61 = vmul.f32 0.16666667, %v1441_v62 }
  0xef   : > { %v1398_v34 = vmin.f32 %v1366_v27, 6.0  ;;  %v3534_v27 = vpop.f32.mrf.mxu3  ;;  %v3540_v41 = vmul.f32 %v3455_v10, %v1473_v61  ;;  %v3543_v58 = vmul.f32 %v3466_v0, %v1473_v61 }
  0xf0   : > { %v1257_v2 = vpop.f32.mrf.mxu0  ;;  %v1302_v21 = vpop.f32.mrf.mxu1  ;;  %4578 = vst [vmem:[#allocation49_spill] sm:$0xff] %v3534_v27  ;;  %v3551_v27 = vmul.f32 %v3444_v46, %v1459_v60 }
  0xf1   : > { %v1430_v15 = vmul.f32 %v1398_v34, %v1255_v19  ;;  %v1258_v47 = vadd.f32 %v3373_v39, %v1257_v2  ;;  %v1303_v57 = vadd.f32 %v3373_v39, %v1302_v21  ;;  %v3537_v19 = vmul.f32 %v3444_v46, %v1458_v3 }
  0xf2   : > { %v1443_v34 = vmul.f32 %v1411_v28, %v3470_v14  ;;  %v1365_v2 = vmax.f32 %v1333_v42, 0.0  ;;  %v1380_v21 = vmax.f32 %v1348_v9, 0.0  ;;  %4579 = vst [vmem:[#allocation50_spill] sm:$0xff] %v3551_v27 }
  0xf3   : > { %v1462_v62 = vmul.f32 0.16666667, %v1430_v15  ;;  %v1335_v11 = vadd.f32 3.0, %v1258_v47  ;;  %v1350_v63 = vadd.f32 3.0, %v1303_v57 }
  0xf4   : > { %v1475_v60 = vmul.f32 0.16666667, %v1443_v34 }
  0xf5   : > { %v1583_v35 = vrot.slane %v1462_v62, 7  ;;  %v1367_v15 = vmax.f32 %v1335_v11, 0.0  ;;  %v1382_v3 = vmax.f32 %v1350_v63, 0.0  ;;  %v1397_v11 = vmin.f32 %v1365_v2, 6.0 }
  0xf6   : > { %v1412_v63 = vmin.f32 %v1380_v21, 6.0  ;;  %v3574_v2 = vperm.slane %v3428_v30, 6  ;;  %v3577_v21 = vmul.f32 %v3444_v46, %v1460_v43 }
  0xf7   : > { %v1606_v61 = vsel %vm748_vm1, 0.0, %v1583_v35  ;;  %v1399_v56 = vmin.f32 %v1367_v15, 6.0  ;;  %v1414_v52 = vmin.f32 %v1382_v3, 6.0  ;;  %v3567_v3 = vmul.f32 %v3466_v0, %v1474_v13 }
  0xf8   : > { %v1607_v23 = vsel %vm3093_vm4, 0.0, %v1606_v61  ;;  %v1260_v14 = vpop.f32.mrf.mxu0  ;;  %v1305_v42 = vpop.f32.mrf.mxu1  ;;  %4581 = vst [vmem:[#allocation52_spill] sm:$0xff] %v3577_v21 }
  0xf9   : > { %v1616_v26 = vmul.f32 %v3547_v33, %v1607_v23  ;;  %v1431_v28 = vmul.f32 %v1399_v56, %v1258_v47  ;;  %v1261_v9 = vadd.f32 %v3373_v39, %v1260_v14  ;;  %v1306_v16 = vadd.f32 %v3373_v39, %v1305_v42  ;;  %4580 = vst [vmem:[#allocation51_spill] sm:$0xff] %v3567_v3 }
  0xfa   : > { %v1446_v17 = vmul.f32 %v1414_v52, %v1303_v57  ;;  %v1349_v56 = vadd.f32 3.0, %v3558_v1  ;;  %v3580_v52 = vmul.f32 %v3455_v10, %v1475_v60  ;;  %v1429_v42 = vmul.f32 %v1397_v11, %v3516_v40 }
  0xfb   : > { %v1624_v15 = vadd.f32 %v1616_v26, %v1567_v31  ;;  %v1463_v61 = vmul.f32 0.16666667, %v1431_v28  ;;  %v1336_v27 = vadd.f32 3.0, %v1261_v9  ;;  %v1351_v12 = vadd.f32 3.0, %v1306_v16  ;;  %v1320_v31 = vpop.f32.mrf.mxu3 }
  0xfc   : > { %v3570_v47 = vmul.f32 0.16666667, %v1446_v17  ;;  %4582 = vst [vmem:[#allocation53_spill] sm:$0xff] %v3580_v52  ;;  %v1444_v26 = vmul.f32 %v1412_v63, %v3519_v51  ;;  %v1381_v30 = vmax.f32 %v1349_v56, 0.0 }
  0xfd   : > { %v1641_v23 = vadd.f32 %v3462_v48, %v1624_v15  ;;  %v1584_v34 = vrot.slane %v1463_v61, 7  ;;  %v1368_v57 = vmax.f32 %v1336_v27, 0.0  ;;  %v1383_v14 = vmax.f32 %v1351_v12, 0.0 }
  0xfe   : > { %v1496_v13 = vrot.slane %v3570_v47, 7  ;;  %v1650_v48 = vmul.f32 %v3449_v7, %v1462_v62  ;;  %v1560_v56 = vmul.f32 %v3508_v54, %v3570_v47 }
  0xff   : > { %v1400_v28 = vmin.f32 %v1368_v57, 6.0  ;;  %v1585_v27 = vsel %vm748_vm1, %v1583_v35, %v1584_v34  ;;  %v1415_v43 = vmin.f32 %v1383_v14, 6.0 }
 0x100   : > { %v1516_v17 = vsel %vm748_vm1, 0.0, %v1496_v13  ;;  %v1263_v15 = vpop.f32.mrf.mxu0  ;;  %v1308_v21 = vpop.f32.mrf.mxu1  ;;  %v1658_v3 = vadd.f32 %v1650_v48, %v1641_v23  ;;  %v1608_v63 = vsel %vm3137_vm5, 0.0, %v1585_v27 }
 0x101   : > { %v1517_v52 = vsel %vm3137_vm5, 0.0, %v1516_v17  ;;  %v1670_v12 = vsel %vm3093_vm4, 0.0, %v1516_v17  ;;  %v1432_v40 = vmul.f32 %v1400_v28, %v1261_v9  ;;  %v1447_v11 = vmul.f32 %v1415_v43, %v1306_v16 }
 0x102   : > { %v1526_v51 = vmul.f32 %v3491_v22, %v1517_v52  ;;  %v1679_v62 = vmul.f32 %v3574_v2, %v1670_v12  ;;  %v1264_v35 = vadd.f32 %v3373_v39, %v1263_v15  ;;  %v1309_v57 = vadd.f32 %v3373_v39, %v1308_v21 }
 0x103   : > { %v1464_v23 = vmul.f32 0.16666667, %v1432_v40  ;;  %v3601_v9 = vmul.f32 0.16666667, %v1447_v11  ;;  %v3604_v28 = vmul.f32 %v3466_v0, %v1475_v60  ;;  %v1461_v16 = vmul.f32 0.16666667, %v1429_v42 }
 0x104   : > { %v1551_v14 = vadd.f32 %v3481_v37, %v1526_v51  ;;  %v1687_v48 = vadd.f32 %v1679_v62, %v1658_v3  ;;  %v1337_v52 = vadd.f32 3.0, %v1264_v35  ;;  %v1352_v43 = vadd.f32 3.0, %v1309_v57  ;;  %v1323_v62 = vpop.f32.mrf.mxu3 }
 0x105   : > { %4583 = vst [vmem:[#allocation54_spill] sm:$0xff] %v3604_v28  ;;  %v1586_v17 = vrot.slane %v1464_v23, 7  ;;  %v1617_v27 = vmul.f32 %v3547_v33, %v1608_v63  ;;  %v1497_v21 = vrot.slane %v3601_v9, 7  ;;  %v1476_v40 = vmul.f32 0.16666667, %v1444_v26 }
 0x106   : > { %v1568_v15 = vadd.f32 %v1560_v56, %v1551_v14  ;;  %v3608_v12 = vadd.f32 %v3487_v20, %v1687_v48  ;;  %v1369_v3 = vmax.f32 %v1337_v52, 0.0  ;;  %v1384_v51 = vmax.f32 %v1352_v43, 0.0 }
 0x107   : > { %v1587_v37 = vsel %vm748_vm1, %v1584_v34, %v1586_v17  ;;  %v1413_v11 = vmin.f32 %v1381_v30, 6.0  ;;  %v1498_v42 = vsel %vm748_vm1, %v1496_v13, %v1497_v21  ;;  %v3614_v63 = vadd.f32 %v3373_v39, %v1320_v31 }
 0x108   : > { %v1625_v60 = vadd.f32 %v1617_v27, %v1568_v15  ;;  %v1266_v36 = vpop.f32.mrf.mxu0  ;;  %v1311_v28 = vpop.f32.mrf.mxu1  ;;  %v1651_v20 = vmul.f32 %v3449_v7, %v1463_v61  ;;  %v1518_v56 = vsel %vm3197_vm6, 0.0, %v1498_v42  ;;  %v1671_v34 = vsel %vm3137_vm5, 0.0, %v1498_v42 }
 0x109   : > { %v1401_v26 = vmin.f32 %v1369_v3, 6.0  ;;  %v1609_v30 = vsel %vm3197_vm6, 0.0, %v1587_v37  ;;  %v1527_v13 = vmul.f32 %v3491_v22, %v1518_v56  ;;  %v3626_v48 = vadd.f32 %v3373_v39, %v1323_v62 }
 0x10a   : > { %v1642_v14 = vadd.f32 %v3477_v59, %v1625_v60  ;;  %v1416_v52 = vmin.f32 %v1384_v51, 6.0  ;;  %v1267_v61 = vadd.f32 %v3373_v39, %v1266_v36  ;;  %v1312_v43 = vadd.f32 %v3373_v39, %v1311_v28 }
 0x10b   : > { %v1433_v31 = vmul.f32 %v1401_v26, %v1264_v35  ;;  %v1552_v27 = vadd.f32 %v3499_v18, %v1527_v13  ;;  %v1561_v15 = vmul.f32 %v3508_v54, %v3601_v9  ;;  %v1680_v3 = vmul.f32 %v3574_v2, %v1671_v34 }
 0x10c   : > { %v1659_v59 = vadd.f32 %v1651_v20, %v1642_v14  ;;  %v1448_v60 = vmul.f32 %v1416_v52, %v1309_v57  ;;  %v1338_v42 = vadd.f32 3.0, %v1267_v61  ;;  %v1353_v62 = vadd.f32 3.0, %v1312_v43 }
 0x10d   : > { %v3634_v37 = vmul.f32 0.16666667, %v1433_v31  ;;  %v1618_v35 = vmul.f32 %v3547_v33, %v1609_v30  ;;  %v1569_v51 = vadd.f32 %v1561_v15, %v1552_v27  ;;  %v1356_v36 = vadd.f32 3.0, %v3614_v63 }
 0x10e   : > { %v1688_v56 = vadd.f32 %v1680_v3, %v1659_v59  ;;  %v3639_v18 = vmul.f32 0.16666667, %v1448_v60  ;;  %v1370_v26 = vmax.f32 %v1338_v42, 0.0  ;;  %v1357_v20 = vadd.f32 3.0, %v3626_v48 }
 0x10f   : > { %v1588_v28 = vrot.slane %v3634_v37, 7  ;;  %v3643_v34 = vmul.f32 %v3444_v46, %v1461_v16  ;;  %v1626_v14 = vadd.f32 %v1618_v35, %v1569_v51  ;;  %v1385_v13 = vmax.f32 %v1353_v62, 0.0  ;;  %v3659_v46 = vld [vmem:[%s4572_s7 + $0x8] ss:$0 sm:$0xff] }
 0x110   : > { %v3646_v57 = vadd.f32 %v3503_v8, %v1688_v56  ;;  %v3649_v30 = vmul.f32 %v3455_v10, %v1476_v40  ;;  %v3652_v31 = vmul.f32 %v3466_v0, %v1476_v40  ;;  %v1499_v27 = vrot.slane %v3639_v18, 7  ;;  %v1269_v60 = vpop.f32.mrf.mxu0 }
 0x111   : > { %v1589_v52 = vsel %vm748_vm1, %v1586_v17, %v1588_v28  ;;  %v1652_v16 = vmul.f32 %v3449_v7, %v1464_v23  ;;  %v1643_v8 = vadd.f32 %v3496_v32, %v1626_v14  ;;  %v1402_v15 = vmin.f32 %v1370_v26, 6.0  ;;  %v1314_v17 = vpop.f32.mrf.mxu1 }
 0x112   : > { %v1388_v59 = vmax.f32 %v1356_v36, 0.0  ;;  %v1445_v10 = vmul.f32 %v1413_v11, %v3558_v1  ;;  %v1500_v40 = vsel %vm748_vm1, %v1497_v21, %v1499_v27  ;;  %v1417_v3 = vmin.f32 %v1385_v13, 6.0 }
 0x113   : > { %v1389_v42 = vmax.f32 %v1357_v20, 0.0  ;;  %v1610_v62 = vsel %vm3243_vm7, 0.0, %v1589_v52  ;;  %v1519_v35 = vsel %vm3243_vm7, 0.0, %v1500_v40  ;;  %v1660_v51 = vadd.f32 %v1652_v16, %v1643_v8 }
 0x114   : > { %v1672_v32 = vsel %vm3197_vm6, 0.0, %v1500_v40  ;;  %v1528_v23 = vmul.f32 %v3491_v22, %v1519_v35  ;;  %v1434_v11 = vmul.f32 %v1402_v15, %v1267_v61  ;;  %v1449_v21 = vmul.f32 %v1417_v3, %v1312_v43 }
 0x115   : > { %v1681_v1 = vmul.f32 %v3574_v2, %v1672_v32  ;;  %v1713_v56 = vmul.f32 %v3659_v46, %v3570_v47  ;;  %v1420_v36 = vmin.f32 %v1388_v59, 6.0  ;;  %v1270_v26 = vadd.f32 %v3373_v39, %v1269_v60 }
 0x116   : > { %v1315_v20 = vadd.f32 %v3373_v39, %v1314_v17  ;;  %v1553_v14 = vadd.f32 %v3522_v45, %v1528_v23  ;;  %v1562_v13 = vmul.f32 %v3508_v54, %v3639_v18  ;;  %v1466_v16 = vmul.f32 0.16666667, %v1434_v11 }
 0x117   : > { %v1689_v52 = vadd.f32 %v1681_v1, %v1660_v51  ;;  %v1619_v8 = vmul.f32 %v3547_v33, %v1610_v62  ;;  %v3681_v40 = vmul.f32 0.16666667, %v1449_v21  ;;  %v1339_v61 = vadd.f32 3.0, %v1270_v26  ;;  %v3691_v62 = vld [vmem:[%s4445_s8] ss:$0 sm:$0xff] }
 0x118   : > { %v1354_v43 = vadd.f32 3.0, %v1315_v20  ;;  %v1570_v15 = vadd.f32 %v1562_v13, %v1553_v14  ;;  %v1590_v59 = vrot.slane %v1466_v16, 7  ;;  %v1421_v3 = vmin.f32 %v1389_v42, 6.0  ;;  %v1272_v14 = vpop.f32.mrf.mxu0 }
 0x119   : > { %v1706_v47 = vadd.f32 %v3525_v25, %v1689_v52  ;;  %v3684_v60 = vmul.f32 0.16666667, %v1445_v10  ;;  %v1721_v45 = vadd.f32 %v1713_v56, %v3608_v12  ;;  %v1501_v17 = vrot.slane %v3681_v40, 7 }
 0x11a   : > { %v1371_v35 = vmax.f32 %v1339_v61, 0.0  ;;  %v1627_v51 = vadd.f32 %v1619_v8, %v1570_v15  ;;  %v1591_v32 = vsel %vm748_vm1, %v1588_v28, %v1590_v59  ;;  %v1452_v23 = vmul.f32 %v1420_v36, %v3614_v63 }
 0x11b   : > { %v1386_v25 = vmax.f32 %v1354_v43, 0.0  ;;  %v1714_v10 = vmul.f32 %v3659_v46, %v3601_v9  ;;  %v1653_v12 = vmul.f32 %v3449_v7, %v3634_v37  ;;  %v1502_v42 = vsel %vm748_vm1, %v1499_v27, %v1501_v17 }
 0x11c   : > { %v1403_v1 = vmin.f32 %v1371_v35, 6.0  ;;  %v1644_v11 = vadd.f32 %v3511_v55, %v1627_v51  ;;  %v1611_v21 = vsel %vm3295_vm9, 0.0, %v1591_v32  ;;  %v1520_v28 = vsel %vm3295_vm9, 0.0, %v1502_v42  ;;  %v1317_v35 = vpop.f32.mrf.mxu1 }
 0x11d   : > { %v1453_v63 = vmul.f32 %v1421_v3, %v3626_v48  ;;  %v1529_v56 = vmul.f32 %v3491_v22, %v1520_v28  ;;  %v1673_v9 = vsel %vm3243_vm7, 0.0, %v1502_v42  ;;  %v1418_v37 = vmin.f32 %v1386_v25, 6.0 }
 0x11e   : > { %v1435_v36 = vmul.f32 %v1403_v1, %v1270_v26  ;;  %v3710_v27 = vadd.f32 %v3691_v62, %v1721_v45  ;;  %v1661_v55 = vadd.f32 %v1653_v12, %v1644_v11  ;;  %v1682_v13 = vmul.f32 %v3574_v2, %v1673_v9  ;;  %v1762_v9 = vld [vmem:[%s4446_s9] sm:$0xff] }
 0x11f   : > { %v3713_v52 = vmul.f32 0.16666667, %v1452_v23  ;;  %v1554_v8 = vadd.f32 %v3540_v41, %v1529_v56  ;;  %v1563_v48 = vmul.f32 %v3508_v54, %v3681_v40  ;;  %v1450_v43 = vmul.f32 %v1418_v37, %v1315_v20  ;;  %1782 = vmatpush.msrb.mxu2 %v1762_v9 }
 0x120   : > { %v3718_v61 = vmul.f32 0.16666667, %v1435_v36  ;;  %v1722_v26 = vadd.f32 %v1714_v10, %v3646_v57  ;;  %v1620_v15 = vmul.f32 %v3547_v33, %v1611_v21  ;;  %v1690_v3 = vadd.f32 %v1682_v13, %v1661_v55 }
 0x121   : > { %v1273_v45 = vadd.f32 %v3373_v39, %v1272_v14  ;;  %v1571_v51 = vadd.f32 %v1563_v48, %v1554_v8  ;;  %v3724_v23 = vmul.f32 0.16666667, %v1450_v43  ;;  %v3726_v41 = vmul.f32 0.16666667, %v1453_v63 }
 0x122   : > { %v1592_v32 = vrot.slane %v3718_v61, 7  ;;  %v3730_v25 = vsel %vm1022_vm0, %v3710_v27, 0.0  ;;  %v1715_v57 = vmul.f32 %v3659_v46, %v3639_v18  ;;  %v3735_v20 = vadd.f32 %v3543_v58, %v1690_v3 }
 0x123   : > { %v1340_v10 = vadd.f32 3.0, %v1273_v45  ;;  %v1628_v12 = vadd.f32 %v1620_v15, %v1571_v51  ;;  %v1503_v1 = vrot.slane %v3724_v23, 7  ;;  %v1318_v11 = vadd.f32 %v3373_v39, %v1317_v35 }
 0x124   : > { %v1593_v42 = vsel %vm748_vm1, %v1590_v59, %v1592_v32  ;;  %v3743_v21 = vadd.f32 %v3691_v62, %v1722_v26  ;;  %v1654_v28 = vmul.f32 %v3449_v7, %v1466_v16  ;;  %v1507_v18 = vrot.slane %v3713_v52, 7 }
 0x125   : > { %v3749_v58 = vmul.f32 %v3508_v54, %v3713_v52  ;;  %v1723_v63 = vadd.f32 %v1715_v57, %v1706_v47  ;;  %v1645_v56 = vadd.f32 %v3537_v19, %v1628_v12  ;;  %v1504_v59 = vsel %vm748_vm1, %v1501_v17, %v1503_v1  ;;  %v4584_v57 = vld [vmem:[#allocation7_spill] sm:$0xff]  ;;  %v4585_v12 = vld [vmem:[#allocation29_spill] sm:$0xff] }
 0x126   : > { %v1667_v39 = vrot.slane %v3726_v41, 7  ;;  %v1612_v16 = vsel %vm3270_vm8, 0.0, %v1593_v42  ;;  %v1521_v36 = vsel %vm3270_vm8, 0.0, %v1504_v59  ;;  %v1674_v47 = vsel %vm3295_vm9, 0.0, %v1504_v59 }
 0x127   : > { %v1372_v19 = vmax.f32 %v1340_v10, 0.0  ;;  %v1530_v37 = vmul.f32 %v3491_v22, %v1521_v36  ;;  %v1662_v17 = vadd.f32 %v1654_v28, %v1645_v56  ;;  %v1683_v14 = vmul.f32 %v3574_v2, %v1674_v47  ;;  %v4586_v28 = vld [vmem:[#allocation32_spill] sm:$0xff]  ;;  %v4590_v36 = vld [vmem:[#allocation39_spill] sm:$0xff] }
 0x128   : > { %v1355_v55 = vadd.f32 3.0, %v1318_v11  ;;  %v1564_v13 = vmul.f32 %v3508_v54, %v3724_v23  ;;  %v964_v48 = vadd.f32 %v3405_v44, %v3141_v38  ;;  %v936_v43 = vadd.f32 %v3393_v29, %v3235_v5  ;;  %v4587_v56 = vld [vmem:[#allocation40_spill] sm:$0xff]  ;;  %v4588_v44 = vld [vmem:[#allocation51_spill] sm:$0xff]  ;;  %v4589_v29 = vld [vmem:[#allocation22_spill] sm:$0xff] }
 0x129   : > { %v1404_v8 = vmin.f32 %v1372_v19, 6.0  ;;  %v1621_v26 = vmul.f32 %v3547_v33, %v1612_v16  ;;  %v1555_v15 = vadd.f32 %v3564_v49, %v1530_v37  ;;  %v1691_v3 = vadd.f32 %v1683_v14, %v1662_v17  ;;  %v4591_v47 = vld [vmem:[#allocation31_spill] sm:$0xff]  ;;  %v4592_v37 = vld [vmem:[#allocation36_spill] sm:$0xff]  ;;  %v4593_v17 = vld [vmem:[#allocation42_spill] sm:$0xff] }
 0x12a   : > { %v1387_v35 = vmax.f32 %v1355_v55, 0.0  ;;  %v981_v10 = vadd.f32 %v4584_v57, %v964_v48  ;;  %v948_v42 = vsel %vm3137_vm5, 0.0, %v4585_v12  ;;  %v937_v59 = vadd.f32 %v4587_v56, %v4586_v28  ;;  %v4597_v56 = vld [vmem:[#allocation46_spill] sm:$0xff] }
 0x12b   : > { %v1436_v51 = vmul.f32 %v1404_v8, %v1273_v45  ;;  %v1572_v38 = vadd.f32 %v1564_v13, %v1555_v15  ;;  %v3782_v9 = vadd.f32 %v4588_v44, %v1691_v3  ;;  %v957_v16 = vmul.f32 %v4589_v29, %v948_v42 }
 0x12c   : > { %v1419_v5 = vmin.f32 %v1387_v35, 6.0  ;;  %v998_v45 = vadd.f32 %v4590_v36, %v981_v10  ;;  %v949_v19 = vsel %vm3197_vm6, 0.0, %v4591_v47  ;;  %v938_v14 = vadd.f32 %v4593_v17, %v4592_v37  ;;  %v4594_v35 = vld [vmem:[#allocation25_spill] sm:$0xff]  ;;  %v4595_v10 = vld [vmem:[#allocation50_spill] sm:$0xff] }
 0x12d   : > { %v3785_v49 = vmul.f32 0.16666667, %v1436_v51  ;;  %v3794_v55 = vadd.f32 %v3691_v62, %v1723_v63  ;;  %v1629_v13 = vadd.f32 %v1621_v26, %v1572_v38  ;;  %v965_v48 = vadd.f32 %v957_v16, %v936_v43  ;;  %v4601_v37 = vld [vmem:[#allocation34_spill] sm:$0xff] }
 0x12e   : > { %v1451_v8 = vmul.f32 %v1419_v5, %v1318_v11  ;;  %v3798_v15 = vsel %vm1022_vm0, %v3743_v21, 0.0  ;;  %v1009_v51 = vadd.f32 %v4594_v35, %v998_v45  ;;  %v958_v57 = vmul.f32 %v4589_v29, %v949_v19  ;;  %v4596_v11 = vld [vmem:[#allocation8_spill] sm:$0xff] }
 0x12f   : > { %v1594_v3 = vrot.slane %v3785_v49, 7  ;;  %v1646_v12 = vadd.f32 %v4595_v10, %v1629_v13  ;;  %v3807_v63 = vsel %vm748_vm1, %v1507_v18, %v1667_v39  ;;  %v982_v43 = vadd.f32 %v4596_v11, %v965_v48  ;;  %v4602_v10 = vld [vmem:[#allocation41_spill] sm:$0xff] }
 0x130   : > { %v1483_v26 = vmul.f32 0.16666667, %v1451_v8  ;;  %v1716_v42 = vmul.f32 %v3659_v46, %v3681_v40  ;;  %v4598_v38 = vrot.slane %v4597_v56, 7  ;;  %2524 = vmatmul.msk.f32.vlgmr.msra.gmra.mxu2 %vm1022_vm0, %v1009_v51  ;;  %v966_v5 = vadd.f32 %v958_v57, %v937_v59  ;;  %v4605_v56 = vld [vmem:[#allocation44_spill] sm:$0xff] }
 0x131   : > { %v1595_v28 = vsel %vm748_vm1, %v1592_v32, %v1594_v3  ;;  %v3821_v39 = vsel %vm1022_vm0, %v3794_v55, 0.0  ;;  %v1655_v16 = vmul.f32 %v3449_v7, %v3718_v61  ;;  %v1717_v47 = vmul.f32 %v3659_v46, %v3724_v23 }
 0x132   : > { %v1597_v44 = vsel %vm748_vm1, %v1594_v3, %v4598_v38  ;;  %v1613_v40 = vsel %vm3027_vm2, 0.0, %v1595_v28  ;;  %v1505_v45 = vrot.slane %v1483_v26, 7  ;;  %v1724_v32 = vadd.f32 %v1716_v42, %v3735_v20  ;;  %v4604_v28 = vld [vmem:[#allocation38_spill] sm:$0xff] }
 0x133   : > { %v1677_v59 = vsel %vm3044_vm3, 0.0, %v3807_v63  ;;  %v950_v17 = vsel %vm3243_vm7, 0.0, %v4601_v37  ;;  %v1614_v61 = vsel %vm3044_vm3, 0.0, %v1597_v44  ;;  %v1663_v8 = vadd.f32 %v1655_v16, %v1646_v12  ;;  %v4603_v63 = vld [vmem:[#allocation9_spill] sm:$0xff]  ;;  %v4608_v37 = vld [vmem:[#allocation43_spill] sm:$0xff] }
 0x134   : > { %v1506_v13 = vsel %vm748_vm1, %v1503_v1, %v1505_v45  ;;  %v1508_v20 = vsel %vm748_vm1, %v1505_v45, %v1507_v18  ;;  %v1622_v48 = vmul.f32 %v3547_v33, %v1613_v40  ;;  %v1565_v57 = vmul.f32 %v3508_v54, %v1483_v26  ;;  %v4606_v44 = vld [vmem:[#allocation53_spill] sm:$0xff] }
 0x135   : > { %v1522_v3 = vsel %vm3027_vm2, 0.0, %v1506_v13  ;;  %v1523_v35 = vsel %vm3044_vm3, 0.0, %v1508_v20  ;;  %v1675_v51 = vsel %vm3270_vm8, 0.0, %v1506_v13  ;;  %v999_v12 = vadd.f32 %v4602_v10, %v982_v43  ;;  %v3868_v43 = vld [vmem:[%s4541_s5] ss:$0 sm:$0xff] }
 0x136   : > { %v1531_v23 = vmul.f32 %v3491_v22, %v1522_v3  ;;  %v1532_v1 = vmul.f32 %v3491_v22, %v1523_v35  ;;  %v1684_v18 = vmul.f32 %v3574_v2, %v1675_v51  ;;  %v983_v11 = vadd.f32 %v4603_v63, %v966_v5  ;;  %v4607_v22 = vld [vmem:[#allocation35_spill] sm:$0xff]  ;;  %v4609_v51 = vld [vmem:[#allocation54_spill] sm:$0xff] }
 0x137   : > { %v959_v42 = vmul.f32 %v4589_v29, %v950_v17  ;;  %v939_v38 = vadd.f32 %v4605_v56, %v4604_v28  ;;  %v951_v54 = vsel %vm3295_vm9, 0.0, %v4607_v22  ;;  %v1010_v5 = vadd.f32 %v3868_v43, %v999_v12  ;;  %v2645_v63 = vld [vmem:[%s2883_s20 + $0xe0] sm:$0xff]  ;;  %v4613_v56 = vld [vmem:[#allocation12_spill] sm:$0xff] }
 0x138   : > { %v1556_v16 = vadd.f32 %v4606_v44, %v1531_v23  ;;  %v1557_v40 = vadd.f32 %v3649_v30, %v1532_v1  ;;  %v1692_v45 = vadd.f32 %v1684_v18, %v1663_v8  ;;  %v1000_v17 = vadd.f32 %v4608_v37, %v983_v11  ;;  %v4610_v18 = vld [vmem:[#allocation10_spill] sm:$0xff]  ;;  %v4611_v11 = vld [vmem:[#allocation16_spill] sm:$0xff]  ;;  %v4617_v37 = vld [vmem:[#allocation21_spill] sm:$0xff] }
 0x139   : > { %v967_v13 = vadd.f32 %v959_v42, %v938_v14  ;;  %v960_v3 = vmul.f32 %v4589_v29, %v951_v54  ;;  %v1623_v30 = vmul.f32 %v3547_v33, %v1614_v61  ;;  %v3877_v1 = vadd.f32 %v3691_v62, %v1724_v32  ;;  %2525 = vmatmul.msk.f32.gmra.mxu2 %vm1022_vm0, %v1010_v5  ;;  %v4612_v32 = vld [vmem:[#allocation45_spill] sm:$0xff]  ;;  %v2646_v5 = vld [vmem:[%s2883_s20 + $0x68] sm:$0xff] }
 0x13a   : > { %v1573_v35 = vadd.f32 %v1565_v57, %v1556_v16  ;;  %v1574_v8 = vadd.f32 %v3749_v58, %v1557_v40  ;;  %v1709_v23 = vadd.f32 %v4609_v51, %v1692_v45  ;;  %v841_v14 = vmul.f32 %v2645_v63, %v4611_v11  ;;  %v4614_v16 = vld [vmem:[#allocation37_spill] sm:$0xff]  ;;  %v4615_v45 = vld [vmem:[#allocation52_spill] sm:$0xff]  ;;  %v4620_v51 = vld [vmem:[#allocation18_spill] sm:$0xff] }
 0x13b   : > { %v984_v10 = vadd.f32 %v4610_v18, %v967_v13  ;;  %v968_v12 = vadd.f32 %v960_v3, %v939_v38  ;;  %v1725_v42 = vadd.f32 %v1717_v47, %v3782_v9  ;;  %v1718_v58 = vmul.f32 %v3659_v46, %v1483_v26  ;;  %v4616_v54 = vld [vmem:[#allocation33_spill] sm:$0xff] }
 0x13c   : > { %v1630_v33 = vadd.f32 %v1622_v48, %v1573_v35  ;;  %v1631_v61 = vadd.f32 %v1623_v30, %v1574_v8  ;;  %v1676_v57 = vsel %vm3027_vm2, 0.0, %v1508_v20  ;;  %v849_v40 = vadd.f32 %v841_v14, %v4614_v16  ;;  %v4618_v35 = vld [vmem:[#allocation47_spill] sm:$0xff] }
 0x13d   : > { %v1001_v28 = vadd.f32 %v4612_v32, %v984_v10  ;;  %v985_v44 = vadd.f32 %v4613_v56, %v968_v12  ;;  %v1656_v38 = vmul.f32 %v3449_v7, %v3785_v49  ;;  %v1726_v47 = vadd.f32 %v1718_v58, %v1709_v23  ;;  %v2647_v56 = vld [vmem:[%s4511_s24 + $0x8] ss:$0 sm:$0xff] }
 0x13e   : > { %v1647_v22 = vadd.f32 %v4615_v45, %v1630_v33  ;;  %v1648_v9 = vadd.f32 %v3643_v34, %v1631_v61  ;;  %v1686_v48 = vmul.f32 %v3574_v2, %v1677_v59  ;;  %v1011_v26 = vadd.f32 %v3868_v43, %v1000_v17  ;;  %v4619_v17 = vld [vmem:[#allocation11_spill] sm:$0xff] }
 0x13f   : > { %v906_v20 = vadd.f32 %v4616_v54, %v849_v40  ;;  %v932_v13 = vmul.f32 %v2646_v5, %v4617_v37  ;;  %v3900_v3 = vadd.f32 %v3691_v62, %v1725_v42  ;;  %v1685_v49 = vmul.f32 %v3574_v2, %v1676_v57 }
 0x140   : > { %v1664_v30 = vadd.f32 %v1656_v38, %v1647_v22  ;;  %v1665_v7 = vadd.f32 %v4618_v35, %v1648_v9  ;;  %v1703_v34 = vmul.f32 %v3466_v0, %v3684_v60  ;;  %v1742_v59 = vadd.f32 %v3798_v15, %v3730_v25 }
 0x141   : > { %v923_v8 = vadd.f32 %v4619_v17, %v906_v20  ;;  %v4621_v23 = vsel %vm3270_vm8, 0.0, %v4620_v51  ;;  %v1745_v10 = vsel %vm1022_vm0, %v3877_v1, 0.0  ;;  %v3917_v2 = vadd.f32 %v3691_v62, %v1726_v47  ;;  %2526 = vmatmul.msk.f32.gmra.mxu2 %vm1022_vm0, %v1011_v26  ;;  %v2648_v26 = vld [vmem:[%s2883_s20 + $0xe8] sm:$0xff]  ;;  %v1763_v51 = vld [vmem:[%s4447_s10] sm:$0x1]  ;;  %s2521_s20 = sshll.u32 %s4496_s29, 6 }
 0x142   : > { %v961_v18 = vmul.f32 %v4589_v29, %v4621_v23  ;;  %v1693_v12 = vadd.f32 %v1685_v49, %v1664_v30  ;;  %v1694_v11 = vadd.f32 %v1686_v48, %v1665_v7  ;;  %v1744_v0 = vadd.f32 %v3821_v39, %v1742_v59  ;;  %v1788_v59 = vld [vmem:[%s4448_s11] sm:$0x3]  ;;  %s4384_s22 = scalar_lea.vmem [#allocation2], %s2521_s20  ;;  %s2451_s20 = scalar_lea.hbm %s4456_s19, %s2589_s23 }
 0x143   : > { %v1719_v60 = vmul.f32 %v3659_v46, %v3713_v52  ;;  %v940_v25 = vadd.f32 %v932_v13, %v923_v8  ;;  %v1747_v15 = vsel %vm1022_vm0, %v3900_v3, 0.0  ;;  %v1720_v29 = vmul.f32 %v3659_v46, %v3726_v41  ;;  %v4622_v46 = vld [vmem:[#allocation17_spill] sm:$0xff]  ;;  %2565 = vmatpush.msk.msra.mxu3 %vm1794_vm10, %v1788_v59  ;;  %s2454_s29 = sshll.u32 %s2451_s20, 4  ;;  %s2455_s29 = int_to_ptr.hbm [resolvable:$true] %s2454_s29 }
 0x144   : > { %v1710_v14 = vadd.f32 %v3652_v31, %v1693_v12  ;;  %v1711_v42 = vadd.f32 %v1703_v34, %v1694_v11  ;;  %v1746_v33 = vadd.f32 %v1745_v10, %v1744_v0  ;;  %v1749_v39 = vsel %vm1022_vm0, %v3917_v2, 0.0  ;;  %v1831_v12 = vld [vmem:[%s4450_s13] sm:$0xff]  ;;  %s2663_s5 = sshra.s32 %s2455_s29, 4  ;;  %s2664_s5 = int_to_ptr.hbm [resolvable:$true] %s2663_s5 }
 0x145   : > { %v969_v61 = vadd.f32 %v961_v18, %v940_v25  ;;  %v1012_v32 = vadd.f32 %v3868_v43, %v1001_v28  ;;  %v994_v16 = vmul.f32 %v2647_v56, %v2645_v63  ;;  %v995_v63 = vmul.f32 %v2648_v26, %v2647_v56  ;;  %1875 = vmatpush.msra.mxu2 %v1831_v12  ;;  %v1789_v11 = vld [vmem:[%s4449_s12] sm:$0x1]  ;;  %s2665_s6 = scalar_lea.hbm %s2664_s5, 64  ;;  %p2670_p0 = scmp.lt.s32.totalorder %s2664_s5, %s4456_s19 }
 0x146   : > { %v1727_v58 = vadd.f32 %v1719_v60, %v1710_v14  ;;  %v1728_v57 = vadd.f32 %v1720_v29, %v1711_v42  ;;  %v1748_v52 = vadd.f32 %v1747_v15, %v1746_v33  ;;  %p2666_p11 = scmp.ne.s32.totalorder %s2664_s5, %s2665_s6  ;;  %p2671_p1 = scmp.lt.s32.totalorder %s2669_s25, %s2665_s6 }
 0x147   : > { %v986_v41 = vadd.f32 %v4622_v46, %v969_v61  ;;  %v1002_v22 = vadd.f32 %v994_v16, %v985_v44 }
 0x148   : > { %v1738_v31 = vadd.f32 %v3691_v62, %v1727_v58  ;;  %v1739_v40 = vadd.f32 %v3691_v62, %v1728_v57  ;;  %v1750_v38 = vadd.f32 %v1749_v39, %v1748_v52  ;;  %p2667_p12 = pnand %p2666_p11, %p2853_p5  ;;  %p2672_p2 = por %p2671_p1, %p2670_p0 }
 0x149   : > { %2527 = vmatmul.msk.f32.gmra.mxu2 %vm1022_vm0, %v1012_v32  ;;  %v1013_v48 = vadd.f32 %v3868_v43, %v1002_v22  ;;  %v1003_v5 = vadd.f32 %v995_v63, %v986_v41 }
 0x14a   : > { %v1751_v45 = vsel %vm1022_vm0, %v1738_v31, 0.0  ;;  %v1753_v28 = vsel %vm1022_vm0, %v1739_v40, 0.0  ;;  %p2668_p13 = pneg %p2667_p12 }
 0x14b   : > { %v1752_v9 = vadd.f32 %v1751_v45, %v1750_v38  ;;  %v1014_v13 = vadd.f32 %v3868_v43, %v1003_v5 }
 0x14c   : > { %p2673_p3 = pnand %p2672_p2, %p2668_p13 }
 0x14d   : > { %v1754_v47 = vadd.f32 %v1753_v28, %v1752_v9 }
 0x14f   : > { %v1755_v54 = vrot.slane %v1754_v47, 4 }
 0x151   : > { %v1756_v20 = vadd.f32 %v1755_v54, %v1754_v47  ;;  %2528 = vmatmul.msk.f32.gmra.mxu2 %vm1022_vm0, %v1013_v48 }
 0x153   : > { %v1757_v62 = vrot.slane %v1756_v20, 2 }
 0x155   : > { %v1758_v37 = vadd.f32 %v1757_v62, %v1756_v20 }
 0x157   : > { %v1759_v30 = vrot.slane %v1758_v37, 1 }
 0x159   : > { %2529 = vmatmul.msk.f32.gmra.mxu2 %vm1022_vm0, %v1014_v13  ;;  %v1760_v44 = vadd.f32 %v1759_v30, %v1758_v37 }
 0x15b   : > { %v1761_v35 = vmul.f32 0.015625, %v1760_v44 }
 0x161   : > { %2564 = vmatmul.msk.f32.vlgmr.msrb.gmra.mxu2 %vm1022_vm0, %v1761_v35 }
 0x1b3   : > { %v3946_v7 = vpop.f32.mrf.mxu2 }
 0x1bc   : > { %v3948_v49 = vpop.f32.mrf.mxu2 }
 0x1c4   : > { %v3950_v34 = vpop.f32.mrf.mxu2 }
 0x1cc   : > { %v3955_v43 = vpop.f32.mrf.mxu2 }
 0x1d4   : > { %v3957_v17 = vpop.f32.mrf.mxu2 }
 0x1dc   : > { %v3959_v8 = vpop.f32.mrf.mxu2 }
 0x1e4   : > { %v1784_v23 = vpop.f32.mrf.mxu2 }
 0x1e5   : > { %v1785_v18 = vadd.f32 %v1784_v23, %v1763_v51 }
 0x1e7   : > { %v1787_v10 = vmax.f32 %v1785_v18, 0.0 }
 0x1e9   : > { %2566 = vmatmul.msk.f32.vlgmr.msra.gmra.mxu3 %vm1790_vm11, %v1787_v10 }
 0x26c   : > { %v1815_v0 = vpop.f32.mrf.mxu3 }
 0x26d   : > { %v1816_v60 = vadd.f32 %v1815_v0, %v1789_v11 }
 0x26f   : > { %v1818_v25 = vadd.f32 3.0, %v1816_v60 }
 0x271   : > { %v1819_v15 = vmax.f32 %v1818_v25, 0.0 }
 0x273   : > { %v1820_v29 = vmin.f32 %v1819_v15, 6.0 }
 0x275   : > { %v1821_v14 = vmul.f32 0.16666667, %v1820_v29 }
 0x277   : > { %v1822_v42 = vperm.slane %v1821_v14, 0 }
 0x279   : > { %v1823_v33 = vmul.f32 %v1822_v42, %v3710_v27  ;;  %v1824_v61 = vmul.f32 %v1822_v42, %v3743_v21  ;;  %v1825_v58 = vmul.f32 %v1822_v42, %v3794_v55  ;;  %v1826_v39 = vmul.f32 %v1822_v42, %v3877_v1  ;;  %v2640_v55 = vld [vmem:[%s4451_s14] ss:$0 sm:$0xff] }
 0x27a   : > { %v1827_v57 = vmul.f32 %v1822_v42, %v3900_v3  ;;  %v1828_v27 = vmul.f32 %v1822_v42, %v3917_v2  ;;  %v1829_v52 = vmul.f32 %v1822_v42, %v1738_v31  ;;  %v1830_v21 = vmul.f32 %v1822_v42, %v1739_v40 }
 0x27b   : > { %2567 = vmatmul.msk.f32.vlgmr.msra.gmra.mxu2 %vm1022_vm0, %v1823_v33 }
 0x283   : > { %2568 = vmatmul.msk.f32.gmra.mxu2 %vm1022_vm0, %v1824_v61 }
 0x28b   : > { %2569 = vmatmul.msk.f32.gmra.mxu2 %vm1022_vm0, %v1825_v58 }
 0x293   : > { %2570 = vmatmul.msk.f32.gmra.mxu2 %vm1022_vm0, %v1826_v39 }
 0x29b   : > { %2571 = vmatmul.msk.f32.gmra.mxu2 %vm1022_vm0, %v1827_v57 }
 0x2a3   : > { %2572 = vmatmul.msk.f32.gmra.mxu2 %vm1022_vm0, %v1828_v27 }
 0x2ab   : > { %2573 = vmatmul.msk.f32.gmra.mxu2 %vm1022_vm0, %v1829_v52 }
 0x2b3   : > { %2574 = vmatmul.msk.f32.gmra.mxu2 %vm1022_vm0, %v1830_v21 }
 0x2fe   : > { %v1877_v1 = vpop.f32.mrf.mxu2 }
 0x2ff   : > { %v1878_v32 = vadd.f32 %v2640_v55, %v1877_v1 }
 0x301   : > { %v1901_v56 = vadd.f32 3.0, %v1878_v32 }
 0x303   : > { %v1909_v3 = vmax.f32 %v1901_v56, 0.0 }
 0x305   : > { %v1917_v16 = vmin.f32 %v1909_v3, 6.0 }
 0x306   : > { %v1880_v46 = vpop.f32.mrf.mxu2 }
 0x307   : > { %v1881_v41 = vadd.f32 %v2640_v55, %v1880_v46  ;;  %v1925_v2 = vmul.f32 %v1917_v16, %v1878_v32 }
 0x309   : > { %v1902_v38 = vadd.f32 3.0, %v1881_v41  ;;  %v1933_v45 = vmul.f32 0.16666667, %v1925_v2 }
 0x30b   : > { %v1910_v31 = vmax.f32 %v1902_v38, 0.0  ;;  %1949 = vrot.lane.b32.xlu0 %v1933_v45, %s4495_s27  ;;  %v4624_v45 = vld [vmem:[#allocation48_spill] sm:$0xff] }
 0x30d   : > { %v1918_v40 = vmin.f32 %v1910_v31, 6.0 }
 0x30e   : > { %v1883_v22 = vpop.f32.mrf.mxu2 }
 0x30f   : > { %v1926_v9 = vmul.f32 %v1918_v40, %v1881_v41  ;;  %v1884_v28 = vadd.f32 %v2640_v55, %v1883_v22  ;;  %v2639_v41 = vld [vmem:[%s4623_s4] ss:$0 sm:$0xff]  ;;  %s2440_s4 = scalar_lea.sflag [#allocation3], %s4660_s1 }
 0x310   : > { %v1065_v2 = vadd.f32 %v2639_v41, %v3946_v7  ;;  %v1083_v31 = vadd.f32 %v2639_v41, %v4624_v45  ;;  %v1068_v40 = vadd.f32 %v2639_v41, %v3948_v49  ;;  %v1071_v22 = vadd.f32 %v2639_v41, %v3950_v34 }
 0x311   : > { %v1934_v47 = vmul.f32 0.16666667, %v1926_v9  ;;  %v1903_v48 = vadd.f32 3.0, %v1884_v28  ;;  %v1077_v9 = vadd.f32 %v2639_v41, %v3957_v17 }
 0x312   : > { %v1088_v38 = vadd.f32 3.0, %v1065_v2 }
 0x313   : > { %v1911_v26 = vmax.f32 %v1903_v48, 0.0  ;;  %1951 = vrot.lane.b32.xlu0 %v1934_v47, %s4495_s27  ;;  %v1080_v47 = vadd.f32 %v2639_v41, %v3959_v8  ;;  %v1094_v48 = vadd.f32 3.0, %v1083_v31 }
 0x315   : > { %v1919_v63 = vmin.f32 %v1911_v26, 6.0 }
 0x316   : > { %v1886_v54 = vpop.f32.mrf.mxu2 }
 0x317   : > { %v1887_v20 = vadd.f32 %v2640_v55, %v1886_v54  ;;  %v1927_v5 = vmul.f32 %v1919_v63, %v1884_v28  ;;  %v1074_v28 = vadd.f32 %v2639_v41, %v3955_v43  ;;  %v1089_v63 = vadd.f32 3.0, %v1068_v40  ;;  %v1981_v43 = vld [vmem:[%s4452_s15] sm:$0xff] }
 0x318   : > { %v1090_v54 = vadd.f32 3.0, %v1071_v22  ;;  %v4011_v8 = vperm.slane %v1981_v43, 0  ;;  %v4033_v45 = vperm.slane %v1981_v43, 3 }
 0x319   : > { %v1904_v62 = vadd.f32 3.0, %v1887_v20  ;;  %v1935_v37 = vmul.f32 0.16666667, %v1927_v5  ;;  %v1091_v7 = vadd.f32 3.0, %v1074_v28  ;;  %v1093_v5 = vadd.f32 3.0, %v1080_v47 }
 0x31a   : > { %v1098_v34 = vmax.f32 %v1090_v54, 0.0 }
 0x31b   : > { %v1912_v13 = vmax.f32 %v1904_v62, 0.0  ;;  %1953 = vrot.lane.b32.xlu1 %v1935_v37, %s4495_s27  ;;  %v1102_v62 = vmax.f32 %v1094_v48, 0.0  ;;  %v4625_v37 = vld [vmem:[#allocation49_spill] sm:$0xff] }
 0x31d   : > { %v1920_v30 = vmin.f32 %v1912_v13, 6.0  ;;  %v4006_v13 = vadd.f32 %v2639_v41, %v4625_v37 }
 0x31e   : > { %v1889_v44 = vpop.f32.mrf.mxu2 }
 0x31f   : > { %v1928_v35 = vmul.f32 %v1920_v30, %v1887_v20  ;;  %v1890_v59 = vadd.f32 %v2640_v55, %v1889_v44  ;;  %v1092_v20 = vadd.f32 3.0, %v1077_v9  ;;  %v1097_v30 = vmax.f32 %v1089_v63, 0.0 }
 0x320   : > { %v1099_v44 = vmax.f32 %v1091_v7, 0.0 }
 0x321   : > { %v1936_v51 = vmul.f32 0.16666667, %v1928_v35  ;;  %v1905_v23 = vadd.f32 3.0, %v1890_v59  ;;  %v1100_v17 = vmax.f32 %v1092_v20, 0.0  ;;  %v1101_v35 = vmax.f32 %v1093_v5, 0.0 }
 0x323   : > { %v1913_v18 = vmax.f32 %v1905_v23, 0.0  ;;  %1955 = vrot.lane.b32.xlu1 %v1936_v51, %s4495_s27  ;;  %v4013_v51 = vperm.slane %v1981_v43, 1  ;;  %v1095_v23 = vadd.f32 3.0, %v4006_v13 }
 0x325   : > { %v1921_v10 = vmin.f32 %v1913_v18, 6.0 }
 0x326   : > { %v1892_v12 = vpop.f32.mrf.mxu2 }
 0x327   : > { %v1893_v11 = vadd.f32 %v2640_v55, %v1892_v12  ;;  %v1929_v0 = vmul.f32 %v1921_v10, %v1890_v59  ;;  %v1110_v59 = vmin.f32 %v1102_v62, 6.0  ;;  %v1105_v10 = vmin.f32 %v1097_v30, 6.0 }
 0x328   : > { %v1106_v12 = vmin.f32 %v1098_v34, 6.0  ;;  %v4052_v34 = vperm.slane %v1981_v43, 7 }
 0x329   : > { %v1906_v60 = vadd.f32 3.0, %v1893_v11  ;;  %v1937_v25 = vmul.f32 0.16666667, %v1929_v0  ;;  %v2020_v0 = vmul.f32 0.0, %v4011_v8 }
 0x32b   : > { %v1914_v15 = vmax.f32 %v1906_v60, 0.0  ;;  %1957 = vrot.lane.b32.xlu2 %v1937_v25, %s4495_s27  ;;  %v2037_v60 = vmul.f32 0.0, %v4013_v51 }
 0x32d   : > { %v1922_v29 = vmin.f32 %v1914_v15, 6.0  ;;  %v1107_v15 = vmin.f32 %v1099_v44, 6.0  ;;  %v2320_v44 = vld [vmem:[%s4454_s17 + $0x8] sm:$0xff] }
 0x32e   : > { %v1895_v14 = vpop.f32.mrf.mxu2  ;;  %2364 = vmatpush.msrb.mxu3 %v2320_v44 }
 0x32f   : > { %v1930_v42 = vmul.f32 %v1922_v29, %v1893_v11  ;;  %v1896_v33 = vadd.f32 %v2640_v55, %v1895_v14  ;;  %v1108_v11 = vmin.f32 %v1100_v17, 6.0  ;;  %v1109_v29 = vmin.f32 %v1101_v35, 6.0  ;;  %v2319_v35 = vld [vmem:[%s4454_s17] sm:$0xff] }
 0x330   : > { %2365 = vmatpush.msrb.mxu3 %v2319_v35 }
 0x331   : > { %v1938_v61 = vmul.f32 0.16666667, %v1930_v42  ;;  %v1907_v58 = vadd.f32 3.0, %v1896_v33  ;;  %v4626_v42 = vld [vmem:[#allocation13_spill] sm:$0xff]  ;;  %v1117_v41 = vmul.f32 %v1109_v29, %v1080_v47  ;;  %v4042_v47 = vperm.slane %v1981_v43, 4 }
 0x333   : > { %v1915_v39 = vmax.f32 %v1907_v58, 0.0  ;;  %1959 = vrot.lane.b32.xlu2 %v1938_v61, %s4495_s27  ;;  %v4025_v58 = vperm.slane %v1981_v43, 2  ;;  %v1125_v62 = vmul.f32 0.16666667, %v1117_v41 }
 0x335   : > { %v1923_v57 = vmin.f32 %v1915_v39, 6.0 }
 0x336   : > { %v1898_v27 = vpop.f32.mrf.mxu2 }
 0x337   : > { %v1931_v52 = vmul.f32 %v1923_v57, %v1896_v33  ;;  %v1899_v21 = vadd.f32 %v2640_v55, %v1898_v27  ;;  %v1096_v55 = vmax.f32 %v1088_v38, 0.0  ;;  %v4627_v33 = vand.u32 7, %v4626_v42 }
 0x338   : > { %v1118_v27 = vmul.f32 %v1110_v59, %v1083_v31  ;;  %v4631_v59 = vld [vmem:[#allocation24_spill] sm:$0xff] }
 0x339   : > { %v1939_v1 = vmul.f32 0.16666667, %v1931_v52  ;;  %v1908_v32 = vadd.f32 3.0, %v1899_v21  ;;  %v1104_v26 = vmin.f32 %v1096_v55, 6.0  ;;  %vm4021_vm13 = vcmp.eq.s32.totalorder %v4627_v33, 7 }
 0x33a   : > { %v1103_v52 = vmax.f32 %v1095_v23, 0.0  ;;  %v4036_v55 = vmul.f32 0.16666667, %v1118_v27  ;;  %v4632_v23 = vand.u32 7, %v4631_v59 }
 0x33b   : > { %v1916_v56 = vmax.f32 %v1908_v32, 0.0  ;;  %1961 = vrot.lane.b32.xlu0 %v1939_v1, %s4495_s27  ;;  %v1112_v49 = vmul.f32 %v1104_v26, %v1065_v2  ;;  %v1114_v1 = vmul.f32 %v1106_v12, %v1071_v22  ;;  %v1116_v32 = vmul.f32 %v1108_v11, %v1077_v9 }
 0x33c   : > { %vm4065_vm14 = vcmp.eq.s32.totalorder %v4632_v23, 7  ;;  %v4071_v12 = vperm.slane %v1981_v43, 6 }
 0x33d   : > { %v1924_v3 = vmin.f32 %v1916_v56, 6.0  ;;  %v1120_v18 = vmul.f32 0.16666667, %v1112_v49  ;;  %v2045_v56 = vadd.f32 %v2037_v60, %v2020_v0  ;;  %v1122_v7 = vmul.f32 0.16666667, %v1114_v1 }
 0x33f   : > { %v1932_v16 = vmul.f32 %v1924_v3, %v1899_v21  ;;  %v1113_v21 = vmul.f32 %v1105_v10, %v1068_v40  ;;  %v4038_v40 = vmin.f32 %v1103_v52, 6.0  ;;  %v4069_v10 = vperm.slane %v1981_v43, 5 }
 0x341   : > { %v1940_v46 = vmul.f32 0.16666667, %v1932_v16  ;;  %v1121_v22 = vmul.f32 0.16666667, %v1113_v21 }
 0x343   : > { %1963 = vrot.lane.b32.xlu1 %v1940_v46, %s4495_s27  ;;  %v1115_v46 = vmul.f32 %v1107_v15, %v1074_v28  ;;  %v1124_v28 = vmul.f32 0.16666667, %v1116_v32  ;;  %s2452_s27 = sshll.u32 %s4384_s22, 4  ;;  %s2453_s27 = int_to_ptr.vmem [resolvable:$true] %s2452_s27 }
 0x345   : > { %v4045_v5 = vmul.f32 0.16666667, %v1115_v46 }
 0x37d   : > { %v1950_v25 = vpop.permute.xlu0 %1949 }
 0x37e   : > { %v1973_v14 = vsel %vm1022_vm0, %v1120_v18, %v1950_v25 }
 0x37f   : > { %v1991_v39 = vrot.slane %v1973_v14, 7  ;;  %v2055_v57 = vrot.slane %v1973_v14, 1  ;;  %v2038_v49 = vmul.f32 %v4013_v51, %v1973_v14  ;;  %v2157_v25 = vmul.f32 %v4042_v47, %v1973_v14 }
 0x381   : > { %v2011_v3 = vsel %vm748_vm1, 0.0, %v1991_v39  ;;  %v2078_v16 = vsel %vm2054_vm12, 0.0, %v2055_v57 }
 0x382   : > { %v2012_v2 = vsel %vm3137_vm5, 0.0, %v2011_v3  ;;  %v2103_v38 = vsel %vm4021_vm13, 0.0, %v2078_v16  ;;  %v2131_v48 = vsel %vm3093_vm4, 0.0, %v2011_v3  ;;  %v4635_v3 = vld [vmem:[#allocation26_spill] sm:$0xff] }
 0x383   : > { %v2112_v31 = vmul.f32 %v4025_v58, %v2103_v38  ;;  %v2021_v26 = vmul.f32 %v4011_v8, %v2012_v2  ;;  %v2140_v30 = vmul.f32 %v4033_v45, %v2131_v48  ;;  %v4636_v16 = vand.u32 7, %v4635_v3 }
 0x385   : > { %v2120_v63 = vadd.f32 %v2112_v31, %v2045_v56  ;;  %v1958_v54 = vpop.permute.xlu2 %1957  ;;  %v1952_v20 = vpop.permute.xlu0 %1951  ;;  %v2046_v0 = vadd.f32 %v2038_v49, %v2021_v26  ;;  %vm4099_vm15 = vcmp.eq.s32.totalorder %v4636_v16, 7  ;;  %v4639_v16 = vld [vmem:[#allocation27_spill] sm:$0xff] }
 0x386   : > { %v4048_v37 = vsel %vm1022_vm0, %v1121_v22, %v1952_v20  ;;  %v4055_v17 = vsel %vm1022_vm0, %v1124_v28, %v1958_v54 }
 0x387   : > { %v1992_v11 = vrot.slane %v4048_v37, 7  ;;  %v2148_v60 = vadd.f32 %v2140_v30, %v2120_v63  ;;  %v2056_v15 = vrot.slane %v4048_v37, 1  ;;  %v1998_v29 = vrot.slane %v4055_v17, 7 }
 0x388   : > { %v4079_v42 = vmul.f32 %v4013_v51, %v4055_v17  ;;  %v2062_v33 = vrot.slane %v4055_v17, 1  ;;  %v2039_v52 = vmul.f32 %v4013_v51, %v4048_v37  ;;  %v4105_v41 = vmul.f32 %v4042_v47, %v4055_v17 }
 0x389   : > { %v1993_v43 = vsel %vm748_vm1, %v1991_v39, %v1992_v11  ;;  %v2057_v14 = vsel %vm2054_vm12, %v2055_v57, %v2056_v15  ;;  %v2165_v57 = vadd.f32 %v2157_v25, %v2148_v60  ;;  %v4118_v30 = vmul.f32 %v4052_v34, %v4055_v17 }
 0x38a   : > { %v2013_v27 = vsel %vm3197_vm6, 0.0, %v1993_v43  ;;  %v2132_v21 = vsel %vm3137_vm5, 0.0, %v1993_v43  ;;  %v2104_v32 = vsel %vm4065_vm14, 0.0, %v2057_v14  ;;  %v2175_v39 = vsel %vm4021_vm13, 0.0, %v2057_v14 }
 0x38b   : > { %v2022_v1 = vmul.f32 %v4011_v8, %v2013_v27  ;;  %v2202_v56 = vsel %vm3093_vm4, 0.0, %v1993_v43  ;;  %v2113_v2 = vmul.f32 %v4025_v58, %v2104_v32  ;;  %v2184_v38 = vmul.f32 %v4069_v10, %v2175_v39  ;;  %v4156_v32 = vld [vmem:[%s4452_s15 + $0x8] ss:$0 sm:$0xff] }
 0x38c   : > { %v2141_v9 = vmul.f32 %v4033_v45, %v2132_v21  ;;  %v2211_v20 = vmul.f32 %v4071_v12, %v2202_v56  ;;  %v2158_v44 = vmul.f32 %v4042_v47, %v4048_v37 }
 0x38d   : > { %v1960_v31 = vpop.permute.xlu2 %1959  ;;  %v1954_v22 = vpop.permute.xlu1 %1953  ;;  %v2047_v48 = vadd.f32 %v2039_v52, %v2022_v1  ;;  %v2121_v63 = vadd.f32 %v2113_v2, %v2046_v0  ;;  %v2192_v54 = vadd.f32 %v2184_v38, %v2165_v57  ;;  %v4640_v57 = vand.u32 7, %v4639_v16  ;;  %v4643_v38 = vld [vmem:[#allocation30_spill] sm:$0xff] }
 0x38e   : > { %v4111_v28 = vsel %vm1022_vm0, %v1125_v62, %v1960_v31  ;;  %v1975_v26 = vsel %vm1022_vm0, %v1122_v7, %v1954_v22  ;;  %v2228_v7 = vmul.f32 %v4052_v34, %v4048_v37  ;;  %v4644_v31 = vand.u32 7, %v4643_v38 }
 0x38f   : > { %v2000_v49 = vrot.slane %v4111_v28, 7  ;;  %v4494_v35 = vrot.slane %v4111_v28, 1  ;;  %v1994_v59 = vrot.slane %v1975_v26, 7  ;;  %v2149_v62 = vadd.f32 %v2141_v9, %v2121_v63 }
 0x390   : > { %v2219_v23 = vadd.f32 %v2211_v20, %v2192_v54  ;;  %v2043_v25 = vmul.f32 %v4013_v51, %v4111_v28  ;;  %v4146_v43 = vmul.f32 %v4042_v47, %v4111_v28  ;;  %v2040_v21 = vmul.f32 %v4013_v51, %v1975_v26 }
 0x391   : > { %v4130_v0 = vsel %vm748_vm1, %v1998_v29, %v2000_v49  ;;  %v4142_v37 = vsel %vm2054_vm12, %v2062_v33, %v4494_v35  ;;  %v2166_v27 = vadd.f32 %v2158_v44, %v2149_v62  ;;  %v1995_v39 = vsel %vm748_vm1, %v1992_v11, %v1994_v59 }
 0x392   : > { %v2017_v60 = vsel %vm3027_vm2, 0.0, %v4130_v0  ;;  %v2236_v52 = vadd.f32 %v2228_v7, %v2219_v23  ;;  %v2136_v1 = vsel %vm3270_vm8, 0.0, %v4130_v0  ;;  %v2058_v56 = vrot.slane %v1975_v26, 1 }
 0x393   : > { %v2026_v14 = vmul.f32 %v4011_v8, %v2017_v60  ;;  %v2159_v3 = vmul.f32 %v4042_v47, %v1975_v26  ;;  %vm4162_vm4 = vcmp.eq.s32.totalorder %v4640_v57, 7  ;;  %vm4168_vm10 = vcmp.eq.s32.totalorder %v4644_v31, 7 }
 0x394   : > { %v2014_v11 = vsel %vm3243_vm7, 0.0, %v1995_v39  ;;  %v2133_v63 = vsel %vm3197_vm6, 0.0, %v1995_v39  ;;  %v2229_v54 = vmul.f32 %v4052_v34, %v1975_v26  ;;  %v2059_v62 = vsel %vm2054_vm12, %v2056_v15, %v2058_v56 }
 0x395   : > { %v4172_v9 = vadd.f32 %v2043_v25, %v2026_v14  ;;  %v1956_v20 = vpop.permute.xlu1 %1955  ;;  %v2023_v44 = vmul.f32 %v4011_v8, %v2014_v11  ;;  %v2142_v23 = vmul.f32 %v4033_v45, %v2133_v63  ;;  %v2203_v7 = vsel %vm3137_vm5, 0.0, %v1995_v39  ;;  %v4647_v63 = vld [vmem:[#allocation28_spill] sm:$0xff] }
 0x396   : > { %v2105_v60 = vsel %vm4099_vm15, 0.0, %v2059_v62  ;;  %v2176_v25 = vsel %vm4065_vm14, 0.0, %v2059_v62  ;;  %v2244_v14 = vsel %vm4021_vm13, 0.0, %v2059_v62  ;;  %v1976_v26 = vsel %vm1022_vm0, %v4045_v5, %v1956_v20 }
 0x397   : > { %v2048_v16 = vadd.f32 %v2040_v21, %v2023_v44  ;;  %v2114_v15 = vmul.f32 %v4025_v58, %v2105_v60  ;;  %v2185_v57 = vmul.f32 %v4069_v10, %v2176_v25  ;;  %v2252_v4 = vmul.f32 %v4156_v32, %v2244_v14 }
 0x398   : > { %v2212_v39 = vmul.f32 %v4071_v12, %v2203_v7  ;;  %v1996_v38 = vrot.slane %v1976_v26, 7  ;;  %v2041_v31 = vmul.f32 %v4013_v51, %v1976_v26  ;;  %v2060_v11 = vrot.slane %v1976_v26, 1 }
 0x399   : > { %v4648_v35 = vand.u32 7, %v4647_v63  ;;  %v2122_v5 = vadd.f32 %v2114_v15, %v2047_v48  ;;  %v2193_v21 = vadd.f32 %v2185_v57, %v2166_v27  ;;  %v2160_v20 = vmul.f32 %v4042_v47, %v1976_v26 }
 0x39a   : > { %v2260_v44 = vadd.f32 %v2252_v4, %v2236_v52  ;;  %v1997_v62 = vsel %vm748_vm1, %v1994_v59, %v1996_v38  ;;  %v1999_v7 = vsel %vm748_vm1, %v1996_v38, %v1998_v29  ;;  %v2061_v60 = vsel %vm2054_vm12, %v2058_v56, %v2060_v11 }
 0x39b   : > { %vm4199_vm5 = vcmp.eq.s32.totalorder %v4648_v35, 7  ;;  %v2063_v35 = vsel %vm2054_vm12, %v2060_v11, %v2062_v33  ;;  %v2150_v25 = vadd.f32 %v2142_v23, %v2122_v5  ;;  %v2220_v14 = vadd.f32 %v2212_v39, %v2193_v21  ;;  %v4232_v11 = vld [vmem:[%s4453_s16] ss:$0 sm:$0xff] }
 0x39c   : > { %v2015_v48 = vsel %vm3295_vm9, 0.0, %v1997_v62  ;;  %v2016_v27 = vsel %vm3270_vm8, 0.0, %v1999_v7  ;;  %v2106_v29 = vsel %vm4162_vm4, 0.0, %v2061_v60  ;;  %v2107_v17 = vsel %vm4168_vm10, 0.0, %v2063_v35 }
 0x39d   : > { %v2024_v59 = vmul.f32 %v4011_v8, %v2015_v48  ;;  %v2025_v52 = vmul.f32 %v4011_v8, %v2016_v27  ;;  %v2167_v56 = vadd.f32 %v2159_v3, %v2150_v25  ;;  %v2237_v33 = vadd.f32 %v2229_v54, %v2220_v14 }
 0x39e   : > { %v2115_v23 = vmul.f32 %v4025_v58, %v2106_v29  ;;  %v2116_v15 = vmul.f32 %v4025_v58, %v2107_v17  ;;  %v2134_v39 = vsel %vm3243_vm7, 0.0, %v1997_v62  ;;  %v2135_v38 = vsel %vm3295_vm9, 0.0, %v1999_v7 }
 0x39f   : > { %v2049_v57 = vadd.f32 %v2041_v31, %v2024_v59  ;;  %v2050_v4 = vadd.f32 %v4079_v42, %v2025_v52  ;;  %v2143_v54 = vmul.f32 %v4033_v45, %v2134_v39  ;;  %v2144_v63 = vmul.f32 %v4033_v45, %v2135_v38 }
 0x3a0   : > { %v2123_v3 = vadd.f32 %v2115_v23, %v2048_v16  ;;  %v2177_v31 = vsel %vm4099_vm15, 0.0, %v2061_v60  ;;  %v2178_v5 = vsel %vm4162_vm4, 0.0, %v2063_v35  ;;  %v2204_v25 = vsel %vm3197_vm6, 0.0, %v1997_v62 }
 0x3a1   : > { %v2124_v42 = vadd.f32 %v2116_v15, %v2049_v57  ;;  %v2186_v21 = vmul.f32 %v4069_v10, %v2177_v31  ;;  %v2187_v48 = vmul.f32 %v4069_v10, %v2178_v5  ;;  %v2213_v16 = vmul.f32 %v4071_v12, %v2204_v25 }
 0x3a2   : > { %v2151_v14 = vadd.f32 %v2143_v54, %v2123_v3  ;;  %v2230_v27 = vmul.f32 %v4052_v34, %v1976_v26  ;;  %v2271_v29 = vadd.f32 %v4232_v11, %v2260_v44  ;;  %v2245_v17 = vsel %vm4065_vm14, 0.0, %v2061_v60 }
 0x3a3   : > { %v2152_v59 = vadd.f32 %v2144_v63, %v2124_v42  ;;  %v2194_v52 = vadd.f32 %v2186_v21, %v2167_v56  ;;  %v2205_v15 = vsel %vm3243_vm7, 0.0, %v1999_v7  ;;  %v2253_v6 = vmul.f32 %v4156_v32, %v2245_v17 }
 0x3a4   : > { %v2168_v23 = vadd.f32 %v2160_v20, %v2151_v14  ;;  %v2108_v62 = vsel %vm4199_vm5, 0.0, %v4142_v37  ;;  %v2279_v39 = vadd.f32 3.0, %v2271_v29  ;;  %v2145_v18 = vmul.f32 %v4033_v45, %v2136_v1 }
 0x3a5   : > { %v2169_v57 = vadd.f32 %v4105_v41, %v2152_v59  ;;  %v2221_v26 = vadd.f32 %v2213_v16, %v2194_v52  ;;  %v2117_v56 = vmul.f32 %v4025_v58, %v2108_v62  ;;  %v2261_v20 = vadd.f32 %v2253_v6, %v2237_v33 }
 0x3a6   : > { %v2195_v24 = vadd.f32 %v2187_v48, %v2168_v23  ;;  %v2246_v44 = vsel %vm4099_vm15, 0.0, %v2063_v35  ;;  %v2287_v60 = vmax.f32 %v2279_v39, 0.0  ;;  %v2214_v54 = vmul.f32 %v4071_v12, %v2205_v15 }
 0x3a7   : > { %v2238_v7 = vadd.f32 %v2230_v27, %v2221_v26  ;;  %v2125_v38 = vadd.f32 %v2117_v56, %v2050_v4  ;;  %v2254_v41 = vmul.f32 %v4156_v32, %v2246_v44  ;;  %v2272_v3 = vadd.f32 %v4232_v11, %v2261_v20 }
 0x3a8   : > { %v2247_v63 = vsel %vm4162_vm4, 0.0, %v4142_v37  ;;  %v2179_v1 = vsel %vm4168_vm10, 0.0, %v4142_v37  ;;  %v2206_v46 = vsel %vm3295_vm9, 0.0, %v4130_v0  ;;  %v2295_v35 = vmin.f32 %v2287_v60, 6.0 }
 0x3a9   : > { %v2153_v33 = vadd.f32 %v2145_v18, %v2125_v38  ;;  %v2262_v4 = vadd.f32 %v2254_v41, %v2238_v7  ;;  %vm2325_vm6 = vcmask 130048   ;;  %v2280_v31 = vadd.f32 3.0, %v2272_v3 }
 0x3aa   : > { %v2222_v42 = vadd.f32 %v2214_v54, %v2195_v24  ;;  %v2188_v5 = vmul.f32 %v4069_v10, %v2179_v1  ;;  %v2303_v21 = vmul.f32 %v2295_v35, %v2271_v29  ;;  %v2255_v14 = vmul.f32 %v4156_v32, %v2247_v63 }
 0x3ab   : > { %v2170_v2 = vadd.f32 %v4146_v43, %v2153_v33  ;;  %v2273_v25 = vadd.f32 %v4232_v11, %v2262_v4  ;;  %v2288_v37 = vmax.f32 %v2280_v31, 0.0  ;;  %v2215_v0 = vmul.f32 %v4071_v12, %v2206_v46  ;;  %v4656_v4 = vld [vmem:[#allocation14_spill] sm:$0xff] }
 0x3ac   : > { %v2239_v48 = vadd.f32 %v4118_v30, %v2222_v42  ;;  %v2196_v50 = vadd.f32 %v2188_v5, %v2169_v57  ;;  %v1119_v16 = vmul.f32 %v4038_v40, %v4006_v13  ;;  %v2311_v27 = vmul.f32 0.16666667, %v2303_v21  ;;  %v4651_v30 = vld [vmem:[#allocation15_spill] sm:$0xff] }
 0x3ad   : > { %v1962_v59 = vpop.permute.xlu0 %1961  ;;  %v2281_v52 = vadd.f32 3.0, %v2273_v25  ;;  %v2296_v17 = vmin.f32 %v2288_v37, 6.0  ;;  %v2232_v15 = vmul.f32 %v4052_v34, %v4111_v28  ;;  %v4652_v6 = vand.u32 7, %v4651_v30 }
 0x3ae   : > { %v1979_v43 = vsel %vm1022_vm0, %v4036_v55, %v1962_v59  ;;  %v2263_v29 = vadd.f32 %v2255_v14, %v2239_v48  ;;  %v2223_v23 = vadd.f32 %v2215_v0, %v2196_v50  ;;  %2575 = vmatmul.msk.f32.vlgmr.msrb.gmra.mxu3 %vm2325_vm6, %v2311_v27  ;;  %v1127_v55 = vmul.f32 0.16666667, %v1119_v16 }
 0x3af   : > { %vm4291_vm7 = vcmp.eq.s32.totalorder %v4652_v6, 7  ;;  %v2002_v13 = vrot.slane %v1979_v43, 7  ;;  %v2066_v40 = vrot.slane %v1979_v43, 1  ;;  %v2304_v57 = vmul.f32 %v2296_v17, %v2272_v3 }
 0x3b0   : > { %v2289_v26 = vmax.f32 %v2281_v52, 0.0  ;;  %v4296_v39 = vadd.f32 %v4232_v11, %v2263_v29  ;;  %v4655_v18 = vrot.slane %v4111_v28, 1  ;;  %v2240_v20 = vadd.f32 %v2232_v15, %v2223_v23 }
 0x3b1   : > { %v2003_v56 = vsel %vm748_vm1, %v2000_v49, %v2002_v13  ;;  %v2044_v7 = vmul.f32 %v4013_v51, %v1979_v43  ;;  %v2312_v41 = vmul.f32 0.16666667, %v2304_v57  ;;  %v2163_v5 = vmul.f32 %v4042_v47, %v1979_v43 }
 0x3b2   : > { %v2067_v24 = vsel %vm2054_vm12, %v4655_v18, %v2066_v40  ;;  %v2018_v44 = vsel %vm3044_vm3, 0.0, %v2003_v56  ;;  %v2137_v38 = vsel %vm3027_vm2, 0.0, %v2003_v56  ;;  %v2207_v63 = vsel %vm3270_vm8, 0.0, %v2003_v56 }
 0x3b3   : > { %v2109_v60 = vsel %vm4291_vm7, 0.0, %v2067_v24  ;;  %v2027_v3 = vmul.f32 %v4011_v8, %v2018_v44  ;;  %v2180_v28 = vsel %vm4199_vm5, 0.0, %v2067_v24  ;;  %v2297_v51 = vmin.f32 %v2289_v26, 6.0 }
 0x3b4   : > { %v2118_v49 = vmul.f32 %v4025_v58, %v2109_v60  ;;  %v2189_v54 = vmul.f32 %v4069_v10, %v2180_v28  ;;  %v2282_v1 = vadd.f32 3.0, %v4296_v39  ;;  %v2146_v33 = vmul.f32 %v4033_v45, %v2137_v38 }
 0x3b5   : > { %v2052_v46 = vadd.f32 %v2044_v7, %v2027_v3  ;;  %v4657_v8 = vand.u32 7, %v4656_v4  ;;  %v1964_v42 = vpop.permute.xlu1 %1963  ;;  %v2216_v53 = vmul.f32 %v4071_v12, %v2207_v63  ;;  %v2233_v16 = vmul.f32 %v4052_v34, %v1979_v43 }
 0x3b6   : > { %v2126_v35 = vadd.f32 %v2118_v49, %v4172_v9  ;;  %v2197_v21 = vadd.f32 %v2189_v54, %v2170_v2  ;;  %v1980_v14 = vsel %vm1022_vm0, %v1127_v55, %v1964_v42  ;;  %2576 = vmatmul.msk.f32.gmra.mxu3 %vm2325_vm6, %v2312_v41  ;;  %v2305_v9 = vmul.f32 %v2297_v51, %v2273_v25 }
 0x3b7   : > { %vm4323_vm9 = vcmp.eq.s32.totalorder %v4657_v8, 7  ;;  %v2068_v48 = vrot.slane %v1980_v14, 1  ;;  %v2128_v50 = vrot.slane %v1980_v14, 7  ;;  %v2290_v27 = vmax.f32 %v2282_v1, 0.0 }
 0x3b8   : > { %v2154_v37 = vadd.f32 %v2146_v33, %v2126_v35  ;;  %v2224_v0 = vadd.f32 %v2216_v53, %v2197_v21  ;;  %v2313_v30 = vmul.f32 0.16666667, %v2305_v9  ;;  %v2164_v7 = vmul.f32 %v4042_v47, %v1980_v14 }
 0x3b9   : > { %v2069_v52 = vsel %vm2054_vm12, %v2066_v40, %v2068_v48  ;;  %v2129_v17 = vsel %vm748_vm1, %v2002_v13, %v2128_v50  ;;  %v2174_v2 = vsel %vm2054_vm12, %v2068_v48, 0.0  ;;  %v2248_v13 = vsel %vm4168_vm10, 0.0, %v2067_v24 }
 0x3ba   : > { %v2171_v59 = vadd.f32 %v2163_v5, %v2154_v37  ;;  %v2241_v29 = vadd.f32 %v2233_v16, %v2224_v0  ;;  %v2110_v23 = vsel %vm4323_vm9, 0.0, %v2069_v52  ;;  %v2138_v25 = vsel %vm3044_vm3, 0.0, %v2129_v17 }
 0x3bb   : > { %v2181_v15 = vsel %vm4291_vm7, 0.0, %v2069_v52  ;;  %v2119_v43 = vmul.f32 %v4025_v58, %v2110_v23  ;;  %v2147_v40 = vmul.f32 %v4033_v45, %v2138_v25  ;;  %v2182_v57 = vsel %vm4323_vm9, 0.0, %v2174_v2 }
 0x3bc   : > { %v2190_v6 = vmul.f32 %v4069_v10, %v2181_v15  ;;  %v2208_v26 = vsel %vm3027_vm2, 0.0, %v2129_v17  ;;  %v2298_v55 = vmin.f32 %v2290_v27, 6.0  ;;  %v2201_v44 = vsel %vm748_vm1, %v2128_v50, 0.0 }
 0x3bd   : > { %v2127_v56 = vadd.f32 %v2119_v43, %v2052_v46  ;;  %v2217_v58 = vmul.f32 %v4071_v12, %v2208_v26  ;;  %v2250_v22 = vsel %vm4291_vm7, 0.0, %v2174_v2  ;;  %v2256_v45 = vmul.f32 %v4156_v32, %v2248_v13 }
 0x3be   : > { %v2198_v18 = vadd.f32 %v2190_v6, %v2171_v59  ;;  %2577 = vmatmul.msk.f32.gmra.mxu3 %vm2325_vm6, %v2313_v30  ;;  %v2234_v36 = vmul.f32 %v4052_v34, %v1980_v14  ;;  %v2249_v38 = vsel %vm4199_vm5, 0.0, %v2069_v52  ;;  %v2191_v41 = vmul.f32 %v4069_v10, %v2182_v57 }
 0x3bf   : > { %v2155_v24 = vadd.f32 %v2147_v40, %v2127_v56  ;;  %v2209_v3 = vsel %vm3044_vm3, 0.0, %v2201_v44  ;;  %v2264_v47 = vadd.f32 %v2256_v45, %v2240_v20  ;;  %v2257_v62 = vmul.f32 %v4156_v32, %v2249_v38 }
 0x3c0   : > { %v2225_v60 = vadd.f32 %v2217_v58, %v2198_v18  ;;  %v2258_v54 = vmul.f32 %v4156_v32, %v2250_v22  ;;  %v2306_v63 = vmul.f32 %v2298_v55, %v4296_v39  ;;  %v2218_v61 = vmul.f32 %v4071_v12, %v2209_v3 }
 0x3c1   : > { %v2172_v49 = vadd.f32 %v2164_v7, %v2155_v24  ;;  %v2275_v51 = vadd.f32 %v4232_v11, %v2264_v47  ;;  %v2265_v1 = vadd.f32 %v2257_v62, %v2241_v29  ;;  %v2235_v4 = vmul.f32 0.0, %v4052_v34 }
 0x3c2   : > { %v2242_v28 = vadd.f32 %v2234_v36, %v2225_v60  ;;  %v2314_v20 = vmul.f32 0.16666667, %v2306_v63  ;;  %v2259_v53 = vmul.f32 0.0, %v4156_v32 }
 0x3c3   : > { %v2199_v46 = vadd.f32 %v2191_v41, %v2172_v49  ;;  %v2283_v10 = vadd.f32 3.0, %v2275_v51  ;;  %v2276_v19 = vadd.f32 %v4232_v11, %v2265_v1 }
 0x3c4   : > { %v2266_v35 = vadd.f32 %v2258_v54, %v2242_v28 }
 0x3c5   : > { %v2226_v33 = vadd.f32 %v2218_v61, %v2199_v46  ;;  %v2291_v8 = vmax.f32 %v2283_v10, 0.0  ;;  %v2284_v31 = vadd.f32 3.0, %v2276_v19 }
 0x3c6   : > { %2578 = vmatmul.msk.f32.gmra.mxu3 %vm2325_vm6, %v2314_v20  ;;  %v2277_v5 = vadd.f32 %v4232_v11, %v2266_v35 }
 0x3c7   : > { %v2299_v42 = vmin.f32 %v2291_v8, 6.0  ;;  %v2292_v39 = vmax.f32 %v2284_v31, 0.0  ;;  %v2243_v21 = vadd.f32 %v2235_v4, %v2226_v33 }
 0x3c8   : > { %v2285_v9 = vadd.f32 3.0, %v2277_v5 }
 0x3c9   : > { %v2307_v12 = vmul.f32 %v2299_v42, %v2275_v51  ;;  %v2300_v14 = vmin.f32 %v2292_v39, 6.0  ;;  %v2267_v48 = vadd.f32 %v2259_v53, %v2243_v21 }
 0x3ca   : > { %v2293_v34 = vmax.f32 %v2285_v9, 0.0 }
 0x3cb   : > { %v2315_v37 = vmul.f32 0.16666667, %v2307_v12  ;;  %v2308_v50 = vmul.f32 %v2300_v14, %v2276_v19  ;;  %v2278_v0 = vadd.f32 %v4232_v11, %v2267_v48  ;;  %v2643_v11 = vld [vmem:[%s4455_s18] ss:$0 sm:$0xff] }
 0x3cc   : > { %v2301_v27 = vmin.f32 %v2293_v34, 6.0 }
 0x3cd   : > { %v2316_v16 = vmul.f32 0.16666667, %v2308_v50  ;;  %v2286_v59 = vadd.f32 3.0, %v2278_v0 }
 0x3ce   : > { %2579 = vmatmul.msk.f32.gmra.mxu3 %vm2325_vm6, %v2315_v37  ;;  %v2309_v52 = vmul.f32 %v2301_v27, %v2277_v5 }
 0x3cf   : > { %v2294_v32 = vmax.f32 %v2286_v59, 0.0 }
 0x3d0   : > { %v2317_v17 = vmul.f32 0.16666667, %v2309_v52 }
 0x3d1   : > { %v2302_v2 = vmin.f32 %v2294_v32, 6.0 }
 0x3d3   : > { %v2310_v29 = vmul.f32 %v2302_v2, %v2278_v0 }
 0x3d5   : > { %v2318_v23 = vmul.f32 0.16666667, %v2310_v29 }
 0x3d6   : > { %2580 = vmatmul.msk.f32.gmra.mxu3 %vm2325_vm6, %v2316_v16 }
 0x3de   : > { %2581 = vmatmul.msk.f32.gmra.mxu3 %vm2325_vm6, %v2317_v17 }
 0x3e6   : > { %2582 = vmatmul.msk.f32.gmra.mxu3 %vm2325_vm6, %v2318_v23 }
 0x431   : > { %v2367_v25 = vpop.f32.mrf.mxu3 }
 0x432   : > { %v2368_v15 = vadd.f32 %v2643_v11, %v2367_v25 }
 0x434   : > { %v2391_v30 = vadd.f32 3.0, %v2368_v15 }
 0x436   : > { %v2399_v43 = vmax.f32 %v2391_v30, 0.0 }
 0x438   : > { %v2407_v6 = vmin.f32 %v2399_v43, 6.0 }
 0x439   : > { %v2370_v13 = vpop.f32.mrf.mxu3 }
 0x43a   : > { %v2415_v40 = vmul.f32 %v2407_v6, %v2368_v15  ;;  %v2371_v57 = vadd.f32 %v2643_v11, %v2370_v13 }
 0x43c   : > { %v2423_v26 = vmul.f32 0.16666667, %v2415_v40  ;;  %v2392_v55 = vadd.f32 3.0, %v2371_v57 }
 0x43e   : > { %2431 = vst.msk [vmem:[%s4384_s22] sm:$0xff] %vm2325_vm6, %v2423_v26  ;;  %v2400_v56 = vmax.f32 %v2392_v55, 0.0 }
 0x440   : > { %v2408_v18 = vmin.f32 %v2400_v56, 6.0 }
 0x441   : > { %v2373_v44 = vpop.f32.mrf.mxu3 }
 0x442   : > { %v2416_v58 = vmul.f32 %v2408_v18, %v2371_v57  ;;  %v2374_v7 = vadd.f32 %v2643_v11, %v2373_v44 }
 0x444   : > { %v2424_v22 = vmul.f32 0.16666667, %v2416_v58  ;;  %v2393_v45 = vadd.f32 3.0, %v2374_v7 }
 0x446   : > { %2432 = vst.msk [vmem:[%s4384_s22 + $0x8] sm:$0xff] %vm2325_vm6, %v2424_v22  ;;  %v2401_v24 = vmax.f32 %v2393_v45, 0.0 }
 0x448   : > { %v2409_v60 = vmin.f32 %v2401_v24, 6.0 }
 0x449   : > { %v2376_v36 = vpop.f32.mrf.mxu3 }
 0x44a   : > { %v2417_v38 = vmul.f32 %v2409_v60, %v2374_v7  ;;  %v2377_v41 = vadd.f32 %v2643_v11, %v2376_v36 }
 0x44c   : > { %v2425_v3 = vmul.f32 0.16666667, %v2417_v38  ;;  %v2394_v47 = vadd.f32 3.0, %v2377_v41 }
 0x44e   : > { %2433 = vst.msk [vmem:[%s4384_s22 + $0x10] sm:$0xff] %vm2325_vm6, %v2425_v3  ;;  %v2402_v62 = vmax.f32 %v2394_v47, 0.0 }
 0x450   : > { %v2410_v49 = vmin.f32 %v2402_v62, 6.0 }
 0x451   : > { %v2379_v28 = vpop.f32.mrf.mxu3 }
 0x452   : > { %v2418_v54 = vmul.f32 %v2410_v49, %v2377_v41  ;;  %v2380_v63 = vadd.f32 %v2643_v11, %v2379_v28 }
 0x454   : > { %v2426_v51 = vmul.f32 0.16666667, %v2418_v54  ;;  %v2395_v1 = vadd.f32 3.0, %v2380_v63 }
 0x456   : > { %2434 = vst.msk [vmem:[%s4384_s22 + $0x18] sm:$0xff] %vm2325_vm6, %v2426_v51  ;;  %v2403_v46 = vmax.f32 %v2395_v1, 0.0 }
 0x458   : > { %v2411_v61 = vmin.f32 %v2403_v46, 6.0 }
 0x459   : > { %v2382_v35 = vpop.f32.mrf.mxu3 }
 0x45a   : > { %v2419_v10 = vmul.f32 %v2411_v61, %v2380_v63  ;;  %v2383_v19 = vadd.f32 %v2643_v11, %v2382_v35 }
 0x45c   : > { %v2427_v33 = vmul.f32 0.16666667, %v2419_v10  ;;  %v2396_v20 = vadd.f32 3.0, %v2383_v19 }
 0x45e   : > { %2435 = vst.msk [vmem:[%s4384_s22 + $0x20] sm:$0xff] %vm2325_vm6, %v2427_v33  ;;  %v2404_v4 = vmax.f32 %v2396_v20, 0.0 }
 0x460   : > { %v2412_v8 = vmin.f32 %v2404_v4, 6.0 }
 0x461   : > { %v2385_v31 = vpop.f32.mrf.mxu3 }
 0x462   : > { %v2420_v42 = vmul.f32 %v2412_v8, %v2383_v19  ;;  %v2386_v39 = vadd.f32 %v2643_v11, %v2385_v31 }
 0x464   : > { %v2428_v5 = vmul.f32 0.16666667, %v2420_v42  ;;  %v2397_v21 = vadd.f32 3.0, %v2386_v39 }
 0x466   : > { %2436 = vst.msk [vmem:[%s4384_s22 + $0x28] sm:$0xff] %vm2325_vm6, %v2428_v5  ;;  %v2405_v53 = vmax.f32 %v2397_v21, 0.0 }
 0x468   : > { %v2413_v12 = vmin.f32 %v2405_v53, 6.0 }
 0x469   : > { %v2388_v14 = vpop.f32.mrf.mxu3 }
 0x46a   : > { %v2421_v37 = vmul.f32 %v2413_v12, %v2386_v39  ;;  %v2389_v9 = vadd.f32 %v2643_v11, %v2388_v14 }
 0x46c   : > { %v2429_v48 = vmul.f32 0.16666667, %v2421_v37  ;;  %v2398_v50 = vadd.f32 3.0, %v2389_v9 }
 0x46e   : > { %2437 = vst.msk [vmem:[%s4384_s22 + $0x30] sm:$0xff] %vm2325_vm6, %v2429_v48  ;;  %v2406_v34 = vmax.f32 %v2398_v50, 0.0 }
 0x470   : > { %v2414_v0 = vmin.f32 %v2406_v34, 6.0 }
 0x472   : > { %v2422_v16 = vmul.f32 %v2414_v0, %v2389_v9 }
 0x474   : > { %v2430_v27 = vmul.f32 0.16666667, %v2422_v16 }
 0x476   : > { %2438 = vst.msk [vmem:[%s4384_s22 + $0x38] sm:$0xff] %vm2325_vm6, %v2430_v27 }
 0x477   : > { %2676 = shalt.err (!%p2673_p3)
}
 0x478   : > { %s2714_s22 = smov 128   ;;  %s4661_s1 = smov 8  }
 0x479   : > { %2593 = dma.vmem_to_hbm [thread:$0]  (%p2853_p5), %s2453_s27, 1024, %s2455_s29, %s2440_s4, %s2714_s22, %s2714_s22, %s4661_s1  }
 0x47a PF: > { %p2599_p4 = scmp.ge.s32.totalorder %s2711_s21, 2  ;;  %s2469_s28 = sand.u32 1, %s2699_s0  }
 0x47b   : > { %s2470_s7 = scalar_lea.sflag [#allocation3], %s2469_s28 }
 0x47c   : > { %p2596_p7 = pnand %p2599_p4, %p2857_p6 }
 0x47e   : > { %p2597_p8 = pneg %p2596_p7 }
 0x480   : > { %2694 = dma.done.wait (%p2597_p8), %s2470_s7, 1024  }
 0x481   : > { %2696 = vsyncadd (%p2597_p8), %s2470_s7, 4294966272  ;;  %s4662_s6 = sld [smem:[#allocation5_spill]]  ;;  %p29_p9 = scmp.ge.s32.totalorder %s2840_s2, 4  }
 0x482   : > { %s4663_s20 = sld [smem:[#allocation6_spill]]  ;;  %s4664_s0 = smov %s2703_s30 }
 0x483   : > { %s4666_s21 = smov %s2840_s2  ;;  %31 = sbr.rel (!%p29_p9) target bundleno = 12 (0xc), region = 131 }
 0x487   : > { %s4665_s30 = smov %s4662_s6 }
 0x488   :  { %2476 = vsyncpa [#allocation3], 1 }
 0x489   :  { %2478 = vsyncpa [#allocation3 + $0x1], 1 }

</bundles_post_ra>
